<compile_context>
chip_gen: v5e
topology: v5e:2x2
jax: 0.10.0
libtpu: 0.0.40
codegen_flags: <defaults>
</compile_context>

<pallas_src>
import functools
import math

import numpy as np
import jax
import jax.numpy as jnp
from jax.experimental import pallas as pl
from jax.experimental.pallas import tpu as pltpu


# ---------------------------------------------------------------------------
# Host-side (numpy) precompute of what the reference builds with sympy/scipy:
# spherical-Bessel zeros z[l, j] and normalizers.  Purely numeric, S*R floats.
# ---------------------------------------------------------------------------
def _sph_jn_np(order, x):
    """Spherical Bessel j_l(x), numpy float64, upward recurrence."""
    x = np.asarray(x, dtype=np.float64)
    j0 = np.sin(x) / x
    if order == 0:
        return j0
    j1 = np.sin(x) / x ** 2 - np.cos(x) / x
    if order == 1:
        return j1
    jm2, jm1 = j0, j1
    for m in range(2, order + 1):
        jm = (2 * m - 1) / x * jm1 - jm2
        jm2, jm1 = jm1, jm
    return jm


def _bessel_zeros_np(num_spherical, num_radial):
    """zeros[l, j] = (j+1)-th positive zero of j_l (bisection + interlacing)."""
    n = num_radial + num_spherical
    zeros = np.zeros((num_spherical, n), dtype=np.float64)
    zeros[0] = np.arange(1, n + 1) * np.pi
    for l in range(1, num_spherical):
        prev = zeros[l - 1]
        for j in range(n - l):
            a, b = prev[j], prev[j + 1]
            fa = _sph_jn_np(l, a)
            for _ in range(100):
                m = 0.5 * (a + b)
                fm = _sph_jn_np(l, m)
                if np.sign(fm) == np.sign(fa):
                    a, fa = m, fm
                else:
                    b = m
            zeros[l, j] = 0.5 * (a + b)
    return zeros[:, :num_radial]


def _basis_constants(num_spherical, num_radial):
    z = _bessel_zeros_np(num_spherical, num_radial)                 # [S, R]
    norm = np.zeros_like(z)
    for l in range(num_spherical):
        # reference: 1 / sqrt(0.5 * j_{l+1}(z)**2)
        norm[l] = np.sqrt(2.0) / np.abs(_sph_jn_np(l + 1, z[l]))
    pref = np.array([math.sqrt((2 * l + 1) / (4.0 * math.pi))
                     for l in range(num_spherical)])                # [S]
    return z, norm, pref


# ---------------------------------------------------------------------------
# Pallas kernel: one tile of triplets.
#   refs = (dist_kj [tT,1], angle [tT,1], zeros_flat [1,S*R],
#           selcoef_0..selcoef_{S-1} [1,S*R] each, out [tT,S*R])
# out[t, l*R + j] = norm[l,j]*pref[l] * j_l(z[l,j]*dist_kj[t]/cutoff) * P_l(cos(angle[t]))
# ---------------------------------------------------------------------------
def _angle_emb_kernel(num_spherical, inv_cutoff, *refs):
    s_count = num_spherical
    d_ref, a_ref, z_ref = refs[0], refs[1], refs[2]
    sel_refs = refs[3:3 + s_count]
    o_ref = refs[3 + s_count]

    x = d_ref[...] * inv_cutoff                 # [tT, 1]
    arg = x * z_ref[...]                        # [tT, S*R] (lane broadcast)
    inv = 1.0 / arg
    sn = jnp.sin(arg)
    cs = jnp.cos(arg)

    # Spherical Bessel j_0 .. j_{S-1} (wide: every column, Rayleigh recurrence).
    bs = [sn * inv]                             # j0 = sin(x)/x
    if s_count > 1:
        bs.append((bs[0] - cs) * inv)           # j1 = sin(x)/x^2 - cos(x)/x
        for m in range(2, s_count):
            bs.append((2.0 * m - 1.0) * inv * bs[m - 1] - bs[m - 2])

    # Legendre P_0 .. P_{S-1} of cos(angle)  (m=0 real spherical harmonics).
    ct = jnp.cos(a_ref[...])                    # [tT, 1]
    ps = [jnp.ones_like(ct)]
    if s_count > 1:
        ps.append(ct)
        for l in range(2, s_count):
            ps.append(((2.0 * l - 1.0) * ct * ps[l - 1]
                       - (l - 1.0) * ps[l - 2]) * (1.0 / l))

    # Combine: selcoef_l is nonzero (= norm*pref) only on column block l.
    out = jnp.zeros_like(arg)
    for l in range(s_count):
        out = out + ps[l] * (bs[l] * sel_refs[l][...])
    o_ref[...] = out


def angle_emb_forward(dist, angle, idx_kj, *, num_spherical, num_radial,
                      cutoff=5.0, tile_t=256):
    S, R = num_spherical, num_radial
    z_np, norm_np, pref_np = _basis_constants(S, R)

    zeros_flat = jnp.asarray(z_np.reshape(1, S * R), dtype=jnp.float32)
    sels = []
    for l in range(S):
        sel = np.zeros((1, S * R), dtype=np.float32)
        sel[0, l * R:(l + 1) * R] = (norm_np[l] * pref_np[l]).astype(np.float32)
        sels.append(jnp.asarray(sel))

    T = angle.shape[0]
    # O(T) scalar gather as XLA glue (replaces the former O(T*E) one-hot matmul).
    dist_kj = jnp.take(dist.astype(jnp.float32), idx_kj, axis=0)

    n_tiles = pl.cdiv(T, tile_t)
    t_pad = n_tiles * tile_t
    pad = t_pad - T
    d = jnp.pad(dist_kj, (0, pad), constant_values=1.0).reshape(t_pad, 1)
    a = jnp.pad(angle.astype(jnp.float32), (0, pad),
                constant_values=0.0).reshape(t_pad, 1)

    row_spec = pl.BlockSpec((tile_t, 1), lambda i: (i, 0))
    const_spec = pl.BlockSpec((1, S * R), lambda i: (0, 0))

    kernel = functools.partial(_angle_emb_kernel, S, 1.0 / cutoff)
    out = pl.pallas_call(
        kernel,
        out_shape=jax.ShapeDtypeStruct((t_pad, S * R), jnp.float32),
        grid=(n_tiles,),
        in_specs=[row_spec, row_spec, const_spec] + [const_spec] * S,
        out_specs=pl.BlockSpec((tile_t, S * R), lambda i: (i, 0)),
        compiler_params=pltpu.CompilerParams(
            dimension_semantics=("parallel",),
            vmem_limit_bytes=32 * 1024 * 1024,
        ),
    )(d, a, zeros_flat, *sels)
    return out[:T]


# ---------------------------------------------------------------------------
# Pure-JAX reference mirroring angle_emb.forward (per-edge rbf, gather, * cbf).
# ---------------------------------------------------------------------------
def angle_emb_reference(dist, angle, idx_kj, num_spherical, num_radial, cutoff):
    S, R = num_spherical, num_radial
    z_np, norm_np, pref_np = _basis_constants(S, R)
    z = jnp.asarray(z_np, dtype=jnp.float32)
    norm = jnp.asarray(norm_np, dtype=jnp.float32)
    pref = jnp.asarray(pref_np, dtype=jnp.float32)

    x = (dist / cutoff)[:, None]                              # [E, 1]

    def jl(order, arg):
        inv = 1.0 / arg
        j0 = jnp.sin(arg) * inv
        if order == 0:
            return j0
        j1 = (j0 - jnp.cos(arg)) * inv
        if order == 1:
            return j1
        jm2, jm1 = j0, j1
        for m in range(2, order + 1):
            jm = (2.0 * m - 1.0) * inv * jm1 - jm2
            jm2, jm1 = jm1, jm
        return jm

    rbf_cols = []
    for l in range(S):
        arg = x * z[l][None, :]                               # [E, R]
        rbf_cols.append(norm[l][None, :] * jl(l, arg))
    rbf = jnp.concatenate(rbf_cols, axis=1)                   # [E, S*R]

    ct = jnp.cos(angle)[:, None]                              # [T, 1]
    ps = [jnp.ones_like(ct)]
    if S > 1:
        ps.append(ct)
        for l in range(2, S):
            ps.append(((2.0 * l - 1.0) * ct * ps[l - 1]
                       - (l - 1.0) * ps[l - 2]) / l)
    cbf = jnp.concatenate(ps, axis=1) * pref[None, :]         # [T, S]

    out = rbf[idx_kj].reshape(-1, S, R) * cbf[:, :, None]
    return out.reshape(-1, S * R)


if __name__ == "__main__":
    num_spherical, num_radial, cutoff = 3, 6, 5.0
    E, T = 50, 200   # E edges, T triplets

    key = jax.random.PRNGKey(0)
    kd, ka, ki = jax.random.split(key, 3)
    dist = jax.random.uniform(kd, (E,), jnp.float32, 0.5, cutoff)
    angle = jax.random.uniform(ka, (T,), jnp.float32, 0.0, math.pi)
    idx_kj = jax.random.randint(ki, (T,), 0, E, jnp.int32)

    out = angle_emb_forward(dist, angle, idx_kj,
                            num_spherical=num_spherical,
                            num_radial=num_radial,
                            cutoff=cutoff, tile_t=64)
    jax.block_until_ready(out)

    ref = angle_emb_reference(dist, angle, idx_kj,
                              num_spherical, num_radial, cutoff)
    assert out.shape == (T, num_spherical * num_radial)
    max_err = float(jnp.max(jnp.abs(out - ref)))
    assert jnp.allclose(out, ref, atol=2e-3, rtol=2e-3), max_err
    print("KERNEL_OK")
</pallas_src>

<mosaic_0001>
module attributes {stable_mosaic.version = 11 : i64} {
  func.func @_angle_emb_kernel(%arg0: i32, %arg1: memref<64x1xf32, #tpu.memory_space<vmem>>, %arg2: memref<64x1xf32, #tpu.memory_space<vmem>>, %arg3: memref<1x18xf32, #tpu.memory_space<vmem>>, %arg4: memref<1x18xf32, #tpu.memory_space<vmem>>, %arg5: memref<1x18xf32, #tpu.memory_space<vmem>>, %arg6: memref<1x18xf32, #tpu.memory_space<vmem>>, %arg7: memref<64x18xf32, #tpu.memory_space<vmem>>) attributes {dimension_semantics = [#tpu.dimension_semantics<parallel>], iteration_bounds = array<i64: 4>, scalar_prefetch = 0 : i64, scratch_operands = 0 : i64, tpu.core_type = #tpu.core_type<tc>, window_params = [{transform_indices = @transform_0, window_bounds = array<i64: 64, 1>}, {transform_indices = @transform_1, window_bounds = array<i64: 64, 1>}, {pipeline_mode = #tpu.pipeline_mode<synchronous>, transform_indices = @transform_2, window_bounds = array<i64: 1, 18>}, {pipeline_mode = #tpu.pipeline_mode<synchronous>, transform_indices = @transform_3, window_bounds = array<i64: 1, 18>}, {pipeline_mode = #tpu.pipeline_mode<synchronous>, transform_indices = @transform_4, window_bounds = array<i64: 1, 18>}, {pipeline_mode = #tpu.pipeline_mode<synchronous>, transform_indices = @transform_5, window_bounds = array<i64: 1, 18>}, {transform_indices = @transform_6, window_bounds = array<i64: 64, 18>}]} {
    %c0 = arith.constant 0 : index
    %c0_0 = arith.constant 0 : index
    %0 = vector.load %arg1[%c0, %c0_0] : memref<64x1xf32, #tpu.memory_space<vmem>>, vector<64x1xf32>
    %cst = arith.constant 2.000000e-01 : f32
    %1 = vector.broadcast %cst : f32 to vector<64x1xf32>
    %2 = arith.mulf %0, %1 : vector<64x1xf32>
    %c0_1 = arith.constant 0 : index
    %c0_2 = arith.constant 0 : index
    %3 = vector.load %arg3[%c0_1, %c0_2] : memref<1x18xf32, #tpu.memory_space<vmem>>, vector<1x18xf32>
    %4 = vector.broadcast %2 : vector<64x1xf32> to vector<64x18xf32>
    %5 = vector.broadcast %3 : vector<1x18xf32> to vector<64x18xf32>
    %6 = arith.mulf %4, %5 : vector<64x18xf32>
    %cst_3 = arith.constant 1.000000e+00 : f32
    %7 = vector.broadcast %cst_3 : f32 to vector<64x18xf32>
    %8 = arith.divf %7, %6 : vector<64x18xf32>
    %9 = math.sin %6 : vector<64x18xf32>
    %10 = math.cos %6 : vector<64x18xf32>
    %11 = arith.mulf %9, %8 : vector<64x18xf32>
    %12 = arith.subf %11, %10 : vector<64x18xf32>
    %13 = arith.mulf %12, %8 : vector<64x18xf32>
    %cst_4 = arith.constant 3.000000e+00 : f32
    %14 = vector.broadcast %cst_4 : f32 to vector<64x18xf32>
    %15 = arith.mulf %14, %8 : vector<64x18xf32>
    %16 = arith.mulf %15, %13 : vector<64x18xf32>
    %17 = arith.subf %16, %11 : vector<64x18xf32>
    %c0_5 = arith.constant 0 : index
    %c0_6 = arith.constant 0 : index
    %18 = vector.load %arg2[%c0_5, %c0_6] : memref<64x1xf32, #tpu.memory_space<vmem>>, vector<64x1xf32>
    %19 = math.cos %18 : vector<64x1xf32>
    %cst_7 = arith.constant 1.000000e+00 : f32
    %20 = vector.broadcast %cst_7 : f32 to vector<64x1xf32>
    %cst_8 = arith.constant 3.000000e+00 : f32
    %21 = vector.broadcast %cst_8 : f32 to vector<64x1xf32>
    %22 = arith.mulf %21, %19 : vector<64x1xf32>
    %23 = arith.mulf %22, %19 : vector<64x1xf32>
    %cst_9 = arith.constant 1.000000e+00 : f32
    %24 = vector.broadcast %cst_9 : f32 to vector<64x1xf32>
    %25 = arith.mulf %24, %20 : vector<64x1xf32>
    %26 = arith.subf %23, %25 : vector<64x1xf32>
    %cst_10 = arith.constant 5.000000e-01 : f32
    %27 = vector.broadcast %cst_10 : f32 to vector<64x1xf32>
    %28 = arith.mulf %26, %27 : vector<64x1xf32>
    %cst_11 = arith.constant 0.000000e+00 : f32
    %29 = vector.broadcast %cst_11 : f32 to vector<64x18xf32>
    %c0_12 = arith.constant 0 : index
    %c0_13 = arith.constant 0 : index
    %30 = vector.load %arg4[%c0_12, %c0_13] : memref<1x18xf32, #tpu.memory_space<vmem>>, vector<1x18xf32>
    %31 = vector.broadcast %30 : vector<1x18xf32> to vector<64x18xf32>
    %32 = arith.mulf %11, %31 : vector<64x18xf32>
    %33 = vector.broadcast %20 : vector<64x1xf32> to vector<64x18xf32>
    %34 = arith.mulf %33, %32 : vector<64x18xf32>
    %35 = arith.addf %29, %34 : vector<64x18xf32>
    %c0_14 = arith.constant 0 : index
    %c0_15 = arith.constant 0 : index
    %36 = vector.load %arg5[%c0_14, %c0_15] : memref<1x18xf32, #tpu.memory_space<vmem>>, vector<1x18xf32>
    %37 = vector.broadcast %36 : vector<1x18xf32> to vector<64x18xf32>
    %38 = arith.mulf %13, %37 : vector<64x18xf32>
    %39 = vector.broadcast %19 : vector<64x1xf32> to vector<64x18xf32>
    %40 = arith.mulf %39, %38 : vector<64x18xf32>
    %41 = arith.addf %35, %40 : vector<64x18xf32>
    %c0_16 = arith.constant 0 : index
    %c0_17 = arith.constant 0 : index
    %42 = vector.load %arg6[%c0_16, %c0_17] : memref<1x18xf32, #tpu.memory_space<vmem>>, vector<1x18xf32>
    %43 = vector.broadcast %42 : vector<1x18xf32> to vector<64x18xf32>
    %44 = arith.mulf %17, %43 : vector<64x18xf32>
    %45 = vector.broadcast %28 : vector<64x1xf32> to vector<64x18xf32>
    %46 = arith.mulf %45, %44 : vector<64x18xf32>
    %47 = arith.addf %41, %46 : vector<64x18xf32>
    %c0_18 = arith.constant 0 : index
    %c0_19 = arith.constant 0 : index
    %48 = vector.load %arg7[%c0_18, %c0_19] : memref<64x18xf32, #tpu.memory_space<vmem>>, vector<64x18xf32>
    tpu.vector_store %arg7[%c0_18, %c0_19], %47 {strides = array<i32>} : memref<64x18xf32, #tpu.memory_space<vmem>>, vector<64x18xf32>,
    return
  }
  func.func @transform_0(%arg0: i32) -> (i32, i32) {
    %c0_i32 = arith.constant 0 : i32
    %c0_i32_0 = arith.constant 0 : i32
    return %arg0, %c0_i32 : i32, i32
  }
  func.func @transform_1(%arg0: i32) -> (i32, i32) {
    %c0_i32 = arith.constant 0 : i32
    %c0_i32_0 = arith.constant 0 : i32
    return %arg0, %c0_i32 : i32, i32
  }
  func.func @transform_2(%arg0: i32) -> (i32, i32) {
    %c0_i32 = arith.constant 0 : i32
    %c0_i32_0 = arith.constant 0 : i32
    %c0_i32_1 = arith.constant 0 : i32
    return %c0_i32, %c0_i32_0 : i32, i32
  }
  func.func @transform_3(%arg0: i32) -> (i32, i32) {
    %c0_i32 = arith.constant 0 : i32
    %c0_i32_0 = arith.constant 0 : i32
    %c0_i32_1 = arith.constant 0 : i32
    return %c0_i32, %c0_i32_0 : i32, i32
  }
  func.func @transform_4(%arg0: i32) -> (i32, i32) {
    %c0_i32 = arith.constant 0 : i32
    %c0_i32_0 = arith.constant 0 : i32
    %c0_i32_1 = arith.constant 0 : i32
    return %c0_i32, %c0_i32_0 : i32, i32
  }
  func.func @transform_5(%arg0: i32) -> (i32, i32) {
    %c0_i32 = arith.constant 0 : i32
    %c0_i32_0 = arith.constant 0 : i32
    %c0_i32_1 = arith.constant 0 : i32
    return %c0_i32, %c0_i32_0 : i32, i32
  }
  func.func @transform_6(%arg0: i32) -> (i32, i32) {
    %c0_i32 = arith.constant 0 : i32
    %c0_i32_0 = arith.constant 0 : i32
    return %arg0, %c0_i32 : i32, i32
  }
}

</mosaic_0001>

<bundles_post_ra>
// kernel: tpu_custom_call.1
= control target key start
LH: loop header
LB: loop body
LE: loop exit
PB: predicated region body
PF: predicated region fallthrough
CT: control target
= control target key end

     0   :  { %s4678_s21 = smov 0   ;;  %s7071_s0 = inlined_call_operand.vmem [shape: f32[256,1], index: 0, kind: input, shape index: {}]   ;;  %s7072_s1 = inlined_call_operand.vmem [shape: f32[256,1], index: 1, kind: input, shape index: {}]   ;;  %s7073_s2 = inlined_call_operand.vmem [shape: f32[1,18], index: 2, kind: input, shape index: {}]   ;;  %s7074_s3 = inlined_call_operand.vmem [shape: f32[1,18], index: 3, kind: input, shape index: {}]   ;;  %s7075_s4 = inlined_call_operand.vmem [shape: f32[1,18], index: 4, kind: input, shape index: {}]   ;;  %s7076_s5 = inlined_call_operand.vmem [shape: f32[1,18], index: 5, kind: input, shape index: {}]   ;;  %s7077_s6 = inlined_call_operand.vmem [shape: f32[256,18], index: 6, kind: output, shape index: {}]  }
   0x1 LB: > { %s4490_s22 = sadd.s32 4294967295, %s4634_s21   ;;  %p4494_p0 = scmp.ge.s32.totalorder %s4634_s21, 1  ;;  %s4634_s21 = sphi %s4678_s21, %s16_s21  }
   0x2   : > { %p224_p1 = scmp.lt.s32.totalorder %s4634_s21, 5 }
   0x4   : > { %p225_p2 = pnand %p4494_p0, %p224_p1 }
   0x6   : > { %228 = sbr.rel (%p225_p2) target bundleno = 733 (0x2dd), region = 44 }
   0xb   : > { %s4495_s23 = sshll.u32 %s4490_s22, 3  ;;  %v7088_v0 = vmov 0   ;;  %v7090_v45 = vmov 683565275   ;;  %v7086_v47 = vmov 2475754826  }
   0xc   : > { %4600 = vset.pattern.permute.xlu2 %v7088_v0  ;;  %4599 = vset.pattern.permute.xlu1 %v7088_v0  ;;  %p260_p3 = scmp.lt.s32.totalorder %s4495_s23, 31  ;;  %v7082_v49 = vmov 2131351028   ;;  %v7080_v51 = vmov 2102212464  }
   0xd   : > { %4598 = vset.pattern.permute.xlu0 %v7088_v0  ;;  %v7084_v53 = vmov 920167782   ;;  %v7078_v62 = vmov 1326507024  }
   0xe   : > { %s7134_s23 = smov (!%p260_p3, %s4495_s23), 31 }
   0xf   : > { %s4689_s24 = sshll.u32 %s7134_s23, 3 }
  0x10   : > { %s4695_s27 = scalar_lea.vmem %s7071_s0, %s4689_s24  ;;  %s4704_s30 = scalar_lea.vmem %s7072_s1, %s4689_s24 }
  0x11   : > { %v281_v1 = vld [vmem:[%s4695_s27 + $0x20] sm:$0xff]  ;;  %v279_v2 = vld [vmem:[%s4695_s27 + $0x10] sm:$0xff]  ;;  %v282_v7 = vld [vmem:[%s4695_s27 + $0x28] sm:$0xff]  ;;  %s6592_s25 = scalar_lea.vmem %s7077_s6, %s4689_s24 }
  0x12   : > { %v277_v3 = vld [vmem:[%s4695_s27] sm:$0xff]  ;;  %v289_v4 = vmul.f32 0.2, %v281_v1  ;;  %v287_v5 = vmul.f32 0.2, %v279_v2  ;;  %v280_v8 = vld [vmem:[%s4695_s27 + $0x18] sm:$0xff] }
  0x13   : > { %v285_v6 = vmul.f32 0.2, %v277_v3  ;;  %v4709_v9 = vld [vmem:[%s4704_s30] sm:$0xff]  ;;  %v290_v10 = vmul.f32 0.2, %v282_v7  ;;  %v278_v11 = vld [vmem:[%s4695_s27 + $0x8] sm:$0xff] }
  0x14   : > { %316 = vperm.xlu2 %4600, %v289_v4   ;;  %306 = vperm.xlu1 %4599, %v287_v5   ;;  %v2993_v12 = vand.u32 2147483647, %v4709_v9  ;;  %v288_v13 = vmul.f32 0.2, %v280_v8  ;;  %v2996_v14 = vand.u32 2139095040, %v4709_v9  ;;  %v4715_v15 = vld [vmem:[%s4704_s30 + $0x10] sm:$0xff] }
  0x15   : > { %296 = vperm.xlu0 %4598, %v285_v6   ;;  %v4718_v16 = vld [vmem:[%s4704_s30 + $0x8] sm:$0xff]  ;;  %v3301_v18 = vand.u32 2147483647, %v4715_v15  ;;  %v3304_v19 = vand.u32 2139095040, %v4715_v15  ;;  %v286_v20 = vmul.f32 0.2, %v278_v11 }
  0x16   : > { %v3000_v17 = vand.u32 8388607, %v2993_v12  ;;  %v2997_v21 = vshrl.u32 %v2996_v14, 23  ;;  %v3150_v22 = vand.u32 2139095040, %v4718_v16  ;;  %v284_v28 = vld [vmem:[%s4695_s27 + $0x38] sm:$0xff]  ;;  %v283_v31 = vld [vmem:[%s4695_s27 + $0x30] sm:$0xff] }
  0x17   : > { %v3305_v24 = vshrl.u32 %v3304_v19, 23  ;;  %v3308_v27 = vand.u32 8388607, %v3301_v18  ;;  %v292_v34 = vmul.f32 0.2, %v284_v28 }
  0x18   : > { %v3001_v23 = vor.u32 8388608, %v3000_v17  ;;  %v4549_v25 = vadd.s32 4294967169, %v2997_v21  ;;  %v3151_v30 = vshrl.u32 %v3150_v22, 23  ;;  %v291_v37 = vmul.f32 0.2, %v283_v31 }
  0x19   : > { %v4555_v26 = vadd.s32 4294967169, %v3305_v24  ;;  %v3309_v36 = vor.u32 8388608, %v3308_v27 }
  0x1a   : > { %v3003_v29 = vadd.s32 1, %v4549_v25  ;;  %v4729_v32 = vshll.u32 %v3001_v23, 8  ;;  %v4552_v40 = vadd.s32 4294967169, %v3151_v30 }
  0x1b   : > { %v3311_v33 = vadd.s32 1, %v4555_v26  ;;  %v4744_v56 = vshll.u32 %v3309_v36, 8 }
  0x1c   : > { %321 = vperm.xlu2 %4600, %v290_v10   ;;  %311 = vperm.xlu1 %4599, %v288_v13   ;;  %vm3004_vm0 = vcmp.gt.s32.totalorder %v3003_v29, 0  ;;  %v4734_v42 = vand.u32 65535, %v4729_v32  ;;  %v3043_v55 = vshrl.u32 %v4729_v32, 16  ;;  %v4749_v60 = vadd.s32 1, %v4552_v40 }
  0x1d   : > { %301 = vperm.xlu0 %4598, %v286_v20   ;;  %v3005_v35 = vsel %vm3004_vm0, %v3003_v29, 0  ;;  %vm3312_vm1 = vcmp.gt.s32.totalorder %v3311_v33, 0 }
  0x1e   : > { %v3007_v38 = vand.u32 31, %v3005_v35  ;;  %v3313_v39 = vsel %vm3312_vm1, %v3311_v33, 0  ;;  %v4731_v41 = vshrl.u32 %v3005_v35, 5  ;;  %vm3158_vm15 = vcmp.gt.s32.totalorder %v4749_v60, 0 }
  0x1f   : > { %v4736_v43 = vand.u32 31, %v3313_v39  ;;  %v4765_v11 = vshrl.u32 %v3313_v39, 5 }
  0x20   : > { %v3008_v44 = vsub.s32 32, %v3007_v38  ;;  %v3010_v46 = vshll.u32 %v7090_v45, %v3007_v38  ;;  %v3013_v48 = vshll.u32 %v7086_v47, %v3007_v38  ;;  %v3016_v50 = vshll.u32 %v7082_v49, %v3007_v38 }
  0x21   : > { %v3019_v52 = vshll.u32 %v7080_v51, %v3007_v38  ;;  %v3022_v54 = vshll.u32 %v7084_v53, %v3007_v38  ;;  %vm3025_vm2 = vcmp.lt.s32.totalorder %v4731_v41, 1  ;;  %vm3028_vm3 = vcmp.lt.s32.totalorder %v4731_v41, 4 }
  0x22   : > { %v3011_v57 = vshrl.u32 %v7086_v47, %v3008_v44  ;;  %v3014_v58 = vshrl.u32 %v7082_v49, %v3008_v44  ;;  %v3017_v59 = vshrl.u32 %v7080_v51, %v3008_v44  ;;  %v3020_v61 = vshrl.u32 %v7084_v53, %v3008_v44 }
  0x23   : > { %v3023_v63 = vshrl.u32 %v7078_v62, %v3008_v44  ;;  %v4756_v4 = vsub.s32 32, %v4736_v43  ;;  %v3009_v5 = vshrl.u32 %v7090_v45, %v3008_v44  ;;  %vm3027_vm4 = vcmp.lt.s32.totalorder %v4731_v41, 3 }
  0x24   : > { %331 = vperm.xlu1 %4599, %v292_v34   ;;  %v3012_v1 = vor.u32 %v3011_v57, %v3010_v46  ;;  %v3015_v2 = vor.u32 %v3014_v58, %v3013_v48  ;;  %v3018_v3 = vor.u32 %v3017_v59, %v3016_v50  ;;  %v3021_v6 = vor.u32 %v3020_v61, %v3019_v52 }
  0x25   : > { %326 = vperm.xlu0 %4598, %v291_v37   ;;  %v3024_v7 = vor.u32 %v3023_v63, %v3022_v54  ;;  %vm3026_vm5 = vcmp.lt.s32.totalorder %v4731_v41, 2  ;;  %v3318_v17 = vshll.u32 %v7090_v45, %v4736_v43  ;;  %v3321_v19 = vshll.u32 %v7086_v47, %v4736_v43 }
  0x26   : > { %v3033_v8 = vsel %vm3025_vm2, %v3012_v1, %v3015_v2  ;;  %v3037_v10 = vsel %vm3025_vm2, %v3015_v2, %v3018_v3  ;;  %v3034_v13 = vsel %vm3028_vm3, %v3021_v6, 920167782  ;;  %v3030_v20 = vsel %vm3028_vm3, %v3018_v3, 2102212464 }
  0x27   : > { %v3038_v14 = vsel %vm3028_vm3, %v3024_v7, 1326507024  ;;  %v3035_v21 = vsel %vm3027_vm4, %v3018_v3, %v3034_v13  ;;  %v3319_v23 = vshrl.u32 %v7086_v47, %v4756_v4  ;;  %v3029_v24 = vsel %vm3025_vm2, %v3009_v5, %v3012_v1 }
  0x28   : > { %v3039_v22 = vsel %vm3027_vm4, %v3021_v6, %v3038_v14  ;;  %v3036_v25 = vsel %vm3026_vm5, %v3033_v8, %v3035_v21  ;;  %v3322_v27 = vshrl.u32 %v7082_v49, %v4756_v4  ;;  %v3031_v33 = vsel %vm3027_vm4, %v3015_v2, %v3030_v20 }
  0x29   : > { %v3040_v26 = vsel %vm3026_vm5, %v3037_v10, %v3039_v22  ;;  %v3066_v30 = vand.u32 65535, %v3036_v25  ;;  %v3067_v31 = vshrl.u32 %v3036_v25, 16  ;;  %v4793_v34 = vor.u32 %v3319_v23, %v3318_v17 }
  0x2a   : > { %v3044_v28 = vand.u32 65535, %v3040_v26  ;;  %v3045_v29 = vshrl.u32 %v3040_v26, 16  ;;  %v4795_v35 = vor.u32 %v3322_v27, %v3321_v19  ;;  %v3324_v36 = vshll.u32 %v7082_v49, %v4736_v43 }
  0x2b   : > { %v3325_v40 = vshrl.u32 %v7080_v51, %v4756_v4  ;;  %v3068_v46 = vmul.u32 %v3066_v30, %v4734_v42  ;;  %v3069_v48 = vmul.u32 %v3067_v31, %v4734_v42  ;;  %v3070_v50 = vmul.u32 %v3066_v30, %v3043_v55 }
  0x2c   : > { %v3046_v37 = vmul.u32 %v3044_v28, %v4734_v42  ;;  %v3047_v38 = vmul.u32 %v3045_v29, %v4734_v42  ;;  %v3048_v39 = vmul.u32 %v3044_v28, %v3043_v55  ;;  %v3049_v44 = vmul.u32 %v3045_v29, %v3043_v55 }
  0x2d   : > { %v3071_v58 = vmul.u32 %v3067_v31, %v3043_v55  ;;  %v3072_v61 = vshll.u32 %v3069_v48, 16  ;;  %v3073_v63 = vshrl.u32 %v3069_v48, 16  ;;  %v3074_v1 = vshll.u32 %v3070_v50, 16 }
  0x2e   : > { %v3050_v52 = vshll.u32 %v3047_v38, 16  ;;  %v3051_v54 = vshrl.u32 %v3047_v38, 16  ;;  %v3052_v57 = vshll.u32 %v3048_v39, 16  ;;  %v3053_v59 = vshrl.u32 %v3048_v39, 16 }
  0x2f   : > { %v3075_v3 = vshrl.u32 %v3070_v50, 16  ;;  %v3327_v5 = vshll.u32 %v7080_v51, %v4736_v43  ;;  %vm3076_vm7 = vc.u32 %v3068_v46, %v3072_v61  ;;  %v3078_v7 = vadd.s32 %v3072_v61, %v3068_v46 }
  0x30   : > { %vm3054_vm6 = vc.u32 %v3046_v37, %v3050_v52  ;;  %v3056_v2 = vadd.s32 %v3050_v52, %v3046_v37  ;;  %v3328_v42 = vshrl.u32 %v7084_v53, %v4756_v4  ;;  %v3077_v55 = vsel %vm3076_vm7, 1, %v7088_v0 }
  0x31   : > { %v3055_v6 = vsel %vm3054_vm6, 1, %v7088_v0  ;;  %v3330_v10 = vshll.u32 %v7084_v53, %v4736_v43  ;;  %v3079_v14 = vadd.s32 %v3077_v55, %v3071_v58  ;;  %vm3080_vm9 = vc.u32 %v3078_v7, %v3074_v1 }
  0x32   : > { %v3057_v8 = vadd.s32 %v3055_v6, %v3049_v44  ;;  %vm3058_vm8 = vc.u32 %v3056_v2, %v3052_v57  ;;  %v3326_v17 = vor.u32 %v3325_v40, %v3324_v36  ;;  %v3081_v20 = vsel %vm3080_vm9, 1, %v7088_v0 }
  0x33   : > { %v3059_v13 = vsel %vm3058_vm8, 1, %v7088_v0  ;;  %v3329_v21 = vor.u32 %v3328_v42, %v3327_v5  ;;  %v3331_v22 = vshrl.u32 %v7078_v62, %v4756_v4  ;;  %v4817_v23 = vadd.s32 %v3078_v7, %v3074_v1 }
  0x34   : > { %v3061_v19 = vadd.s32 %v3059_v13, %v3057_v8  ;;  %v3083_v25 = vadd.s32 %v3081_v20, %v3079_v14  ;;  %vm3333_vm10 = vcmp.lt.s32.totalorder %v4765_v11, 1  ;;  %vm3335_vm11 = vcmp.lt.s32.totalorder %v4765_v11, 3 }
  0x35   : > { %v3332_v26 = vor.u32 %v3331_v22, %v3330_v10  ;;  %vm3334_vm12 = vcmp.lt.s32.totalorder %v4765_v11, 2  ;;  %vm3336_vm13 = vcmp.lt.s32.totalorder %v4765_v11, 4  ;;  %v3032_v27 = vsel %vm3026_vm5, %v3029_v24, %v3031_v33 }
  0x36   : > { %v3062_v43 = vadd.s32 %v3061_v19, %v3051_v54  ;;  %v3084_v28 = vadd.s32 %v3083_v25, %v3073_v63  ;;  %v3341_v29 = vsel %vm3333_vm10, %v4793_v34, %v4795_v35  ;;  %v3342_v30 = vsel %vm3336_vm13, %v3329_v21, 920167782 }
  0x37   : > { %v3343_v36 = vsel %vm3335_vm11, %v3326_v17, %v3342_v30  ;;  %v3345_v37 = vsel %vm3333_vm10, %v4795_v35, %v3326_v17  ;;  %v3350_v41 = vand.u32 65535, %v4744_v56  ;;  %v3346_v38 = vsel %vm3336_vm13, %v3332_v26, 1326507024 }
  0x38   : > { %v4831_v31 = vadd.s32 %v3062_v43, %v3053_v59  ;;  %v3085_v24 = vadd.s32 %v3084_v28, %v3075_v3  ;;  %v3344_v33 = vsel %vm3334_vm12, %v3341_v29, %v3343_v36  ;;  %v3351_v39 = vshrl.u32 %v4744_v56, 16 }
  0x39   : > { %v3086_v40 = vmul.u32 %v4729_v32, %v3032_v27  ;;  %v3347_v44 = vsel %vm3335_vm11, %v3329_v21, %v3346_v38  ;;  %v3374_v46 = vand.u32 65535, %v3344_v33  ;;  %v3375_v52 = vshrl.u32 %v3344_v33, 16 }
  0x3a   : > { %vm3088_vm14 = vc.u32 %v4831_v31, %v4817_v23  ;;  %v3089_v48 = vadd.s32 1, %v3085_v24  ;;  %v3348_v50 = vsel %vm3334_vm12, %v3345_v37, %v3347_v44  ;;  %v3317_v54 = vshrl.u32 %v7090_v45, %v4756_v4 }
  0x3b   : > { %v3352_v57 = vand.u32 65535, %v3348_v50  ;;  %v3353_v58 = vshrl.u32 %v3348_v50, 16  ;;  %v3338_v59 = vsel %vm3336_vm13, %v3326_v17, 2102212464  ;;  %v3377_v61 = vmul.u32 %v3375_v52, %v3350_v41 }
  0x3c   : > { %v3090_v32 = vsel %vm3088_vm14, %v3089_v48, %v3085_v24  ;;  %v3378_v63 = vmul.u32 %v3374_v46, %v3351_v39  ;;  %v3376_v5 = vmul.u32 %v3374_v46, %v3350_v41  ;;  %v3159_v42 = vsel %vm3158_vm15, %v4749_v60, 0 }
  0x3d   : > { %v3091_v1 = vadd.s32 %v3090_v32, %v3086_v40  ;;  %v3354_v2 = vmul.u32 %v3352_v57, %v3350_v41  ;;  %v3355_v3 = vmul.u32 %v3353_v58, %v3350_v41  ;;  %v3356_v6 = vmul.u32 %v3352_v57, %v3351_v39 }
  0x3e   : > { %v3380_v7 = vshll.u32 %v3377_v61, 16  ;;  %v3357_v4 = vmul.u32 %v3353_v58, %v3351_v39  ;;  %v3379_v10 = vmul.u32 %v3375_v52, %v3351_v39  ;;  %v3337_v13 = vsel %vm3333_vm10, %v3317_v54, %v4793_v34 }
  0x3f   : > { %v3092_v8 = vadd.s32 536870912, %v3091_v1  ;;  %v3358_v55 = vshll.u32 %v3355_v3, 16  ;;  %v3339_v14 = vsel %vm3335_vm11, %v4795_v35, %v3338_v59  ;;  %v3360_v17 = vshll.u32 %v3356_v6, 16 }
  0x40   : > { %v3382_v19 = vshll.u32 %v3378_v63, 16  ;;  %vm3384_vm1 = vc.u32 %v3376_v5, %v3380_v7  ;;  %v3359_v60 = vshrl.u32 %v3355_v3, 16  ;;  %v3386_v43 = vadd.s32 %v3380_v7, %v3376_v5 }
  0x41   : > { %v4863_v20 = vshrl.u32 %v3092_v8, 30  ;;  %vm3362_vm0 = vc.u32 %v3354_v2, %v3358_v55  ;;  %v3364_v21 = vadd.s32 %v3358_v55, %v3354_v2  ;;  %v3385_v25 = vsel %vm3384_vm1, 1, %v7088_v0 }
  0x42   : > { %v3363_v22 = vsel %vm3362_vm0, 1, %v7088_v0  ;;  %v3387_v27 = vadd.s32 %v3385_v25, %v3379_v10  ;;  %v3361_v28 = vshrl.u32 %v3356_v6, 16  ;;  %v3381_v29 = vshrl.u32 %v3377_v61, 16 }
  0x43   : > { %v3094_v26 = vshll.u32 %v4863_v20, 30  ;;  %v3365_v34 = vadd.s32 %v3363_v22, %v3357_v4  ;;  %vm3366_vm2 = vc.u32 %v3364_v21, %v3360_v17  ;;  %vm3388_vm3 = vc.u32 %v3386_v43, %v3382_v19 }
  0x44   : > { %v3367_v35 = vsel %vm3366_vm2, 1, %v7088_v0  ;;  %v3389_v37 = vsel %vm3388_vm3, 1, %v7088_v0  ;;  %v3161_v41 = vand.u32 31, %v3159_v42  ;;  %v3383_v24 = vshrl.u32 %v3378_v63, 16 }
  0x45   : > { %v3095_v30 = vsub.s32 %v3091_v1, %v3094_v26  ;;  %v3369_v36 = vadd.s32 %v3367_v35, %v3365_v34  ;;  %v3391_v33 = vadd.s32 %v3389_v37, %v3387_v27  ;;  %v4870_v40 = vadd.s32 %v3386_v43, %v3382_v19 }
  0x46   : > { %v3340_v44 = vsel %vm3334_vm12, %v3337_v13, %v3339_v14  ;;  %v4876_v52 = vsub.s32 32, %v3161_v41  ;;  %v3147_v58 = vand.u32 2147483647, %v4718_v16  ;;  %v3087_v32 = vadd.s32 %v4817_v23, %v4831_v31 }
  0x47   : > { %vm3096_vm4 = vcmp.lt.s32.totalorder %v3095_v30, 0  ;;  %v3097_v38 = vsub.s32 0, %v3095_v30  ;;  %v3370_v39 = vadd.s32 %v3369_v36, %v3359_v60  ;;  %v3392_v46 = vadd.s32 %v3391_v33, %v3381_v29 }
  0x48   : > { %v3394_v59 = vmul.u32 %v4744_v56, %v3340_v44  ;;  %v4884_v11 = vshrl.u32 %v3159_v42, 5  ;;  %v3164_v1 = vshll.u32 %v7090_v45, %v3161_v41  ;;  %v3167_v2 = vshll.u32 %v7086_v47, %v3161_v41 }
  0x49   : > { %v3098_v48 = vsel %vm3096_vm4, %v3097_v38, %v3095_v30  ;;  %v4874_v50 = vadd.s32 %v3370_v39, %v3361_v28  ;;  %v3393_v57 = vadd.s32 %v3392_v46, %v3383_v24  ;;  %v3165_v3 = vshrl.u32 %v7086_v47, %v4876_v52 }
  0x4a   : > { %v3099_v54 = vclz %v3098_v48  ;;  %v3168_v5 = vshrl.u32 %v7082_v49, %v4876_v52  ;;  %v3173_v23 = vshll.u32 %v7080_v51, %v3161_v41  ;;  %v3174_v56 = vshrl.u32 %v7084_v53, %v4876_v52 }
  0x4b   : > { %vm3396_vm5 = vc.u32 %v4874_v50, %v4870_v40  ;;  %v3397_v63 = vadd.s32 1, %v3393_v57  ;;  %v3170_v6 = vshll.u32 %v7082_v49, %v3161_v41  ;;  %v3171_v7 = vshrl.u32 %v7080_v51, %v4876_v52 }
  0x4c   : > { %v4550_v61 = vadd.s32 4294967294, %v3099_v54  ;;  %v3176_v4 = vshll.u32 %v7084_v53, %v3161_v41  ;;  %v3177_v55 = vshrl.u32 %v7078_v62, %v4876_v52  ;;  %v3154_v17 = vand.u32 8388607, %v3147_v58 }
  0x4d   : > { %v3398_v31 = vsel %vm3396_vm5, %v3397_v63, %v3393_v57  ;;  %v4903_v21 = vor.u32 %v3165_v3, %v3164_v1  ;;  %v4905_v60 = vor.u32 %v3168_v5, %v3167_v2  ;;  %v3175_v22 = vor.u32 %v3174_v56, %v3173_v23 }
  0x4e   : > { %vm4551_vm6 = vcmp.lt.s32.totalorder %v4550_v61, 0  ;;  %v3399_v8 = vadd.s32 %v3398_v31, %v3394_v59  ;;  %v4907_v26 = vor.u32 %v3171_v7, %v3170_v6  ;;  %vm3179_vm7 = vcmp.lt.s32.totalorder %v4884_v11, 1 }
  0x4f   : > { %v3102_v42 = vsel %vm4551_vm6, 0, %v4550_v61  ;;  %v3178_v27 = vor.u32 %v3177_v55, %v3176_v4  ;;  %vm3181_vm8 = vcmp.lt.s32.totalorder %v4884_v11, 3  ;;  %vm3182_vm9 = vcmp.lt.s32.totalorder %v4884_v11, 4 }
  0x50   : > { %v3103_v10 = vsub.s32 32, %v3102_v42  ;;  %v3104_v13 = vshll.u32 %v3095_v30, %v3102_v42  ;;  %v3107_v14 = vsub.s32 4294967266, %v3102_v42  ;;  %v3400_v19 = vadd.s32 536870912, %v3399_v8 }
  0x51   : > { %v3117_v29 = vsub.s32 4, %v4863_v20  ;;  %v3155_v30 = vor.u32 8388608, %v3154_v17  ;;  %vm3180_vm10 = vcmp.lt.s32.totalorder %v4884_v11, 2  ;;  %v3187_v37 = vsel %vm3179_vm7, %v4903_v21, %v4905_v60 }
  0x52   : > { %v3105_v25 = vshrl.u32 %v3087_v32, %v3103_v10  ;;  %v3108_v43 = vadd.s32 127, %v3107_v14  ;;  %v4910_v34 = vshrl.u32 %v3400_v19, 30  ;;  %v3188_v41 = vsel %vm3182_vm9, %v3175_v22, 920167782 }
  0x53   : > { %v3189_v38 = vsel %vm3181_vm8, %v4907_v26, %v3188_v41  ;;  %v3191_v39 = vsel %vm3179_vm7, %v4905_v60, %v4907_v26  ;;  %vm2995_vm11 = vcmp.lt.s32.totalorder %v4709_v9, 0  ;;  %v3192_v46 = vsel %vm3182_vm9, %v3178_v27, 1326507024 }
  0x54   : > { %v3106_v28 = vor.u32 %v3105_v25, %v3104_v13  ;;  %v3109_v35 = vshll.u32 %v3108_v43, 23  ;;  %v3402_v36 = vshll.u32 %v4910_v34, 30  ;;  %v3118_v54 = vsel %vm2995_vm11, %v3117_v29, %v4863_v20 }
  0x55   : > { %v3193_v57 = vsel %vm3181_vm8, %v3175_v22, %v3192_v46  ;;  %v4938_v32 = vshll.u32 %v3155_v30, 8  ;;  %v3190_v61 = vsel %vm3180_vm10, %v3187_v37, %v3189_v38  ;;  %vm2994_vm13 = vcmp.le.f32.partialorder %v2993_v12, 0.7853982 }
  0x56   : > { %v3110_v24 = vor.u32 4788187, %v3109_v35  ;;  %v3113_v33 = vcvt.s32.f32 %v3106_v28  ;;  %v3403_v44 = vsub.s32 %v3399_v8, %v3402_v36  ;;  %v3194_v63 = vsel %vm3180_vm10, %v3191_v39, %v3193_v57 }
  0x57   : > { %v3196_v2 = vand.u32 65535, %v4938_v32  ;;  %v3197_v3 = vshrl.u32 %v4938_v32, 16  ;;  %v3198_v5 = vand.u32 65535, %v3194_v63  ;;  %v3199_v23 = vshrl.u32 %v3194_v63, 16 }
  0x58   : > { %v3111_v48 = vand.u32 2147483647, %v3110_v24  ;;  %vm3404_vm12 = vcmp.lt.s32.totalorder %v3403_v44, 0  ;;  %v3405_v59 = vsub.s32 0, %v3403_v44  ;;  %v3120_v31 = vsel %vm2994_vm13, 0, %v3118_v54 }
  0x59   : > { %v3221_v7 = vshrl.u32 %v3190_v61, 16  ;;  %v3200_v42 = vmul.u32 %v3198_v5, %v3196_v2  ;;  %v3201_v8 = vmul.u32 %v3199_v23, %v3196_v2  ;;  %v4948_v4 = vmul.u32 %v3198_v5, %v3197_v3 }
  0x5a   : > { %v3114_v1 = vmul.f32 %v3113_v33, %v3111_v48  ;;  %v3406_v20 = vsel %vm3404_vm12, %v3405_v59, %v3403_v44  ;;  %v3395_v10 = vadd.s32 %v4870_v40, %v4874_v50  ;;  %v4957_v14 = vand.u32 3, %v3120_v31 }
  0x5b   : > { %v3407_v6 = vclz %v3406_v20  ;;  %v3204_v17 = vshll.u32 %v3201_v8, 16  ;;  %v3220_v19 = vand.u32 65535, %v3190_v61  ;;  %v3203_v25 = vmul.u32 %v3199_v23, %v3197_v3 }
  0x5c   : > { %v3115_v56 = vxor.u32 2147483648, %v3114_v1  ;;  %v4961_v43 = vmul.u32 %v3221_v7, %v3196_v2  ;;  %v3206_v28 = vshll.u32 %v4948_v4, 16  ;;  %v3163_v37 = vshrl.u32 %v7090_v45, %v4876_v52 }
  0x5d   : > { %v4556_v13 = vadd.s32 4294967294, %v3407_v6  ;;  %vm3208_vm15 = vc.u32 %v3200_v42, %v3204_v17  ;;  %v3210_v40 = vadd.s32 %v3204_v17, %v3200_v42  ;;  %v4967_v24 = vmul.u32 %v3220_v19, %v3197_v3 }
  0x5e   : > { %v3116_v55 = vsel %vm2995_vm11, %v3115_v56, %v3114_v1  ;;  %v3209_v41 = vsel %vm3208_vm15, 1, %v7088_v0  ;;  %vm3142_vm0 = vcmp.eq.s32.totalorder %v4957_v14, 2  ;;  %v3222_v54 = vmul.u32 %v3220_v19, %v3196_v2 }
  0x5f   : > { %v4955_v12 = vsel %vm2994_vm13, %v4709_v9, %v3116_v55  ;;  %vm4557_vm14 = vcmp.lt.s32.totalorder %v4556_v13, 0  ;;  %v3211_v46 = vadd.s32 %v3209_v41, %v3203_v25  ;;  %v3225_v57 = vmul.u32 %v3221_v7, %v3197_v3 }
  0x60   : > { %v3121_v22 = vmul.f32 %v4955_v12, %v4955_v12  ;;  %v3410_v27 = vsel %vm4557_vm14, 0, %v4556_v13  ;;  %v3226_v59 = vshll.u32 %v4961_v43, 16  ;;  %vm3303_vm1 = vcmp.lt.s32.totalorder %v4715_v15, 0 }
  0x61   : > { %v3411_v29 = vsub.s32 32, %v3410_v27  ;;  %v3412_v30 = vshll.u32 %v3403_v44, %v3410_v27  ;;  %v3415_v36 = vsub.s32 4294967266, %v3410_v27  ;;  %vm3212_vm2 = vc.u32 %v3210_v40, %v3206_v28 }
  0x62   : > { %v3122_v50 = vmul.f32 -0.001358992, %v3121_v22  ;;  %v3129_v35 = vmul.f32 -0.00019511016, %v3121_v22  ;;  %vm3139_vm3 = vcmp.eq.s32.totalorder %v4957_v14, 0  ;;  %v3205_v20 = vshrl.u32 %v3201_v8, 16 }
  0x63   : > { %v3413_v39 = vshrl.u32 %v3395_v10, %v3411_v29  ;;  %v3416_v48 = vadd.s32 127, %v3415_v36  ;;  %vm4975_vm4 = vcmp.le.f32.partialorder %v3301_v18, 0.7853982  ;;  %v3213_v2 = vsel %vm3212_vm2, 1, %v7088_v0 }
  0x64   : > { %v3123_v33 = vadd.f32 0.041655596, %v3122_v50  ;;  %v3130_v38 = vadd.f32 0.008332121, %v3129_v35  ;;  %v3228_v3 = vshll.u32 %v4967_v24, 16  ;;  %v3215_v31 = vadd.s32 %v3213_v2, %v3211_v46  ;;  %v4996_v35 = vld [vmem:[%s4704_s30 + $0x18] sm:$0xff] }
  0x65   : > { %v3414_v52 = vor.u32 %v3413_v39, %v3412_v30  ;;  %v3417_v1 = vshll.u32 %v3416_v48, 23  ;;  %v3184_v56 = vsel %vm3182_vm9, %v4907_v26, 2102212464  ;;  %vm3230_vm5 = vc.u32 %v3222_v54, %v3226_v59 }
  0x66   : > { %v3124_v44 = vmul.f32 %v3123_v33, %v3121_v22  ;;  %v3131_v61 = vmul.f32 %v3130_v38, %v3121_v22  ;;  %v3232_v18 = vadd.s32 %v3226_v59, %v3222_v54  ;;  %v3207_v8 = vshrl.u32 %v4948_v4, 16 }
  0x67   : > { %v3418_v6 = vor.u32 4788187, %v3417_v1  ;;  %v3421_v7 = vcvt.s32.f32 %v3414_v52  ;;  %v3231_v10 = vsel %vm3230_vm5, 1, %v7088_v0  ;;  %v3216_v17 = vadd.s32 %v3215_v31, %v3205_v20 }
  0x68   : > { %v3125_v5 = vadd.f32 -0.4999988, %v3124_v44  ;;  %v3132_v23 = vadd.f32 -0.16666654, %v3131_v61  ;;  %v3233_v19 = vadd.s32 %v3231_v10, %v3225_v57  ;;  %vm3234_vm6 = vc.u32 %v3232_v18, %v3228_v3 }
  0x69   : > { %v3419_v13 = vand.u32 2147483647, %v3418_v6  ;;  %v3227_v26 = vshrl.u32 %v4961_v43, 16  ;;  %v3235_v28 = vsel %vm3234_vm6, 1, %v7088_v0  ;;  %v3425_v50 = vsub.s32 4, %v4910_v34 }
  0x6a   : > { %v3126_v42 = vmul.f32 %v3125_v5, %v3121_v22  ;;  %v3133_v55 = vmul.f32 %v3132_v23, %v3121_v22  ;;  %v3183_v22 = vsel %vm3179_vm7, %v3163_v37, %v4903_v21  ;;  %v3185_v4 = vsel %vm3181_vm8, %v4905_v60, %v3184_v56 }
  0x6b   : > { %v3422_v40 = vmul.f32 %v3421_v7, %v3419_v13  ;;  %v3229_v43 = vshrl.u32 %v4967_v24, 16  ;;  %v3237_v36 = vadd.s32 %v3235_v28, %v3233_v19  ;;  %vm3138_vm9 = vcmp.lt.s32.totalorder %v4957_v14, 2 }
  0x6c   : > { %v3127_v25 = vadd.f32 1.0, %v3126_v42  ;;  %v3134_v27 = vadd.f32 1.0, %v3133_v55  ;;  %v5001_v33 = vadd.s32 %v3216_v17, %v3207_v8  ;;  %v5003_v38 = vadd.s32 %v3232_v18, %v3228_v3 }
  0x6d   : > { %v3423_v41 = vxor.u32 2147483648, %v3422_v40  ;;  %v3238_v60 = vadd.s32 %v3237_v36, %v3227_v26  ;;  %v3458_v39 = vand.u32 2139095040, %v4996_v35  ;;  %vm3136_vm7 = vweird.f32 %v4709_v9 }
  0x6e   : > { %v3135_v29 = vmul.f32 %v3134_v27, %v4955_v12  ;;  %v3143_v30 = vxor.u32 2147483648, %v3127_v25  ;;  %v3426_v24 = vsel %vm3303_vm1, %v3425_v50, %v4910_v34  ;;  %v3186_v46 = vsel %vm3180_vm10, %v3183_v22, %v3185_v4 }
  0x6f   : > { %v3424_v12 = vsel %vm3303_vm1, %v3423_v41, %v3422_v40  ;;  %v3239_v57 = vadd.s32 %v3238_v60, %v3229_v43  ;;  %v3459_v59 = vshrl.u32 %v3458_v39, 23  ;;  %vm3242_vm8 = vc.u32 %v5001_v33, %v5003_v38 }
  0x70   : > { %v3140_v21 = vxor.u32 2147483648, %v3135_v29  ;;  %v3144_v37 = vsel %vm3142_vm0, %v3143_v30, %v3135_v29  ;;  %v3427_v54 = vsel %vm4975_vm4, %v4715_v15, %v3424_v12  ;;  %v3240_v11 = vmul.u32 %v4938_v32, %v3186_v46 }
  0x71   : > { %v3429_v44 = vmul.f32 %v3427_v54, %v3427_v54  ;;  %v3243_v61 = vadd.s32 1, %v3239_v57  ;;  %v4558_v52 = vadd.s32 4294967169, %v3459_v59  ;;  %v3428_v1 = vsel %vm4975_vm4, 0, %v3426_v24 }
  0x72   : > { %v3141_v48 = vsel %vm3139_vm3, %v3127_v25, %v3140_v21  ;;  %v3445_v56 = vand.u32 3, %v3428_v1  ;;  %v3455_v7 = vand.u32 2147483647, %v4996_v35  ;;  %vm3444_vm12 = vweird.f32 %v4715_v15 }
  0x73   : > { %v3145_v9 = vsel %vm3138_vm9, %v3141_v48, %v3144_v37  ;;  %v3430_v20 = vmul.f32 -0.001358992, %v3429_v44  ;;  %v3437_v2 = vmul.f32 -0.00019511016, %v3429_v44  ;;  %v3244_v3 = vsel %vm3242_vm8, %v3243_v61, %v3239_v57 }
  0x74   : > { %v5025_v34 = vsel %vm3136_vm7, nan, %v3145_v9  ;;  %v3465_v14 = vadd.s32 1, %v4558_v52  ;;  %v3245_v31 = vadd.s32 %v3244_v3, %v3240_v11  ;;  %vm3446_vm11 = vcmp.lt.s32.totalorder %v3445_v56, 2  ;;  %v5060_v9 = vld [vmem:[%s4704_s30 + $0x28] sm:$0xff] }
  0x75   : > { %4291 = vperm.xlu2 %4600, %v5025_v34   ;;  %v3431_v5 = vadd.f32 0.041655596, %v3430_v20  ;;  %v3438_v23 = vadd.f32 0.008332121, %v3437_v2  ;;  %v3462_v19 = vand.u32 8388607, %v3455_v7 }
  0x76   : > { %vm3466_vm10 = vcmp.gt.s32.totalorder %v3465_v14, 0  ;;  %v3246_v42 = vadd.s32 536870912, %v3245_v31  ;;  %vm3447_vm13 = vcmp.eq.s32.totalorder %v3445_v56, 0  ;;  %vm3450_vm14 = vcmp.eq.s32.totalorder %v3445_v56, 2 }
  0x77   : > { %v3432_v6 = vmul.f32 %v3431_v5, %v3429_v44  ;;  %v3467_v32 = vsel %vm3466_vm10, %v3465_v14, 0  ;;  %v3439_v18 = vmul.f32 %v3438_v23, %v3429_v44  ;;  %v3463_v37 = vor.u32 8388608, %v3462_v19 }
  0x78   : > { %v3469_v55 = vand.u32 31, %v3467_v32  ;;  %v5032_v63 = vshrl.u32 %v3246_v42, 30  ;;  %v5052_v60 = vshrl.u32 %v3467_v32, 5  ;;  %v3766_v2 = vand.u32 2139095040, %v5060_v9 }
  0x79   : > { %v3433_v8 = vadd.f32 -0.4999988, %v3432_v6  ;;  %v3440_v10 = vadd.f32 -0.16666654, %v3439_v18  ;;  %v5068_v20 = vshll.u32 %v3463_v37, 8  ;;  %v3241_v32 = vadd.s32 %v5003_v38, %v5001_v33 }
  0x7a   : > { %v5034_v13 = vsub.s32 32, %v3469_v55  ;;  %v3472_v25 = vshll.u32 %v7090_v45, %v3469_v55  ;;  %v3475_v27 = vshll.u32 %v7086_v47, %v3469_v55  ;;  %v3248_v28 = vshll.u32 %v5032_v63, 30 }
  0x7b   : > { %v3434_v17 = vmul.f32 %v3433_v8, %v3429_v44  ;;  %v3441_v26 = vmul.f32 %v3440_v10, %v3429_v44  ;;  %v3478_v40 = vshll.u32 %v7082_v49, %v3469_v55  ;;  %v3481_v50 = vshll.u32 %v7080_v51, %v3469_v55 }
  0x7c   : > { %v3473_v4 = vshrl.u32 %v7086_v47, %v5034_v13  ;;  %v3476_v29 = vshrl.u32 %v7082_v49, %v5034_v13  ;;  %v3479_v30 = vshrl.u32 %v7080_v51, %v5034_v13  ;;  %v3249_v36 = vsub.s32 %v3245_v31, %v3248_v28 }
  0x7d   : > { %v3435_v22 = vadd.f32 1.0, %v3434_v17  ;;  %v3442_v43 = vadd.f32 1.0, %v3441_v26  ;;  %v3482_v41 = vshrl.u32 %v7084_v53, %v5034_v13  ;;  %v3484_v59 = vshll.u32 %v7084_v53, %v3469_v55 }
  0x7e   : > { %vm3250_vm15 = vcmp.lt.s32.totalorder %v3249_v36, 0  ;;  %v3251_v12 = vsub.s32 0, %v3249_v36  ;;  %v5054_v24 = vor.u32 %v3473_v4, %v3472_v25  ;;  %v5056_v46 = vor.u32 %v3476_v29, %v3475_v27 }
  0x7f   : > { %v3451_v21 = vxor.u32 2147483648, %v3435_v22  ;;  %v3443_v39 = vmul.f32 %v3442_v43, %v3427_v54  ;;  %v3480_v48 = vor.u32 %v3479_v30, %v3478_v40  ;;  %v3483_v57 = vor.u32 %v3482_v41, %v3481_v50 }
  0x80   : > { %v3252_v61 = vsel %vm3250_vm15, %v3251_v12, %v3249_v36  ;;  %v3485_v52 = vshrl.u32 %v7078_v62, %v5034_v13  ;;  %vm3487_vm0 = vcmp.lt.s32.totalorder %v5052_v60, 1  ;;  %vm3489_vm1 = vcmp.lt.s32.totalorder %v5052_v60, 3 }
  0x81   : > { %v3448_v44 = vxor.u32 2147483648, %v3443_v39  ;;  %v3452_v11 = vsel %vm3450_vm14, %v3451_v21, %v3443_v39  ;;  %v3253_v1 = vclz %v3252_v61  ;;  %vm3490_vm2 = vcmp.lt.s32.totalorder %v5052_v60, 4 }
  0x82   : > { %vm3488_vm3 = vcmp.lt.s32.totalorder %v5052_v60, 2  ;;  %v3496_v5 = vsel %vm3490_vm2, %v3483_v57, 920167782  ;;  %v3486_v31 = vor.u32 %v3485_v52, %v3484_v59  ;;  %v3495_v6 = vsel %vm3487_vm0, %v5054_v24, %v5056_v46 }
  0x83   : > { %v3449_v54 = vsel %vm3447_vm13, %v3435_v22, %v3448_v44  ;;  %v4553_v14 = vadd.s32 4294967294, %v3253_v1  ;;  %v3497_v56 = vsel %vm3489_vm1, %v3480_v48, %v3496_v5  ;;  %vm3149_vm5 = vcmp.lt.s32.totalorder %v4718_v16, 0 }
  0x84   : > { %v3453_v3 = vsel %vm3446_vm11, %v3449_v54, %v3452_v11  ;;  %v3499_v18 = vsel %vm3487_vm0, %v5056_v46, %v3480_v48  ;;  %v3498_v10 = vsel %vm3488_vm3, %v3495_v6, %v3497_v56  ;;  %v3500_v17 = vsel %vm3490_vm2, %v3486_v31, 1326507024 }
  0x85   : > { %v5077_v23 = vsel %vm3444_vm12, nan, %v3453_v3  ;;  %vm4554_vm4 = vcmp.lt.s32.totalorder %v4553_v14, 0  ;;  %v3504_v19 = vand.u32 65535, %v5068_v20  ;;  %v3505_v33 = vshrl.u32 %v5068_v20, 16 }
  0x86   : > { %4301 = vperm.xlu1 %4599, %v5077_v23   ;;  %v3256_v15 = vsel %vm4554_vm4, 0, %v4553_v14  ;;  %v3767_v38 = vshrl.u32 %v3766_v2, 23  ;;  %v3501_v26 = vsel %vm3489_vm1, %v3483_v57, %v3500_v17  ;;  %v3528_v28 = vand.u32 65535, %v3498_v10 }
  0x87   : > { %v3257_v42 = vsub.s32 32, %v3256_v15  ;;  %v3258_v55 = vshll.u32 %v3249_v36, %v3256_v15  ;;  %v3261_v8 = vsub.s32 4294967266, %v3256_v15  ;;  %v3271_v40 = vsub.s32 4, %v5032_v63 }
  0x88   : > { %v3502_v50 = vsel %vm3488_vm3, %v3499_v18, %v3501_v26  ;;  %v3529_v22 = vshrl.u32 %v3498_v10, 16  ;;  %v3763_v4 = vand.u32 2147483647, %v5060_v9  ;;  %vm5106_vm6 = vcmp.le.f32.partialorder %v3147_v58, 0.7853982 }
  0x89   : > { %v3259_v25 = vshrl.u32 %v3241_v32, %v3257_v42  ;;  %v3262_v27 = vadd.s32 127, %v3261_v8  ;;  %v3506_v36 = vand.u32 65535, %v3502_v50  ;;  %v3507_v41 = vshrl.u32 %v3502_v50, 16 }
  0x8a   : > { %v3471_v21 = vshrl.u32 %v7090_v45, %v5034_v13  ;;  %v3531_v37 = vmul.u32 %v3529_v22, %v3504_v19  ;;  %v3532_v39 = vmul.u32 %v3528_v28, %v3505_v33  ;;  %v4564_v12 = vadd.s32 4294967169, %v3767_v38 }
  0x8b   : > { %v3260_v30 = vor.u32 %v3259_v25, %v3258_v55  ;;  %v3263_v43 = vshll.u32 %v3262_v27, 23  ;;  %v3508_v44 = vmul.u32 %v3506_v36, %v3504_v19  ;;  %v3509_v11 = vmul.u32 %v3507_v41, %v3504_v19  ;;  %v5130_v25 = vld [vmem:[%s4704_s30 + $0x8] sm:$0xff] }
  0x8c   : > { %v3492_v58 = vsel %vm3490_vm2, %v3480_v48, 2102212464  ;;  %v3510_v61 = vmul.u32 %v3506_v36, %v3505_v33  ;;  %v3530_v52 = vmul.u32 %v3528_v28, %v3504_v19  ;;  %v3534_v1 = vshll.u32 %v3531_v37, 16 }
  0x8d   : > { %v3264_v57 = vor.u32 4788187, %v3263_v43  ;;  %v3267_v59 = vcvt.s32.f32 %v3260_v30  ;;  %v3272_v2 = vsel %vm3149_vm5, %v3271_v40, %v5032_v63  ;;  %v3511_v3 = vmul.u32 %v3507_v41, %v3505_v33 }
  0x8e   : > { %v3512_v13 = vshll.u32 %v3509_v11, 16  ;;  %v3491_v14 = vsel %vm3487_vm0, %v3471_v21, %v5054_v24  ;;  %v3514_v5 = vshll.u32 %v3510_v61, 16  ;;  %v3533_v31 = vmul.u32 %v3529_v22, %v3505_v33 }
  0x8f   : > { %v3265_v54 = vand.u32 2147483647, %v3264_v57  ;;  %v3536_v6 = vshll.u32 %v3532_v39, 16  ;;  %v3493_v48 = vsel %vm3489_vm1, %v5056_v46, %v3492_v58  ;;  %v3535_v32 = vshrl.u32 %v3531_v37, 16 }
  0x90   : > { %vm3516_vm9 = vc.u32 %v3508_v44, %v3512_v13  ;;  %v3518_v63 = vadd.s32 %v3512_v13, %v3508_v44  ;;  %vm3538_vm7 = vc.u32 %v3530_v52, %v3534_v1  ;;  %v3540_v18 = vadd.s32 %v3534_v1, %v3530_v52 }
  0x91   : > { %v3268_v56 = vmul.f32 %v3267_v59, %v3265_v54  ;;  %v3517_v15 = vsel %vm3516_vm9, 1, %v7088_v0  ;;  %v3513_v55 = vshrl.u32 %v3509_v11, 16  ;;  %v3539_v24 = vsel %vm3538_vm7, 1, %v7088_v0 }
  0x92   : > { %v3519_v8 = vadd.s32 %v3517_v15, %v3511_v3  ;;  %v3515_v10 = vshrl.u32 %v3510_v61, 16  ;;  %vm3520_vm8 = vc.u32 %v3518_v63, %v3514_v5  ;;  %v3541_v17 = vadd.s32 %v3539_v24, %v3533_v31 }
  0x93   : > { %v3269_v42 = vxor.u32 2147483648, %v3268_v56  ;;  %vm3542_vm10 = vc.u32 %v3540_v18, %v3536_v6  ;;  %v3521_v19 = vsel %vm3520_vm8, 1, %v7088_v0  ;;  %v3537_v33 = vshrl.u32 %v3532_v39, 16 }
  0x94   : > { %v3543_v38 = vsel %vm3542_vm10, 1, %v7088_v0  ;;  %v3523_v26 = vadd.s32 %v3521_v19, %v3519_v8  ;;  %v3773_v40 = vadd.s32 1, %v4564_v12  ;;  %v3274_v50 = vsel %vm5106_vm6, 0, %v3272_v2 }
  0x95   : > { %v3270_v46 = vsel %vm3149_vm5, %v3269_v42, %v3268_v56  ;;  %v3545_v28 = vadd.s32 %v3543_v38, %v3541_v17  ;;  %v3494_v16 = vsel %vm3488_vm3, %v3491_v14, %v3493_v48  ;;  %v3770_v30 = vand.u32 8388607, %v3763_v4 }
  0x96   : > { %v3273_v27 = vsel %vm5106_vm6, %v5130_v25, %v3270_v46  ;;  %v3524_v43 = vadd.s32 %v3523_v26, %v3513_v55  ;;  %v5141_v36 = vadd.s32 %v3540_v18, %v3536_v6  ;;  %vm3774_vm11 = vcmp.gt.s32.totalorder %v3773_v40, 0 }
  0x97   : > { %v3275_v22 = vmul.f32 %v3273_v27, %v3273_v27  ;;  %v3546_v41 = vadd.s32 %v3545_v28, %v3535_v32  ;;  %v3775_v39 = vsel %vm3774_vm11, %v3773_v40, 0  ;;  %v5143_v57 = vand.u32 3, %v3274_v50 }
  0x98   : > { %v5145_v12 = vadd.s32 %v3524_v43, %v3515_v10  ;;  %v3777_v59 = vand.u32 31, %v3775_v39  ;;  %v3548_v11 = vmul.u32 %v5068_v20, %v3494_v16  ;;  %v3771_v2 = vor.u32 8388608, %v3770_v30 }
  0x99   : > { %v3276_v21 = vmul.f32 -0.001358992, %v3275_v22  ;;  %v3283_v37 = vmul.f32 -0.00019511016, %v3275_v22  ;;  %v3547_v29 = vadd.s32 %v3546_v41, %v3537_v33  ;;  %vm3296_vm13 = vcmp.eq.s32.totalorder %v5143_v57, 2 }
  0x9a   : > { %vm3550_vm12 = vc.u32 %v5145_v12, %v5141_v36  ;;  %v5150_v61 = vsub.s32 32, %v3777_v59  ;;  %v5153_v3 = vshrl.u32 %v3775_v39, 5  ;;  %v3780_v31 = vshll.u32 %v7090_v45, %v3777_v59 }
  0x9b   : > { %v3277_v44 = vadd.f32 0.041655596, %v3276_v21  ;;  %v3284_v60 = vadd.f32 0.008332121, %v3283_v37  ;;  %v3551_v58 = vadd.s32 1, %v3547_v29  ;;  %vm3290_vm14 = vweird.f32 %v5130_v25 }
  0x9c   : > { %v3781_v20 = vshrl.u32 %v7086_v47, %v5150_v61  ;;  %v3783_v6 = vshll.u32 %v7086_v47, %v3777_v59  ;;  %v3784_v56 = vshrl.u32 %v7082_v49, %v5150_v61  ;;  %v3786_v48 = vshll.u32 %v7082_v49, %v3777_v59 }
  0x9d   : > { %v3278_v52 = vmul.f32 %v3277_v44, %v3275_v22  ;;  %v3285_v1 = vmul.f32 %v3284_v60, %v3275_v22  ;;  %v3552_v54 = vsel %vm3550_vm12, %v3551_v58, %v3547_v29  ;;  %v3787_v18 = vshrl.u32 %v7080_v51, %v5150_v61 }
  0x9e   : > { %v3553_v5 = vadd.s32 %v3552_v54, %v3548_v11  ;;  %v3789_v42 = vshll.u32 %v7080_v51, %v3777_v59  ;;  %v3790_v55 = vshrl.u32 %v7084_v53, %v5150_v61  ;;  %v3792_v8 = vshll.u32 %v7084_v53, %v3777_v59 }
  0x9f   : > { %v3279_v13 = vadd.f32 -0.4999988, %v3278_v52  ;;  %v3286_v14 = vadd.f32 -0.16666654, %v3285_v1  ;;  %v3793_v24 = vshrl.u32 %v7078_v62, %v5150_v61  ;;  %v5173_v19 = vshll.u32 %v3771_v2, 8  ;;  %v5207_v2 = vld [vmem:[%s4704_s30 + $0x20] sm:$0xff] }
  0xa0   : > { %v3554_v63 = vadd.s32 536870912, %v3553_v5  ;;  %v3782_v33 = vor.u32 %v3781_v20, %v3780_v31  ;;  %v3785_v38 = vor.u32 %v3784_v56, %v3783_v6  ;;  %v3788_v26 = vor.u32 %v3787_v18, %v3786_v48 }
  0xa1   : > { %v3280_v32 = vmul.f32 %v3279_v13, %v3275_v22  ;;  %v3287_v15 = vmul.f32 %v3286_v14, %v3275_v22  ;;  %v3791_v28 = vor.u32 %v3790_v55, %v3789_v42  ;;  %vm3795_vm15 = vcmp.lt.s32.totalorder %v5153_v3, 1 }
  0xa2   : > { %v5171_v46 = vshrl.u32 %v3554_v63, 30  ;;  %vm3292_vm0 = vcmp.lt.s32.totalorder %v5143_v57, 2  ;;  %vm3293_vm1 = vcmp.eq.s32.totalorder %v5143_v57, 0  ;;  %v3794_v16 = vor.u32 %v3793_v24, %v3792_v8 }
  0xa3   : > { %v3281_v10 = vadd.f32 1.0, %v3280_v32  ;;  %v3288_v17 = vadd.f32 1.0, %v3287_v15  ;;  %vm3798_vm2 = vcmp.lt.s32.totalorder %v5153_v3, 4  ;;  %vm3797_vm3 = vcmp.lt.s32.totalorder %v5153_v3, 3 }
  0xa4   : > { %v3556_v22 = vshll.u32 %v5171_v46, 30  ;;  %vm3796_vm4 = vcmp.lt.s32.totalorder %v5153_v3, 2  ;;  %v3804_v21 = vsel %vm3798_vm2, %v3791_v28, 920167782  ;;  %v3812_v37 = vand.u32 65535, %v5173_v19 }
  0xa5   : > { %v3289_v40 = vmul.f32 %v3288_v17, %v3273_v27  ;;  %v3297_v50 = vxor.u32 2147483648, %v3281_v10  ;;  %v3803_v27 = vsel %vm3795_vm15, %v3782_v33, %v3785_v38  ;;  %v3807_v59 = vsel %vm3795_vm15, %v3785_v38, %v3788_v26 }
  0xa6   : > { %v3557_v41 = vsub.s32 %v3553_v5, %v3556_v22  ;;  %v3805_v60 = vsel %vm3797_vm3, %v3788_v26, %v3804_v21  ;;  %v3808_v11 = vsel %vm3798_vm2, %v3794_v16, 1326507024  ;;  %v3813_v58 = vshrl.u32 %v5173_v19, 16 }
  0xa7   : > { %v3294_v30 = vxor.u32 2147483648, %v3289_v40  ;;  %v3298_v43 = vsel %vm3296_vm13, %v3297_v50, %v3289_v40  ;;  %v3806_v54 = vsel %vm3796_vm4, %v3803_v27, %v3805_v60  ;;  %v3809_v57 = vsel %vm3797_vm3, %v3791_v28, %v3808_v11 }
  0xa8   : > { %vm3558_vm5 = vcmp.lt.s32.totalorder %v3557_v41, 0  ;;  %v3559_v29 = vsub.s32 0, %v3557_v41  ;;  %v3810_v14 = vsel %vm3796_vm4, %v3807_v59, %v3809_v57  ;;  %v3836_v5 = vand.u32 65535, %v3806_v54 }
  0xa9   : > { %v3295_v39 = vsel %vm3293_vm1, %v3281_v10, %v3294_v30  ;;  %v3814_v31 = vand.u32 65535, %v3810_v14  ;;  %v3815_v25 = vshrl.u32 %v3810_v14, 16  ;;  %v3837_v20 = vshrl.u32 %v3806_v54, 16 }
  0xaa   : > { %v3299_v44 = vsel %vm3292_vm0, %v3295_v39, %v3298_v43  ;;  %v3560_v1 = vsel %vm3558_vm5, %v3559_v29, %v3557_v41  ;;  %v3549_v6 = vadd.s32 %v5141_v36, %v5145_v12  ;;  %v3612_v48 = vand.u32 2139095040, %v5207_v2 }
  0xab   : > { %v5200_v52 = vsel %vm3290_vm14, nan, %v3299_v44  ;;  %v3561_v13 = vclz %v3560_v1  ;;  %v3779_v32 = vshrl.u32 %v7090_v45, %v5150_v61  ;;  %v3816_v15 = vmul.u32 %v3814_v31, %v3812_v37 }
  0xac   : > { %4296 = vperm.xlu0 %4598, %v5200_v52   ;;  %v3817_v63 = vmul.u32 %v3815_v25, %v3812_v37  ;;  %v3818_v18 = vmul.u32 %v3814_v31, %v3813_v58  ;;  %v3579_v42 = vsub.s32 4, %v5171_v46  ;;  %v3800_v55 = vsel %vm3798_vm2, %v3788_v26, 2102212464 }
  0xad   : > { %v4559_v56 = vadd.s32 4294967294, %v3561_v13  ;;  %v3840_v8 = vmul.u32 %v3836_v5, %v3813_v58  ;;  %v3819_v10 = vmul.u32 %v3815_v25, %v3813_v58  ;;  %v3839_v36 = vmul.u32 %v3837_v20, %v3812_v37 }
  0xae   : > { %v3820_v17 = vshll.u32 %v3817_v63, 16  ;;  %vm3457_vm9 = vcmp.lt.s32.totalorder %v4996_v35, 0  ;;  %v3822_v61 = vshll.u32 %v3818_v18, 16  ;;  %v3799_v50 = vsel %vm3795_vm15, %v3779_v32, %v3782_v33 }
  0xaf   : > { %vm4560_vm6 = vcmp.lt.s32.totalorder %v4559_v56, 0  ;;  %v3801_v22 = vsel %vm3797_vm3, %v3785_v38, %v3800_v55  ;;  %v3838_v16 = vmul.u32 %v3836_v5, %v3812_v37  ;;  %v3821_v21 = vshrl.u32 %v3817_v63, 16 }
  0xb0   : > { %v3564_v24 = vsel %vm4560_vm6, 0, %v4559_v56  ;;  %vm3824_vm7 = vc.u32 %v3816_v15, %v3820_v17  ;;  %v3826_v27 = vadd.s32 %v3820_v17, %v3816_v15  ;;  %v3841_v29 = vmul.u32 %v3837_v20, %v3813_v58 }
  0xb1   : > { %v3565_v12 = vsub.s32 32, %v3564_v24  ;;  %v3566_v28 = vshll.u32 %v3557_v41, %v3564_v24  ;;  %v3569_v40 = vsub.s32 4294967266, %v3564_v24  ;;  %v3825_v43 = vsel %vm3824_vm7, 1, %v7088_v0 }
  0xb2   : > { %v3827_v39 = vadd.s32 %v3825_v43, %v3819_v10  ;;  %v3842_v59 = vshll.u32 %v3839_v36, 16  ;;  %vm3828_vm8 = vc.u32 %v3826_v27, %v3822_v61  ;;  %v3844_v60 = vshll.u32 %v3840_v8, 16 }
  0xb3   : > { %v3567_v26 = vshrl.u32 %v3549_v6, %v3565_v12  ;;  %v3570_v30 = vadd.s32 127, %v3569_v40  ;;  %v3823_v11 = vshrl.u32 %v3818_v18, 16  ;;  %v3829_v33 = vsel %vm3828_vm8, 1, %v7088_v0 }
  0xb4   : > { %vm3846_vm10 = vc.u32 %v3838_v16, %v3842_v59  ;;  %v3848_v38 = vadd.s32 %v3842_v59, %v3838_v16  ;;  %v3831_v54 = vadd.s32 %v3829_v33, %v3827_v39  ;;  %v3843_v13 = vshrl.u32 %v3839_v36, 16 }
  0xb5   : > { %v3568_v41 = vor.u32 %v3567_v26, %v3566_v28  ;;  %v3571_v44 = vshll.u32 %v3570_v30, 23  ;;  %v3847_v57 = vsel %vm3846_vm10, 1, %v7088_v0  ;;  %v3613_v5 = vshrl.u32 %v3612_v48, 23 }
  0xb6   : > { %v3849_v14 = vadd.s32 %v3847_v57, %v3841_v29  ;;  %vm3850_vm11 = vc.u32 %v3848_v38, %v3844_v60  ;;  %v3832_v31 = vadd.s32 %v3831_v54, %v3821_v21  ;;  %v3609_v20 = vand.u32 2147483647, %v5207_v2 }
  0xb7   : > { %v3572_v1 = vor.u32 4788187, %v3571_v44  ;;  %v3575_v37 = vcvt.s32.f32 %v3568_v41  ;;  %v3851_v25 = vsel %vm3850_vm11, 1, %v7088_v0  ;;  %v3580_v6 = vsel %vm3457_vm9, %v3579_v42, %v5171_v46 }
  0xb8   : > { %v3845_v56 = vshrl.u32 %v3840_v8, 16  ;;  %v3853_v32 = vadd.s32 %v3851_v25, %v3849_v14  ;;  %v4561_v15 = vadd.s32 4294967169, %v3613_v5  ;;  %v3802_v18 = vsel %vm3796_vm4, %v3799_v50, %v3801_v22  ;;  %v5248_v8 = vld [vmem:[%s4704_s30 + $0x30] sm:$0xff] }
  0xb9   : > { %v3573_v58 = vand.u32 2147483647, %v3572_v1  ;;  %v5235_v55 = vadd.s32 %v3832_v31, %v3823_v11  ;;  %v5237_v48 = vadd.s32 %v3848_v38, %v3844_v60  ;;  %vm5241_vm12 = vcmp.le.f32.partialorder %v3455_v7, 0.7853982 }
  0xba   : > { %v3854_v10 = vadd.s32 %v3853_v32, %v3843_v13  ;;  %v3619_v17 = vadd.s32 1, %v4561_v15  ;;  %v3582_v42 = vsel %vm5241_vm12, 0, %v3580_v6  ;;  %v3856_v36 = vmul.u32 %v5173_v19, %v3802_v18 }
  0xbb   : > { %v3576_v63 = vmul.f32 %v3575_v37, %v3573_v58  ;;  %v3616_v12 = vand.u32 8388607, %v3609_v20  ;;  %vm3858_vm14 = vc.u32 %v5235_v55, %v5237_v48  ;;  %v3917_v40 = vand.u32 2147483647, %v5248_v8 }
  0xbc   : > { %v3855_v3 = vadd.s32 %v3854_v10, %v3845_v56  ;;  %vm3620_vm13 = vcmp.gt.s32.totalorder %v3619_v17, 0  ;;  %v3920_v19 = vand.u32 2139095040, %v5248_v8  ;;  %v5262_v26 = vand.u32 3, %v3582_v42 }
  0xbd   : > { %v3577_v46 = vxor.u32 2147483648, %v3576_v63  ;;  %v3621_v28 = vsel %vm3620_vm13, %v3619_v17, 0  ;;  %v3617_v29 = vor.u32 8388608, %v3616_v12  ;;  %v5270_v44 = vand.u32 8388607, %v3917_v40 }
  0xbe   : > { %v3859_v50 = vadd.s32 1, %v3855_v3  ;;  %v3623_v22 = vand.u32 31, %v3621_v28  ;;  %v5266_v59 = vshrl.u32 %v3621_v28, 5  ;;  %v3921_v41 = vshrl.u32 %v3920_v19, 23 }
  0xbf   : > { %v3578_v7 = vsel %vm3457_vm9, %v3577_v46, %v3576_v63  ;;  %vm3604_vm15 = vcmp.eq.s32.totalorder %v5262_v26, 2  ;;  %vm3601_vm0 = vcmp.eq.s32.totalorder %v5262_v26, 0  ;;  %vm3600_vm1 = vcmp.lt.s32.totalorder %v5262_v26, 2 }
  0xc0   : > { %v3581_v61 = vsel %vm5241_vm12, %v4996_v35, %v3578_v7  ;;  %v3860_v30 = vsel %vm3858_vm14, %v3859_v50, %v3855_v3  ;;  %v5264_v43 = vsub.s32 32, %v3623_v22  ;;  %v3629_v38 = vshll.u32 %v7086_v47, %v3623_v22 }
  0xc1   : > { %v3583_v16 = vmul.f32 %v3581_v61, %v3581_v61  ;;  %v3861_v39 = vadd.s32 %v3860_v30, %v3856_v36  ;;  %v3632_v37 = vshll.u32 %v7082_v49, %v3623_v22  ;;  %v3635_v57 = vshll.u32 %v7080_v51, %v3623_v22 }
  0xc2   : > { %v3630_v1 = vshrl.u32 %v7082_v49, %v5264_v43  ;;  %v3633_v54 = vshrl.u32 %v7080_v51, %v5264_v43  ;;  %v3636_v58 = vshrl.u32 %v7084_v53, %v5264_v43  ;;  %v3626_v31 = vshll.u32 %v7090_v45, %v3623_v22 }
  0xc3   : > { %v3584_v27 = vmul.f32 -0.001358992, %v3583_v16  ;;  %v3591_v21 = vmul.f32 -0.00019511016, %v3583_v16  ;;  %v3862_v33 = vadd.s32 536870912, %v3861_v39  ;;  %v3627_v25 = vshrl.u32 %v7086_v47, %v5264_v43 }
  0xc4   : > { %v3638_v6 = vshll.u32 %v7084_v53, %v3623_v22  ;;  %v3639_v56 = vshrl.u32 %v7078_v62, %v5264_v43  ;;  %v5293_v18 = vshll.u32 %v3617_v29, 8  ;;  %vm3598_vm2 = vweird.f32 %v4996_v35 }
  0xc5   : > { %v3585_v60 = vadd.f32 0.041655596, %v3584_v27  ;;  %v3592_v11 = vadd.f32 0.008332121, %v3591_v21  ;;  %v5280_v5 = vshrl.u32 %v3862_v33, 30  ;;  %v5296_v24 = vor.u32 %v3630_v1, %v3629_v38 }
  0xc6   : > { %v3634_v10 = vor.u32 %v3633_v54, %v3632_v37  ;;  %v3637_v17 = vor.u32 %v3636_v58, %v3635_v57  ;;  %v3640_v46 = vor.u32 %v3639_v56, %v3638_v6  ;;  %vm3641_vm3 = vcmp.lt.s32.totalorder %v5266_v59, 1 }
  0xc7   : > { %v3586_v13 = vmul.f32 %v3585_v60, %v3583_v16  ;;  %v3593_v14 = vmul.f32 %v3592_v11, %v3583_v16  ;;  %v3864_v63 = vshll.u32 %v5280_v5, 30  ;;  %v3628_v12 = vor.u32 %v3627_v25, %v3626_v31 }
  0xc8   : > { %vm3643_vm4 = vcmp.lt.s32.totalorder %v5266_v59, 3  ;;  %vm3644_vm5 = vcmp.lt.s32.totalorder %v5266_v59, 4  ;;  %v4567_v7 = vadd.s32 4294967169, %v3921_v41  ;;  %vm3765_vm9 = vcmp.lt.s32.totalorder %v5060_v9, 0 }
  0xc9   : > { %v3587_v32 = vadd.f32 -0.4999988, %v3586_v13  ;;  %v3594_v15 = vadd.f32 -0.16666654, %v3593_v14  ;;  %v3865_v36 = vsub.s32 %v3861_v39, %v3864_v63  ;;  %vm3642_vm7 = vcmp.lt.s32.totalorder %v5266_v59, 2 }
  0xca   : > { %v3650_v19 = vsel %vm3644_vm5, %v3637_v17, 920167782  ;;  %v3654_v30 = vsel %vm3644_vm5, %v3640_v46, 1326507024  ;;  %v3857_v39 = vadd.s32 %v5237_v48, %v5235_v55  ;;  %v3649_v60 = vsel %vm3641_vm3, %v3628_v12, %v5296_v24 }
  0xcb   : > { %v3588_v42 = vmul.f32 %v3587_v32, %v3583_v16  ;;  %v3595_v3 = vmul.f32 %v3594_v15, %v3583_v16  ;;  %vm3866_vm6 = vcmp.lt.s32.totalorder %v3865_v36, 0  ;;  %v3867_v22 = vsub.s32 0, %v3865_v36 }
  0xcc   : > { %v3653_v16 = vsel %vm3641_vm3, %v5296_v24, %v3634_v10  ;;  %v3651_v11 = vsel %vm3643_vm4, %v3634_v10, %v3650_v19  ;;  %v3655_v33 = vsel %vm3643_vm4, %v3637_v17, %v3654_v30  ;;  %v3658_v55 = vand.u32 65535, %v5293_v18 }
  0xcd   : > { %v3589_v28 = vadd.f32 1.0, %v3588_v42  ;;  %v3596_v50 = vadd.f32 1.0, %v3595_v3  ;;  %v3868_v29 = vsel %vm3866_vm6, %v3867_v22, %v3865_v36  ;;  %v3656_v1 = vsel %vm3642_vm7, %v3653_v16, %v3655_v33 }
  0xce   : > { %v3869_v41 = vclz %v3868_v29  ;;  %v3659_v37 = vshrl.u32 %v5293_v18, 16  ;;  %v3661_v54 = vshrl.u32 %v3656_v1, 16  ;;  %v3927_v57 = vadd.s32 1, %v4567_v7 }
  0xcf   : > { %v3597_v27 = vmul.f32 %v3596_v50, %v3581_v61  ;;  %v3605_v21 = vxor.u32 2147483648, %v3589_v28  ;;  %v3887_v14 = vsub.s32 4, %v5280_v5  ;;  %v3652_v58 = vsel %vm3642_vm7, %v3649_v60, %v3651_v11 }
  0xd0   : > { %v4565_v48 = vadd.s32 4294967294, %v3869_v41  ;;  %v3660_v31 = vand.u32 65535, %v3656_v1  ;;  %v3625_v6 = vshrl.u32 %v7090_v45, %v5264_v43  ;;  %v3646_v56 = vsel %vm3644_vm5, %v3634_v10, 2102212464 }
  0xd1   : > { %v3602_v38 = vxor.u32 2147483648, %v3597_v27  ;;  %v3606_v61 = vsel %vm3604_vm15, %v3605_v21, %v3597_v27  ;;  %v3663_v63 = vmul.u32 %v3661_v54, %v3658_v55  ;;  %v3682_v17 = vand.u32 65535, %v3652_v58 }
  0xd2   : > { %vm4566_vm8 = vcmp.lt.s32.totalorder %v4565_v48, 0  ;;  %v3683_v3 = vshrl.u32 %v3652_v58, 16  ;;  %v5344_v43 = vsel %vm3765_vm9, %v3887_v14, %v5280_v5  ;;  %v3662_v7 = vmul.u32 %v3660_v31, %v3658_v55 }
  0xd3   : > { %v3603_v13 = vsel %vm3601_vm0, %v3589_v28, %v3602_v38  ;;  %v3872_v15 = vsel %vm4566_vm8, 0, %v4565_v48  ;;  %v3664_v10 = vmul.u32 %v3660_v31, %v3659_v37  ;;  %v3925_v35 = vor.u32 8388608, %v5270_v44 }
  0xd4   : > { %v3607_v25 = vsel %vm3600_vm1, %v3603_v13, %v3606_v61  ;;  %v3873_v46 = vsub.s32 32, %v3872_v15  ;;  %v3874_v42 = vshll.u32 %v3865_v36, %v3872_v15  ;;  %v3877_v26 = vsub.s32 4294967266, %v3872_v15 }
  0xd5   : > { %v5338_v32 = vsel %vm3598_vm2, nan, %v3607_v25  ;;  %vm5349_vm10 = vcmp.le.f32.partialorder %v3763_v4, 0.7853982  ;;  %v3645_v36 = vsel %vm3641_vm3, %v3625_v6, %v3628_v12  ;;  %v3647_v5 = vsel %vm3643_vm4, %v5296_v24, %v3646_v56 }
  0xd6   : > { %4306 = vperm.xlu2 %4600, %v5338_v32   ;;  %v3875_v50 = vshrl.u32 %v3857_v39, %v3873_v46  ;;  %v3878_v22 = vadd.s32 127, %v3877_v26  ;;  %v3665_v19 = vmul.u32 %v3661_v54, %v3659_v37  ;;  %v3666_v16 = vshll.u32 %v3663_v63, 16 }
  0xd7   : > { %v3668_v30 = vshll.u32 %v3664_v10, 16  ;;  %vm3928_vm11 = vcmp.gt.s32.totalorder %v3927_v57, 0  ;;  %v3684_v29 = vmul.u32 %v3682_v17, %v3658_v55  ;;  %v3685_v4 = vmul.u32 %v3683_v3, %v3658_v55 }
  0xd8   : > { %v3876_v27 = vor.u32 %v3875_v50, %v3874_v42  ;;  %v3879_v21 = vshll.u32 %v3878_v22, 23  ;;  %vm3670_vm12 = vc.u32 %v3662_v7, %v3666_v16  ;;  %v3672_v41 = vadd.s32 %v3666_v16, %v3662_v7 }
  0xd9   : > { %v3686_v60 = vmul.u32 %v3682_v17, %v3659_v37  ;;  %v3687_v39 = vmul.u32 %v3683_v3, %v3659_v37  ;;  %v3671_v12 = vsel %vm3670_vm12, 1, %v7088_v0  ;;  %v3688_v38 = vshll.u32 %v3685_v4, 16 }
  0xda   : > { %v3880_v11 = vor.u32 4788187, %v3879_v21  ;;  %v3883_v33 = vcvt.s32.f32 %v3876_v27  ;;  %v3667_v61 = vshrl.u32 %v3663_v63, 16  ;;  %v3673_v1 = vadd.s32 %v3671_v12, %v3665_v19 }
  0xdb   : > { %vm3674_vm13 = vc.u32 %v3672_v41, %v3668_v30  ;;  %v3690_v24 = vshll.u32 %v3686_v60, 16  ;;  %v3669_v54 = vshrl.u32 %v3664_v10, 16  ;;  %vm3692_vm14 = vc.u32 %v3684_v29, %v3688_v38 }
  0xdc   : > { %v3881_v48 = vand.u32 2147483647, %v3880_v11  ;;  %v3675_v13 = vsel %vm3674_vm13, 1, %v7088_v0  ;;  %v3693_v55 = vsel %vm3692_vm14, 1, %v7088_v0  ;;  %v3694_v58 = vadd.s32 %v3688_v38, %v3684_v29 }
  0xdd   : > { %v3677_v14 = vadd.s32 %v3675_v13, %v3673_v1  ;;  %v3929_v37 = vsel %vm3928_vm11, %v3927_v57, 0  ;;  %v3648_v25 = vsel %vm3642_vm7, %v3645_v36, %v3647_v5  ;;  %v3695_v6 = vadd.s32 %v3693_v55, %v3687_v39 }
  0xde   : > { %v3884_v31 = vmul.f32 %v3883_v33, %v3881_v48  ;;  %v3931_v56 = vand.u32 31, %v3929_v37  ;;  %v3890_v15 = vsel %vm5349_vm10, 0, %v5344_v43  ;;  %v3689_v17 = vshrl.u32 %v3685_v4, 16 }
  0xdf   : > { %v3678_v63 = vadd.s32 %v3677_v14, %v3667_v61  ;;  %vm3696_vm15 = vc.u32 %v3694_v58, %v3690_v24  ;;  %v5368_v26 = vadd.s32 %v3694_v58, %v3690_v24  ;;  %v3691_v59 = vshrl.u32 %v3686_v60, 16 }
  0xe0   : > { %v3885_v46 = vxor.u32 2147483648, %v3884_v31  ;;  %v3697_v42 = vsel %vm3696_vm15, 1, %v7088_v0  ;;  %v5370_v3 = vsub.s32 32, %v3931_v56  ;;  %v3702_v10 = vmul.u32 %v5293_v18, %v3648_v25 }
  0xe1   : > { %v5372_v57 = vadd.s32 %v3678_v63, %v3669_v54  ;;  %v3699_v7 = vadd.s32 %v3697_v42, %v3695_v6  ;;  %v3934_v43 = vshll.u32 %v7090_v45, %v3931_v56  ;;  %v3937_v36 = vshll.u32 %v7086_v47, %v3931_v56 }
  0xe2   : > { %v3886_v50 = vsel %vm3765_vm9, %v3885_v46, %v3884_v31  ;;  %v3935_v22 = vshrl.u32 %v7086_v47, %v5370_v3  ;;  %v3938_v16 = vshrl.u32 %v7082_v49, %v5370_v3  ;;  %v3940_v18 = vshll.u32 %v7082_v49, %v3931_v56 }
  0xe3   : > { %v3889_v5 = vsel %vm5349_vm10, %v5060_v9, %v3886_v50  ;;  %v3700_v19 = vadd.s32 %v3699_v7, %v3689_v17  ;;  %vm3704_vm0 = vc.u32 %v5372_v57, %v5368_v26  ;;  %v5389_v27 = vshrl.u32 %v3929_v37, 5 }
  0xe4   : > { %v3891_v30 = vmul.f32 %v3889_v5, %v3889_v5  ;;  %v3941_v21 = vshrl.u32 %v7080_v51, %v5370_v3  ;;  %v3943_v4 = vshll.u32 %v7080_v51, %v3931_v56  ;;  %v3944_v28 = vshrl.u32 %v7084_v53, %v5370_v3 }
  0xe5   : > { %v3701_v29 = vadd.s32 %v3700_v19, %v3691_v59  ;;  %v3946_v41 = vshll.u32 %v7084_v53, %v3931_v56  ;;  %v5397_v11 = vor.u32 %v3935_v22, %v3934_v43  ;;  %v3947_v33 = vshrl.u32 %v7078_v62, %v5370_v3 }
  0xe6   : > { %v3892_v60 = vmul.f32 -0.001358992, %v3891_v30  ;;  %v3899_v39 = vmul.f32 -0.00019511016, %v3891_v30  ;;  %v5401_v38 = vor.u32 %v3938_v16, %v3937_v36  ;;  %v5403_v61 = vor.u32 %v3941_v21, %v3940_v18 }
  0xe7   : > { %v3705_v12 = vadd.s32 1, %v3701_v29  ;;  %v3945_v1 = vor.u32 %v3944_v28, %v3943_v4  ;;  %v3948_v54 = vor.u32 %v3947_v33, %v3946_v41  ;;  %vm3949_vm1 = vcmp.lt.s32.totalorder %v5389_v27, 1 }
  0xe8   : > { %v3893_v24 = vadd.f32 0.041655596, %v3892_v60  ;;  %v3900_v48 = vadd.f32 0.008332121, %v3899_v39  ;;  %v3907_v13 = vand.u32 3, %v3890_v15  ;;  %vm3952_vm2 = vcmp.lt.s32.totalorder %v5389_v27, 4 }
  0xe9   : > { %v3706_v14 = vsel %vm3704_vm0, %v3705_v12, %v3701_v29  ;;  %v5412_v55 = vshll.u32 %v3925_v35, 8  ;;  %vm3951_vm3 = vcmp.lt.s32.totalorder %v5389_v27, 3  ;;  %vm3950_vm4 = vcmp.lt.s32.totalorder %v5389_v27, 2 }
  0xea   : > { %v3894_v58 = vmul.f32 %v3893_v24, %v3891_v30  ;;  %v3901_v37 = vmul.f32 %v3900_v48, %v3891_v30  ;;  %v3707_v31 = vadd.s32 %v3706_v14, %v3702_v10  ;;  %v3957_v25 = vsel %vm3949_vm1, %v5397_v11, %v5401_v38 }
  0xeb   : > { %v3958_v6 = vsel %vm3952_vm2, %v3945_v1, 920167782  ;;  %v3962_v44 = vsel %vm3952_vm2, %v3948_v54, 1326507024  ;;  %v3961_v63 = vsel %vm3949_vm1, %v5401_v38, %v5403_v61  ;;  %v3966_v42 = vand.u32 65535, %v5412_v55 }
  0xec   : > { %v3895_v35 = vadd.f32 -0.4999988, %v3894_v58  ;;  %v3902_v56 = vadd.f32 -0.16666654, %v3901_v37  ;;  %v3708_v15 = vadd.s32 536870912, %v3707_v31  ;;  %v3959_v17 = vsel %vm3951_vm3, %v5403_v61, %v3958_v6 }
  0xed   : > { %v3963_v46 = vsel %vm3951_vm3, %v3945_v1, %v3962_v44  ;;  %v3960_v50 = vsel %vm3950_vm4, %v3957_v25, %v3959_v17  ;;  %vm3912_vm5 = vcmp.eq.s32.totalorder %v3907_v13, 2  ;;  %v3967_v18 = vshrl.u32 %v5412_v55, 16 }
  0xee   : > { %v3896_v59 = vmul.f32 %v3895_v35, %v3891_v30  ;;  %v3903_v7 = vmul.f32 %v3902_v56, %v3891_v30  ;;  %v5434_v10 = vshrl.u32 %v3708_v15, 30  ;;  %v3964_v43 = vsel %vm3950_vm4, %v3961_v63, %v3963_v46 }
  0xef   : > { %v3991_v22 = vshrl.u32 %v3960_v50, 16  ;;  %v3968_v21 = vand.u32 65535, %v3964_v43  ;;  %v3969_v29 = vshrl.u32 %v3964_v43, 16  ;;  %v3990_v4 = vand.u32 65535, %v3960_v50 }
  0xf0   : > { %v3897_v36 = vadd.f32 1.0, %v3896_v59  ;;  %v3904_v19 = vadd.f32 1.0, %v3903_v7  ;;  %v3710_v16 = vshll.u32 %v5434_v10, 30  ;;  %vm3908_vm6 = vcmp.lt.s32.totalorder %v3907_v13, 2 }
  0xf1   : > { %v5442_v60 = vmul.u32 %v3991_v22, %v3966_v42  ;;  %vm3909_vm9 = vcmp.eq.s32.totalorder %v3907_v13, 0  ;;  %vm3906_vm8 = vweird.f32 %v5060_v9  ;;  %v3970_v1 = vmul.u32 %v3968_v21, %v3966_v42 }
  0xf2   : > { %v3905_v30 = vmul.f32 %v3904_v19, %v3889_v5  ;;  %v3913_v28 = vxor.u32 2147483648, %v3897_v36  ;;  %v3711_v41 = vsub.s32 %v3707_v31, %v3710_v16  ;;  %v3971_v24 = vmul.u32 %v3969_v29, %v3966_v42 }
  0xf3   : > { %v3972_v48 = vmul.u32 %v3968_v21, %v3967_v18  ;;  %v3992_v58 = vmul.u32 %v3990_v4, %v3966_v42  ;;  %v3996_v5 = vshll.u32 %v5442_v60, 16  ;;  %v3994_v6 = vmul.u32 %v3990_v4, %v3967_v18 }
  0xf4   : > { %v3910_v39 = vxor.u32 2147483648, %v3905_v30  ;;  %v3914_v33 = vsel %vm3912_vm5, %v3913_v28, %v3905_v30  ;;  %vm3712_vm7 = vcmp.lt.s32.totalorder %v3711_v41, 0  ;;  %v3713_v12 = vsub.s32 0, %v3711_v41 }
  0xf5   : > { %v3974_v25 = vshll.u32 %v3971_v24, 16  ;;  %v3973_v13 = vmul.u32 %v3969_v29, %v3967_v18  ;;  %v3976_v35 = vshll.u32 %v3972_v48, 16  ;;  %v3703_v15 = vadd.s32 %v5368_v26, %v5372_v57 }
  0xf6   : > { %v3911_v54 = vsel %vm3909_vm9, %v3897_v36, %v3910_v39  ;;  %v3714_v14 = vsel %vm3712_vm7, %v3713_v12, %v3711_v41  ;;  %v3933_v63 = vshrl.u32 %v7090_v45, %v5370_v3  ;;  %vm4000_vm11 = vc.u32 %v3992_v58, %v3996_v5  ;;  %v5459_v3 = vld [vmem:[%s4704_s30 + $0x38] sm:$0xff] }
  0xf7   : > { %v3915_v37 = vsel %vm3908_vm6, %v3911_v54, %v3914_v33  ;;  %v3715_v31 = vclz %v3714_v14  ;;  %vm3978_vm10 = vc.u32 %v3970_v1, %v3974_v25  ;;  %v3980_v9 = vadd.s32 %v3974_v25, %v3970_v1 }
  0xf8   : > { %v5446_v44 = vsel %vm3906_vm8, nan, %v3915_v37  ;;  %v3979_v17 = vsel %vm3978_vm10, 1, %v7088_v0  ;;  %v3954_v46 = vsel %vm3952_vm2, %v5403_v61, 2102212464  ;;  %v3995_v42 = vmul.u32 %v3991_v22, %v3967_v18 }
  0xf9   : > { %4316 = vperm.xlu1 %4599, %v5446_v44   ;;  %v4562_v56 = vadd.s32 4294967294, %v3715_v31  ;;  %v3998_v59 = vshll.u32 %v3994_v6, 16  ;;  %v3981_v50 = vadd.s32 %v3979_v17, %v3973_v13  ;;  %vm3982_vm13 = vc.u32 %v3980_v9, %v3976_v35 }
  0xfa   : > { %v4001_v43 = vsel %vm4000_vm11, 1, %v7088_v0  ;;  %v3975_v19 = vshrl.u32 %v3971_v24, 16  ;;  %v3953_v16 = vsel %vm3949_vm1, %v3933_v63, %v5397_v11  ;;  %v3977_v21 = vshrl.u32 %v3972_v48, 16 }
  0xfb   : > { %vm4563_vm12 = vcmp.lt.s32.totalorder %v4562_v56, 0  ;;  %v3983_v61 = vsel %vm3982_vm13, 1, %v7088_v0  ;;  %v4002_v22 = vadd.s32 %v3996_v5, %v3992_v58  ;;  %v4003_v30 = vadd.s32 %v4001_v43, %v3995_v42 }
  0xfc   : > { %v3718_v7 = vsel %vm4563_vm12, 0, %v4562_v56  ;;  %v3985_v4 = vadd.s32 %v3983_v61, %v3981_v50  ;;  %v3955_v28 = vsel %vm3951_vm3, %v5401_v38, %v3954_v46  ;;  %v4074_v39 = vand.u32 2139095040, %v5459_v3 }
  0xfd   : > { %v3719_v26 = vsub.s32 32, %v3718_v7  ;;  %v3720_v57 = vshll.u32 %v3711_v41, %v3718_v7  ;;  %v3723_v36 = vsub.s32 4294967266, %v3718_v7  ;;  %v3997_v41 = vshrl.u32 %v5442_v60, 16 }
  0xfe   : > { %vm4004_vm14 = vc.u32 %v4002_v22, %v3998_v59  ;;  %v3986_v11 = vadd.s32 %v3985_v4, %v3975_v19  ;;  %v3999_v24 = vshrl.u32 %v3994_v6, 16  ;;  %v4075_v54 = vshrl.u32 %v4074_v39, 23 }
  0xff   : > { %v3721_v18 = vshrl.u32 %v3703_v15, %v3719_v26  ;;  %v3724_v29 = vadd.s32 127, %v3723_v36  ;;  %v4005_v1 = vsel %vm4004_vm14, 1, %v7088_v0  ;;  %v5473_v37 = vadd.s32 %v4002_v22, %v3998_v59 }
 0x100   : > { %v4007_v48 = vadd.s32 %v4005_v1, %v4003_v30  ;;  %v5471_v5 = vadd.s32 %v3986_v11, %v3977_v21  ;;  %v3956_v38 = vsel %vm3950_vm4, %v3953_v16, %v3955_v28  ;;  %v4570_v31 = vadd.s32 4294967169, %v4075_v54 }
 0x101   : > { %v3722_v33 = vor.u32 %v3721_v18, %v3720_v57  ;;  %v3725_v12 = vshll.u32 %v3724_v29, 23  ;;  %v3733_v13 = vsub.s32 4, %v5434_v10  ;;  %v4010_v6 = vmul.u32 %v5412_v55, %v3956_v38 }
 0x102   : > { %v4008_v60 = vadd.s32 %v4007_v48, %v3997_v41  ;;  %v4081_v56 = vadd.s32 1, %v4570_v31  ;;  %vm4012_vm15 = vc.u32 %v5471_v5, %v5473_v37  ;;  %vm3611_vm0 = vcmp.lt.s32.totalorder %v5207_v2, 0 }
 0x103   : > { %v3726_v14 = vor.u32 4788187, %v3725_v12  ;;  %v3729_v58 = vcvt.s32.f32 %v3722_v33  ;;  %v4225_v27 = vmul.f32 3.0, %v5025_v34  ;;  %vm5485_vm2 = vcmp.le.f32.partialorder %v3609_v20, 0.7853982 }
 0x104   : > { %v4009_v35 = vadd.s32 %v4008_v60, %v3999_v24  ;;  %vm4082_vm1 = vcmp.gt.s32.totalorder %v4081_v56, 0  ;;  %v3734_v42 = vsel %vm3611_vm0, %v3733_v13, %v5434_v10  ;;  %v4071_v59 = vand.u32 2147483647, %v5459_v3 }
 0x105   : > { %v3727_v25 = vand.u32 2147483647, %v3726_v14  ;;  %v4083_v46 = vsel %vm4082_vm1, %v4081_v56, 0  ;;  %v5497_v20 = vmul.f32 %v4225_v27, %v5025_v34  ;;  %v3736_v36 = vsel %vm5485_vm2, 0, %v3734_v42 }
 0x106   : > { %v4013_v15 = vadd.s32 1, %v4009_v35  ;;  %v4085_v7 = vand.u32 31, %v4083_v46  ;;  %v4078_v16 = vand.u32 8388607, %v4071_v59  ;;  %v5503_v21 = vshrl.u32 %v4083_v46, 5 }
 0x107   : > { %v3730_v9 = vmul.f32 %v3729_v58, %v3727_v25  ;;  %v3753_v11 = vand.u32 3, %v3736_v36  ;;  %vm3752_vm5 = vweird.f32 %v5207_v2  ;;  %vm5571_vm13 = vcmp.le.f32.partialorder %v3917_v40, 0.7853982 }
 0x108   : > { %v4014_v55 = vsel %vm4012_vm15, %v4013_v15, %v4009_v35  ;;  %v5494_v57 = vsub.s32 32, %v4085_v7  ;;  %v4091_v61 = vshll.u32 %v7086_v47, %v4085_v7  ;;  %v4094_v22 = vshll.u32 %v7082_v49, %v4085_v7 }
 0x109   : > { %v3731_v17 = vxor.u32 2147483648, %v3730_v9  ;;  %v4015_v43 = vadd.s32 %v4014_v55, %v4010_v6  ;;  %v4097_v28 = vshll.u32 %v7080_v51, %v4085_v7  ;;  %v4100_v39 = vshll.u32 %v7084_v53, %v4085_v7 }
 0x10a   : > { %v4092_v34 = vshrl.u32 %v7082_v49, %v5494_v57  ;;  %v4095_v30 = vshrl.u32 %v7080_v51, %v5494_v57  ;;  %v4098_v41 = vshrl.u32 %v7084_v53, %v5494_v57  ;;  %v4079_v24 = vor.u32 8388608, %v4078_v16 }
 0x10b   : > { %v3732_v50 = vsel %vm3611_vm0, %v3731_v17, %v3730_v9  ;;  %v4016_v10 = vadd.s32 536870912, %v4015_v43  ;;  %v4088_v48 = vshll.u32 %v7090_v45, %v4085_v7  ;;  %v4089_v54 = vshrl.u32 %v7086_v47, %v5494_v57 }
 0x10c   : > { %v3735_v26 = vsel %vm5485_vm2, %v5207_v2, %v3732_v50  ;;  %v4101_v14 = vshrl.u32 %v7078_v62, %v5494_v57  ;;  %v5523_v31 = vor.u32 %v4092_v34, %v4091_v61  ;;  %v5525_v25 = vor.u32 %v4095_v30, %v4094_v22 }
 0x10d   : > { %v3737_v19 = vmul.f32 %v3735_v26, %v3735_v26  ;;  %v5507_v4 = vshrl.u32 %v4016_v10, 30  ;;  %v4099_v13 = vor.u32 %v4098_v41, %v4097_v28  ;;  %vm4106_vm3 = vcmp.lt.s32.totalorder %v5503_v21, 4 }
 0x10e   : > { %v4102_v35 = vor.u32 %v4101_v14, %v4100_v39  ;;  %vm3754_vm6 = vcmp.lt.s32.totalorder %v3753_v11, 2  ;;  %vm3755_vm9 = vcmp.eq.s32.totalorder %v3753_v11, 0  ;;  %v5529_v15 = vor.u32 %v4089_v54, %v4088_v48 }
 0x10f   : > { %v3738_v18 = vmul.f32 -0.001358992, %v3737_v19  ;;  %v3745_v29 = vmul.f32 -0.00019511016, %v3737_v19  ;;  %v4018_v1 = vshll.u32 %v5507_v4, 30  ;;  %vm4103_vm7 = vcmp.lt.s32.totalorder %v5503_v21, 1 }
 0x110   : > { %vm4105_vm8 = vcmp.lt.s32.totalorder %v5503_v21, 3  ;;  %vm4104_vm10 = vcmp.lt.s32.totalorder %v5503_v21, 2  ;;  %v4112_v42 = vsel %vm4106_vm3, %v4099_v13, 920167782  ;;  %v5536_v55 = vshll.u32 %v4079_v24, 8 }
 0x111   : > { %v3739_v33 = vadd.f32 0.041655596, %v3738_v18  ;;  %v3746_v12 = vadd.f32 0.008332121, %v3745_v29  ;;  %v4019_v60 = vsub.s32 %v4015_v43, %v4018_v1  ;;  %v4115_v43 = vsel %vm4103_vm7, %v5523_v31, %v5525_v25 }
 0x112   : > { %v4116_v36 = vsel %vm4106_vm3, %v4102_v35, 1326507024  ;;  %vm3758_vm11 = vcmp.eq.s32.totalorder %v3753_v11, 2  ;;  %v4111_v18 = vsel %vm4103_vm7, %v5529_v15, %v5523_v31  ;;  %v4113_v29 = vsel %vm4105_vm8, %v5525_v25, %v4112_v42 }
 0x113   : > { %v3740_v58 = vmul.f32 %v3739_v33, %v3737_v19  ;;  %v3747_v38 = vmul.f32 %v3746_v12, %v3737_v19  ;;  %vm4020_vm4 = vcmp.lt.s32.totalorder %v4019_v60, 0  ;;  %v4021_v6 = vsub.s32 0, %v4019_v60 }
 0x114   : > { %v4117_v16 = vsel %vm4105_vm8, %v4099_v13, %v4116_v36  ;;  %v4114_v1 = vsel %vm4104_vm10, %v4111_v18, %v4113_v29  ;;  %v4573_v48 = vadd.f32 -1.0, %v5497_v20  ;;  %vm3919_vm14 = vcmp.lt.s32.totalorder %v5248_v8, 0 }
 0x115   : > { %v3741_v56 = vadd.f32 -0.4999988, %v3740_v58  ;;  %v3748_v9 = vadd.f32 -0.16666654, %v3747_v38  ;;  %v4022_v17 = vsel %vm4020_vm4, %v4021_v6, %v4019_v60  ;;  %v4118_v34 = vsel %vm4104_vm10, %v4115_v43, %v4117_v16 }
 0x116   : > { %v4023_v46 = vclz %v4022_v17  ;;  %v4122_v41 = vand.u32 65535, %v4118_v34  ;;  %v4144_v54 = vand.u32 65535, %v4114_v1  ;;  %v4123_v13 = vshrl.u32 %v4118_v34, 16 }
 0x117   : > { %v3742_v27 = vmul.f32 %v3741_v56, %v3737_v19  ;;  %v3749_v63 = vmul.f32 %v3748_v9, %v3737_v19  ;;  %v4011_v19 = vadd.s32 %v5473_v37, %v5471_v5  ;;  %v4120_v5 = vand.u32 65535, %v5536_v55 }
 0x118   : > { %v4568_v10 = vadd.s32 4294967294, %v4023_v46  ;;  %v4121_v37 = vshrl.u32 %v5536_v55, 16  ;;  %v4249_v56 = vmul.f32 0.5, %v4573_v48  ;;  %v4145_v9 = vshrl.u32 %v4114_v1, 16 }
 0x119   : > { %v3743_v7 = vadd.f32 1.0, %v3742_v27  ;;  %v3750_v50 = vadd.f32 1.0, %v3749_v63  ;;  %v4124_v63 = vmul.u32 %v4122_v41, %v4120_v5  ;;  %v4125_v17 = vmul.u32 %v4123_v13, %v4120_v5 }
 0x11a   : > { %vm4569_vm12 = vcmp.lt.s32.totalorder %v4568_v10, 0  ;;  %4359 = vperm.xlu1 %4599, %v4249_v56   ;;  %v4127_v11 = vmul.u32 %v4123_v13, %v4121_v37  ;;  %v4147_v43 = vmul.u32 %v4145_v9, %v4120_v5  ;;  %v4148_v36 = vmul.u32 %v4144_v54, %v4121_v37 }
 0x11b   : > { %v3751_v61 = vmul.f32 %v3750_v50, %v3735_v26  ;;  %v3759_v22 = vxor.u32 2147483648, %v3743_v7  ;;  %v4026_v28 = vsel %vm4569_vm12, 0, %v4568_v10  ;;  %v4128_v42 = vshll.u32 %v4125_v17, 16 }
 0x11c   : > { %v4027_v39 = vsub.s32 32, %v4026_v28  ;;  %v4028_v33 = vshll.u32 %v4019_v60, %v4026_v28  ;;  %v4031_v12 = vsub.s32 4294967266, %v4026_v28  ;;  %v4126_v60 = vmul.u32 %v4122_v41, %v4121_v37 }
 0x11d   : > { %v3756_v30 = vxor.u32 2147483648, %v3751_v61  ;;  %v3760_v26 = vsel %vm3758_vm11, %v3759_v22, %v3751_v61  ;;  %v4146_v50 = vmul.u32 %v4144_v54, %v4120_v5  ;;  %v4087_v10 = vshrl.u32 %v7090_v45, %v5494_v57 }
 0x11e   : > { %v4029_v58 = vshrl.u32 %v4011_v19, %v4027_v39  ;;  %v4032_v38 = vadd.s32 127, %v4031_v12  ;;  %vm4132_vm15 = vc.u32 %v4124_v63, %v4128_v42  ;;  %v4134_v40 = vadd.s32 %v4128_v42, %v4124_v63 }
 0x11f   : > { %v3757_v24 = vsel %vm3755_vm9, %v3743_v7, %v3756_v30  ;;  %v4130_v7 = vshll.u32 %v4126_v60, 16  ;;  %v4133_v16 = vsel %vm4132_vm15, 1, %v7088_v0  ;;  %v4149_v61 = vmul.u32 %v4145_v9, %v4121_v37 }
 0x120   : > { %v3761_v14 = vsel %vm3754_vm6, %v3757_v24, %v3760_v26  ;;  %v4030_v6 = vor.u32 %v4029_v58, %v4028_v33  ;;  %v4033_v27 = vshll.u32 %v4032_v38, 23  ;;  %v4150_v22 = vshll.u32 %v4147_v43, 16 }
 0x121   : > { %v5566_v35 = vsel %vm3752_vm5, nan, %v3761_v14  ;;  %v4152_v18 = vshll.u32 %v4148_v36, 16  ;;  %v4129_v34 = vshrl.u32 %v4125_v17, 16  ;;  %v4135_v30 = vadd.s32 %v4133_v16, %v4127_v11 }
 0x122   : > { %4311 = vperm.xlu0 %4598, %v5566_v35   ;;  %v4034_v2 = vor.u32 4788187, %v4033_v27  ;;  %v4037_v46 = vcvt.s32.f32 %v4030_v6  ;;  %vm4136_vm0 = vc.u32 %v4134_v40, %v4130_v7  ;;  %v4108_v5 = vsel %vm4106_vm3, %v5525_v25, 2102212464 }
 0x123   : > { %v4137_v26 = vsel %vm4136_vm0, 1, %v7088_v0  ;;  %vm4154_vm1 = vc.u32 %v4146_v50, %v4150_v22  ;;  %v4156_v28 = vadd.s32 %v4150_v22, %v4146_v50  ;;  %v4131_v41 = vshrl.u32 %v4126_v60, 16 }
 0x124   : > { %v4035_v19 = vand.u32 2147483647, %v4034_v2  ;;  %v4139_v39 = vadd.s32 %v4137_v26, %v4135_v30  ;;  %v4155_v33 = vsel %vm4154_vm1, 1, %v7088_v0  ;;  %v4107_v37 = vsel %vm4103_vm7, %v4087_v10, %v5529_v15 }
 0x125   : > { %v4151_v12 = vshrl.u32 %v4147_v43, 16  ;;  %v4157_v1 = vadd.s32 %v4155_v33, %v4149_v61  ;;  %vm4158_vm2 = vc.u32 %v4156_v28, %v4152_v18  ;;  %v4109_v25 = vsel %vm4105_vm8, %v5523_v31, %v4108_v5 }
 0x126   : > { %v4038_v29 = vmul.f32 %v4037_v46, %v4035_v19  ;;  %v4140_v48 = vadd.s32 %v4139_v39, %v4129_v34  ;;  %v4159_v54 = vsel %vm4158_vm2, 1, %v7088_v0  ;;  %v4041_v14 = vsub.s32 4, %v5507_v4 }
 0x127   : > { %v4153_v15 = vshrl.u32 %v4148_v36, 16  ;;  %v4161_v38 = vadd.s32 %v4159_v54, %v4157_v1  ;;  %v4160_v60 = vadd.s32 %v4156_v28, %v4152_v18  ;;  %v4110_v9 = vsel %vm4104_vm10, %v4107_v37, %v4109_v25 }
 0x128   : > { %v4039_v57 = vxor.u32 2147483648, %v4038_v29  ;;  %v4141_v56 = vadd.s32 %v4140_v48, %v4131_v41  ;;  %v4042_v63 = vsel %vm3919_vm14, %v4041_v14, %v5507_v4  ;;  %v4164_v46 = vmul.u32 %v5536_v55, %v4110_v9 }
 0x129   : > { %v4162_v6 = vadd.s32 %v4161_v38, %v4151_v12  ;;  %v4044_v7 = vsel %vm5571_vm13, 0, %v4042_v63  ;;  %vm4060_vm9 = vweird.f32 %v5248_v8  ;;  %v4228_v25 = vmul.f32 3.0, %v5338_v32 }
 0x12a   : > { %v4040_v24 = vsel %vm3919_vm14, %v4039_v57, %v4038_v29  ;;  %vm4166_vm3 = vc.u32 %v4141_v56, %v4160_v60  ;;  %v4061_v40 = vand.u32 3, %v4044_v7  ;;  %v4165_v1 = vadd.s32 %v4160_v60, %v4141_v56  ;;  %v5617_v60 = vld [vmem:[%s7073_s2] ss:$0 sm:$0xff] }
 0x12b   : > { %v4043_v58 = vsel %vm5571_vm13, %v5248_v8, %v4040_v24  ;;  %v4163_v17 = vadd.s32 %v4162_v6, %v4153_v15  ;;  %v4226_v24 = vmul.f32 3.0, %v5200_v52  ;;  %vm4073_vm10 = vcmp.lt.s32.totalorder %v5459_v3, 0 }
 0x12c   : > { %v4045_v13 = vmul.f32 %v4043_v58, %v4043_v58  ;;  %vm4066_vm4 = vcmp.eq.s32.totalorder %v4061_v40, 2  ;;  %vm4063_vm5 = vcmp.eq.s32.totalorder %v4061_v40, 0  ;;  %vm4062_vm6 = vcmp.lt.s32.totalorder %v4061_v40, 2 }
 0x12d   : > { %v4167_v42 = vadd.s32 1, %v4163_v17  ;;  %v4234_v38 = vmul.f32 %v4226_v24, %v5200_v52  ;;  %vm5627_vm11 = vcmp.le.f32.partialorder %v4071_v59, 0.7853982  ;;  %v4227_v24 = vmul.f32 3.0, %v5077_v23 }
 0x12e   : > { %v4046_v27 = vmul.f32 -0.001358992, %v4045_v13  ;;  %v4053_v31 = vmul.f32 -0.00019511016, %v4045_v13  ;;  %vm4214_vm0 = vweird.f32 %v5459_v3 }
 0x12f   : > { %v4168_v43 = vsel %vm4166_vm3, %v4167_v42, %v4163_v17  ;;  %v297_v17 = vpop.permute.xlu0 %296 }
 0x130   : > { %v4047_v11 = vadd.f32 0.041655596, %v4046_v27  ;;  %v4054_v2 = vadd.f32 0.008332121, %v4053_v31  ;;  %v4169_v10 = vadd.s32 %v4168_v43, %v4164_v46  ;;  %v4229_v27 = vmul.f32 3.0, %v5566_v35 }
 0x131   : > { %v5620_v52 = vmul.f32 %v5617_v60, %v297_v17 }
 0x132   : > { %v4048_v50 = vmul.f32 %v4047_v11, %v4045_v13  ;;  %v4055_v21 = vmul.f32 %v4054_v2, %v4045_v13  ;;  %v4170_v4 = vadd.s32 536870912, %v4169_v10  ;;  %v4574_v11 = vadd.f32 -1.0, %v4234_v38 }
 0x133   : > { %v468_v43 = vand.u32 2139095040, %v5620_v52  ;;  %v4235_v38 = vmul.f32 %v4227_v24, %v5077_v23  ;;  %4605 = vrcp.f32 %v5620_v52 }
 0x134   : > { %v4049_v36 = vadd.f32 -0.4999988, %v4048_v50  ;;  %v4056_v19 = vadd.f32 -0.16666654, %v4055_v21  ;;  %v5605_v29 = vshrl.u32 %v4170_v4, 30  ;;  %v4250_v7 = vmul.f32 0.5, %v4574_v11 }
 0x135   : > { %v469_v40 = vshrl.u32 %v468_v43, 23 }
 0x136   : > { %v4050_v16 = vmul.f32 %v4049_v36, %v4045_v13  ;;  %v4057_v61 = vmul.f32 %v4056_v19, %v4045_v13  ;;  %v4172_v20 = vshll.u32 %v5605_v29, 30  ;;  %v4236_v13 = vmul.f32 %v4228_v25, %v5338_v32 }
 0x137   : > { %v4237_v32 = vmul.f32 %v4229_v27, %v5566_v35  ;;  %v4195_v4 = vsub.s32 4, %v5605_v29 }
 0x138   : > { %v4051_v22 = vadd.f32 1.0, %v4050_v16  ;;  %v4058_v18 = vadd.f32 1.0, %v4057_v61  ;;  %v4173_v26 = vsub.s32 %v4169_v10, %v4172_v20  ;;  %v4576_v2 = vadd.f32 -1.0, %v4236_v13  ;;  %v307_v10 = vpop.permute.xlu1 %306 }
 0x139   : > { %v4577_v35 = vadd.f32 -1.0, %v4237_v32  ;;  %v4230_v13 = vmul.f32 3.0, %v5446_v44  ;;  %v5656_v32 = vmul.f32 %v5617_v60, %v307_v10 }
 0x13a   : > { %v4059_v55 = vmul.f32 %v4058_v18, %v4043_v58  ;;  %v4067_v34 = vxor.u32 2147483648, %v4051_v22  ;;  %vm4174_vm7 = vcmp.lt.s32.totalorder %v4173_v26, 0  ;;  %v4175_v57 = vsub.s32 0, %v4173_v26 }
 0x13b   : > { %v4252_v50 = vmul.f32 0.5, %v4576_v2  ;;  %v4253_v18 = vmul.f32 0.5, %v4577_v35  ;;  %v4238_v11 = vmul.f32 %v4230_v13, %v5446_v44  ;;  %v4575_v2 = vadd.f32 -1.0, %v4235_v38 }
 0x13c   : > { %v4064_v30 = vxor.u32 2147483648, %v4059_v55  ;;  %v4068_v5 = vsel %vm4066_vm4, %v4067_v34, %v4059_v55  ;;  %v4176_v33 = vsel %vm4174_vm7, %v4175_v57, %v4173_v26  ;;  %v4501_v34 = vadd.s32 4294967169, %v469_v40 }
 0x13d   : > { %v4177_v37 = vclz %v4176_v33  ;;  %4374 = vperm.xlu1 %4599, %v4252_v50  }
 0x13e   : > { %v4065_v28 = vsel %vm4063_vm5, %v4051_v22, %v4064_v30  ;;  %v475_v57 = vadd.s32 1, %v4501_v34 }
 0x13f   : > { %v4069_v41 = vsel %vm4062_vm6, %v4065_v28, %v4068_v5  ;;  %v4571_v12 = vadd.s32 4294967294, %v4177_v37  ;;  %v4196_v5 = vsel %vm4073_vm10, %v4195_v4, %v5605_v29  ;;  %v4251_v4 = vmul.f32 0.5, %v4575_v2 }
 0x140   : > { %v4070_v39 = vsel %vm4060_vm9, nan, %v4069_v41  ;;  %v4198_v41 = vsel %vm5627_vm11, 0, %v4196_v5  ;;  %v312_v37 = vpop.permute.xlu1 %311  ;;  %vm476_vm12 = vcmp.gt.s32.totalorder %v475_v57, 0  ;;  %v4578_v5 = vadd.f32 -1.0, %v4238_v11 }
 0x141   : > { %4321 = vperm.xlu2 %4600, %v4070_v39   ;;  %vm4572_vm8 = vcmp.lt.s32.totalorder %v4571_v12, 0  ;;  %v4231_v56 = vmul.f32 3.0, %v4070_v39  ;;  %v4215_v25 = vand.u32 3, %v4198_v41  ;;  %v5644_v29 = vmul.f32 %v5617_v60, %v312_v37 }
 0x142   : > { %v4180_v48 = vsel %vm4572_vm8, 0, %v4571_v12 }
 0x143   : > { %v4181_v54 = vsub.s32 32, %v4180_v48  ;;  %v4182_v14 = vshll.u32 %v4173_v26, %v4180_v48  ;;  %v4185_v58 = vsub.s32 4294967266, %v4180_v48  ;;  %v4239_v42 = vmul.f32 %v4231_v56, %v4070_v39 }
 0x144   : > { %vm4220_vm13 = vcmp.eq.s32.totalorder %v4215_v25, 2  ;;  %v933_v27 = vand.u32 2139095040, %v5644_v29  ;;  %vm4217_vm14 = vcmp.eq.s32.totalorder %v4215_v25, 0  ;;  %vm4216_vm15 = vcmp.lt.s32.totalorder %v4215_v25, 2 }
 0x145   : > { %v4183_v8 = vshrl.u32 %v4165_v1, %v4181_v54  ;;  %v4186_v15 = vadd.s32 127, %v4185_v58  ;;  %v4579_v16 = vadd.f32 -1.0, %v4239_v42  ;;  %4607 = vrcp.f32 %v5644_v29 }
 0x146   : > { %v934_v42 = vshrl.u32 %v933_v27, 23 }
 0x147   : > { %v4184_v9 = vor.u32 %v4183_v8, %v4182_v14  ;;  %v4187_v6 = vshll.u32 %v4186_v15, 23  ;;  %v4255_v55 = vmul.f32 0.5, %v4579_v16  ;;  %v5647_v14 = vand.u32 2147483647, %v5620_v52 }
 0x148   : > { %v477_v15 = vsel %vm476_vm12, %v475_v57, 0  ;;  %v4510_v57 = vadd.s32 4294967169, %v934_v42 }
 0x149   : > { %v4188_v31 = vor.u32 4788187, %v4187_v6  ;;  %v4191_v63 = vcvt.s32.f32 %v4184_v9  ;;  %4364 = vperm.xlu2 %4600, %v4250_v7   ;;  %4389 = vperm.xlu1 %4599, %v4255_v55   ;;  %v472_v56 = vand.u32 8388607, %v5647_v14 }
 0x14b   : > { %v4189_v46 = vand.u32 2147483647, %v4188_v31  ;;  %v479_v31 = vand.u32 31, %v477_v15  ;;  %v473_v7 = vor.u32 8388608, %v472_v56  ;;  %v778_v56 = vand.u32 2139095040, %v5656_v32 }
 0x14d   : > { %v4192_v21 = vmul.f32 %v4191_v63, %v4189_v46  ;;  %v480_v23 = vsub.s32 32, %v479_v31  ;;  %v482_v43 = vshll.u32 %v7090_v45, %v479_v31  ;;  %v485_v36 = vshll.u32 %v7086_v47, %v479_v31 }
 0x14e   : > { %v491_v40 = vshll.u32 %v7080_v51, %v479_v31 }
 0x14f   : > { %v4193_v19 = vxor.u32 2147483648, %v4192_v21  ;;  %v483_v44 = vshrl.u32 %v7086_v47, %v480_v23  ;;  %v486_v10 = vshrl.u32 %v7082_v49, %v480_v23  ;;  %v489_v16 = vshrl.u32 %v7080_v51, %v480_v23 }
 0x150   : > { %v495_v55 = vshrl.u32 %v7078_v62, %v480_v23 }
 0x151   : > { %v4194_v61 = vsel %vm4073_vm10, %v4193_v19, %v4192_v21  ;;  %4379 = vperm.xlu2 %4600, %v4253_v18   ;;  %v5658_v21 = vshrl.u32 %v477_v15, 5  ;;  %v494_v18 = vshll.u32 %v7084_v53, %v479_v31  ;;  %v487_v34 = vor.u32 %v486_v10, %v485_v36 }
 0x152   : > { %v4197_v22 = vsel %vm5627_vm11, %v5459_v3, %v4194_v61  ;;  %v488_v3 = vshll.u32 %v7082_v49, %v479_v31  ;;  %v492_v61 = vshrl.u32 %v7084_v53, %v480_v23  ;;  %v302_v31 = vpop.permute.xlu0 %301 }
 0x153   : > { %v4199_v59 = vmul.f32 %v4197_v22, %v4197_v22  ;;  %vm497_vm1 = vcmp.lt.s32.totalorder %v5658_v21, 1  ;;  %vm500_vm2 = vcmp.lt.s32.totalorder %v5658_v21, 4  ;;  %vm499_vm3 = vcmp.lt.s32.totalorder %v5658_v21, 3 }
 0x154   : > { %vm498_vm4 = vcmp.lt.s32.totalorder %v5658_v21, 2 }
 0x155   : > { %v4200_v20 = vmul.f32 -0.001358992, %v4199_v59  ;;  %v4207_v30 = vmul.f32 -0.00019511016, %v4199_v59 }
 0x157   : > { %v4201_v26 = vadd.f32 0.041655596, %v4200_v20  ;;  %v4208_v28 = vadd.f32 0.008332121, %v4207_v30  ;;  %v490_v20 = vor.u32 %v489_v16, %v488_v3  ;;  %v493_v30 = vor.u32 %v492_v61, %v491_v40 }
 0x159   : > { %v4202_v39 = vmul.f32 %v4201_v26, %v4199_v59  ;;  %v4209_v33 = vmul.f32 %v4208_v28, %v4199_v59  ;;  %v496_v26 = vor.u32 %v495_v55, %v494_v18  ;;  %v5671_v28 = vshll.u32 %v473_v7, 8 }
 0x15a   : > { %v509_v37 = vsel %vm497_vm1, %v487_v34, %v490_v20 }
 0x15b   : > { %v4203_v12 = vadd.f32 -0.4999988, %v4202_v39  ;;  %v4210_v1 = vadd.f32 -0.16666654, %v4209_v33  ;;  %v506_v33 = vsel %vm500_vm2, %v493_v30, 920167782 }
 0x15c   : > { %v507_v25 = vsel %vm499_vm3, %v490_v20, %v506_v33  ;;  %v515_v15 = vshrl.u32 %v5671_v28, 16 }
 0x15d   : > { %v4204_v48 = vmul.f32 %v4203_v12, %v4199_v59  ;;  %v4211_v54 = vmul.f32 %v4210_v1, %v4199_v59  ;;  %v510_v12 = vsel %vm500_vm2, %v496_v26, 1326507024  ;;  %v317_v1 = vpop.permute.xlu2 %316 }
 0x15e   : > { %v5695_v27 = vmul.f32 %v5617_v60, %v317_v1 }
 0x15f   : > { %v4205_v58 = vadd.f32 1.0, %v4204_v48  ;;  %v4212_v8 = vadd.f32 1.0, %v4211_v54  ;;  %v511_v48 = vsel %vm499_vm3, %v493_v30, %v510_v12  ;;  %v327_v12 = vpop.permute.xlu0 %326 }
 0x161   : > { %v4213_v9 = vmul.f32 %v4212_v8, %v4197_v22  ;;  %v4221_v6 = vxor.u32 2147483648, %v4205_v58  ;;  %v484_v22 = vor.u32 %v483_v44, %v482_v43  ;;  %v514_v8 = vand.u32 65535, %v5671_v28 }
 0x163   : > { %v4218_v63 = vxor.u32 2147483648, %v4213_v9  ;;  %v4222_v17 = vsel %vm4220_vm13, %v4221_v6, %v4213_v9  ;;  %v505_v39 = vsel %vm497_vm1, %v484_v22, %v487_v34 }
 0x164   : > { %v508_v54 = vsel %vm498_vm4, %v505_v39, %v507_v25 }
 0x165   : > { %v4219_v46 = vsel %vm4217_vm14, %v4205_v58, %v4218_v63  ;;  %v512_v58 = vsel %vm498_vm4, %v509_v37, %v511_v48  ;;  %v538_v9 = vand.u32 65535, %v508_v54  ;;  %v539_v6 = vshrl.u32 %v508_v54, 16 }
 0x166   : > { %v4223_v50 = vsel %vm4216_vm15, %v4219_v46, %v4222_v17  ;;  %v516_v38 = vand.u32 65535, %v512_v58  ;;  %v517_v13 = vshrl.u32 %v512_v58, 16  ;;  %v481_v63 = vshrl.u32 %v7090_v45, %v480_v23 }
 0x167   : > { %v4224_v19 = vsel %vm4214_vm0, nan, %v4223_v50  ;;  %v502_v17 = vsel %vm500_vm2, %v490_v20, 2102212464  ;;  %v4254_v46 = vmul.f32 0.5, %v4578_v5  ;;  %v541_v42 = vmul.u32 %v539_v6, %v514_v8 }
 0x168   : > { %v4232_v35 = vmul.f32 3.0, %v4224_v19  ;;  %4326 = vperm.xlu0 %4598, %v4224_v19   ;;  %v519_v11 = vmul.u32 %v517_v13, %v514_v8  ;;  %v520_v2 = vmul.u32 %v516_v38, %v515_v15  ;;  %v542_v7 = vmul.u32 %v538_v9, %v515_v15 }
 0x169   : > { %v940_v50 = vadd.s32 1, %v4510_v57  ;;  %v501_v43 = vsel %vm497_vm1, %v481_v63, %v484_v22  ;;  %v518_v36 = vmul.u32 %v516_v38, %v514_v8  ;;  %v503_v44 = vsel %vm499_vm3, %v487_v34, %v502_v17  ;;  %v5711_v34 = vpop.eup %4605 }
 0x16a   : > { %v4240_v59 = vmul.f32 %v4232_v35, %v4224_v19  ;;  %v522_v19 = vshll.u32 %v519_v11, 16  ;;  %v521_v23 = vmul.u32 %v517_v13, %v515_v15  ;;  %v540_v3 = vmul.u32 %v538_v9, %v514_v8 }
 0x16b   : > { %v544_v40 = vshll.u32 %v541_v42, 16  ;;  %v524_v35 = vshll.u32 %v520_v2, 16  ;;  %v543_v16 = vmul.u32 %v539_v6, %v515_v15  ;;  %vm941_vm7 = vcmp.gt.s32.totalorder %v940_v50, 0 }
 0x16c   : > { %v4580_v41 = vadd.f32 -1.0, %v4240_v59  ;;  %vm526_vm5 = vc.u32 %v518_v36, %v522_v19  ;;  %v528_v10 = vadd.s32 %v522_v19, %v518_v36  ;;  %v5709_v59 = vand.u32 2147483647, %v5644_v29 }
 0x16d   : > { %v527_v61 = vsel %vm526_vm5, 1, %v7088_v0  ;;  %vm548_vm6 = vc.u32 %v540_v3, %v544_v40  ;;  %v550_v18 = vadd.s32 %v544_v40, %v540_v3  ;;  %v5715_v5 = vmul.f32 %v5617_v60, %v302_v31 }
 0x16e   : > { %v4256_v24 = vmul.f32 0.5, %v4580_v41  ;;  %v529_v55 = vadd.s32 %v527_v61, %v521_v23  ;;  %vm530_vm9 = vc.u32 %v528_v10, %v524_v35  ;;  %v549_v22 = vsel %vm548_vm6, 1, %v7088_v0 }
 0x16f   : > { %v531_v20 = vsel %vm530_vm9, 1, %v7088_v0  ;;  %v551_v30 = vadd.s32 %v549_v22, %v543_v16  ;;  %v523_v26 = vshrl.u32 %v519_v11, 16  ;;  %v504_v39 = vsel %vm498_vm4, %v501_v43, %v503_v44 }
 0x170   : > { %4369 = vperm.xlu0 %4598, %v4251_v4   ;;  %4394 = vperm.xlu2 %4600, %v4256_v24   ;;  %v546_v4 = vshll.u32 %v542_v7, 16  ;;  %v533_v57 = vadd.s32 %v531_v20, %v529_v55  ;;  %v545_v33 = vshrl.u32 %v541_v42, 16  ;;  %v525_v1 = vshrl.u32 %v520_v2, 16 }
 0x171   : > { %v937_v25 = vand.u32 8388607, %v5709_v59  ;;  %v942_v48 = vsel %vm941_vm7, %v940_v50, 0  ;;  %v1088_v54 = vand.u32 2139095040, %v5695_v27  ;;  %v779_v58 = vshrl.u32 %v778_v56, 23 }
 0x172   : > { %vm552_vm8 = vc.u32 %v550_v18, %v546_v4  ;;  %v534_v24 = vadd.s32 %v533_v57, %v523_v26  ;;  %v547_v8 = vshrl.u32 %v542_v7, 16  ;;  %v623_v38 = vand.u32 2139095040, %v5715_v5 }
 0x173   : > { %v553_v41 = vsel %vm552_vm8, 1, %v7088_v0  ;;  %v5725_v9 = vadd.s32 %v550_v18, %v546_v4  ;;  %v944_v21 = vand.u32 31, %v942_v48  ;;  %v5728_v6 = vmul.f32 %v5617_v60, %v327_v12 }
 0x174   : > { %v555_v37 = vadd.s32 %v553_v41, %v551_v30  ;;  %v5723_v13 = vadd.s32 %v534_v24, %v525_v1  ;;  %v5732_v31 = vmul.f32 %v5711_v34, %v5620_v52  ;;  %v558_v17 = vmul.u32 %v5671_v28, %v504_v39 }
 0x175   : > { %v938_v56 = vor.u32 8388608, %v937_v25  ;;  %v5737_v11 = vshrl.u32 %v942_v48, 5  ;;  %v5739_v2 = vsub.s32 32, %v944_v21  ;;  %v947_v42 = vshll.u32 %v7090_v45, %v944_v21 }
 0x176   : > { %v556_v15 = vadd.s32 %v555_v37, %v545_v33  ;;  %vm560_vm10 = vc.u32 %v5723_v13, %v5725_v9  ;;  %v950_v60 = vshll.u32 %v7086_v47, %v944_v21  ;;  %v953_v7 = vshll.u32 %v7082_v49, %v944_v21 }
 0x177   : > { %v948_v50 = vshrl.u32 %v7086_v47, %v5739_v2  ;;  %v951_v28 = vshrl.u32 %v7082_v49, %v5739_v2  ;;  %v954_v43 = vshrl.u32 %v7080_v51, %v5739_v2  ;;  %v956_v36 = vshll.u32 %v7080_v51, %v944_v21 }
 0x178   : > { %4384 = vperm.xlu0 %4598, %v4254_v46   ;;  %v557_v63 = vadd.s32 %v556_v15, %v547_v8  ;;  %v957_v44 = vshrl.u32 %v7084_v53, %v5739_v2  ;;  %v959_v23 = vshll.u32 %v7084_v53, %v944_v21  ;;  %v960_v3 = vshrl.u32 %v7078_v62, %v5739_v2 }
 0x179   : > { %v1398_v40 = vand.u32 2139095040, %v5728_v6  ;;  %v5757_v10 = vor.u32 %v951_v28, %v950_v60  ;;  %v5759_v16 = vor.u32 %v954_v43, %v953_v7  ;;  %v624_v61 = vshrl.u32 %v623_v38, 23 }
 0x17a   : > { %v561_v46 = vadd.s32 1, %v557_v63  ;;  %v5761_v4 = vor.u32 %v948_v50, %v947_v42  ;;  %v958_v18 = vor.u32 %v957_v44, %v956_v36  ;;  %v961_v55 = vor.u32 %v960_v3, %v959_v23 }
 0x17b   : > { %vm962_vm11 = vcmp.lt.s32.totalorder %v5737_v11, 1  ;;  %vm965_vm12 = vcmp.lt.s32.totalorder %v5737_v11, 4  ;;  %v5765_v20 = vshll.u32 %v938_v56, 8  ;;  %vm964_vm13 = vcmp.lt.s32.totalorder %v5737_v11, 3 }
 0x17c   : > { %v562_v19 = vsel %vm560_vm10, %v561_v46, %v557_v63  ;;  %v971_v30 = vsel %vm965_vm12, %v958_v18, 920167782  ;;  %v974_v26 = vsel %vm962_vm11, %v5757_v10, %v5759_v16  ;;  %v975_v57 = vsel %vm965_vm12, %v961_v55, 1326507024 }
 0x17d   : > { %v563_v35 = vadd.s32 %v562_v19, %v558_v17  ;;  %v1399_v41 = vshrl.u32 %v1398_v40, 23  ;;  %vm963_vm14 = vcmp.lt.s32.totalorder %v5737_v11, 2  ;;  %v976_v33 = vsel %vm964_vm13, %v958_v18, %v975_v57 }
 0x17e   : > { %v4504_v37 = vadd.s32 4294967169, %v624_v61  ;;  %v970_v12 = vsel %vm962_vm11, %v5761_v4, %v5757_v10  ;;  %v972_v1 = vsel %vm964_vm13, %v5759_v16, %v971_v30  ;;  %v977_v24 = vsel %vm963_vm14, %v974_v26, %v976_v33 }
 0x17f   : > { %v564_v22 = vadd.s32 536870912, %v563_v35  ;;  %v979_v48 = vand.u32 65535, %v5765_v20  ;;  %v981_v8 = vand.u32 65535, %v977_v24  ;;  %v982_v15 = vshrl.u32 %v977_v24, 16 }
 0x180   : > { %v356_v38 = vand.u32 2147483648, %v5620_v52  ;;  %v980_v21 = vshrl.u32 %v5765_v20, 16  ;;  %v4519_v63 = vadd.s32 4294967169, %v1399_v41  ;;  %v973_v56 = vsel %vm963_vm14, %v970_v12, %v972_v1 }
 0x181   : > { %v5776_v39 = vshrl.u32 %v564_v22, 30  ;;  %v984_v46 = vmul.u32 %v982_v15, %v979_v48  ;;  %v5798_v42 = vshrl.u32 %v1088_v54, 23  ;;  %v5800_v60 = vadd.s32 4294967169, %v779_v58 }
 0x182   : > { %v5802_v7 = vmul.u32 %v981_v8, %v980_v21  ;;  %v630_v50 = vadd.s32 1, %v4504_v37  ;;  %v347_v28 = vsub.f32 1.0, %v5732_v31  ;;  %v5807_v36 = vor.u32 1.1754944e-38, %v356_v38 }
 0x183   : > { %v566_v25 = vshll.u32 %v5776_v39, 30  ;;  %v983_v19 = vmul.u32 %v981_v8, %v979_v48  ;;  %v987_v44 = vshll.u32 %v984_v46, 16  ;;  %v1004_v23 = vshrl.u32 %v973_v56, 16 }
 0x184   : > { %v5809_v3 = vadd.s32 1, %v4519_v63  ;;  %v986_v58 = vmul.u32 %v982_v15, %v980_v21  ;;  %v1003_v40 = vand.u32 65535, %v973_v56  ;;  %v989_v61 = vshll.u32 %v5802_v7, 16  ;;  %v5829_v56 = vpop.eup %4607 }
 0x185   : > { %v5794_v17 = vsub.s32 %v563_v35, %v566_v25  ;;  %vm991_vm0 = vc.u32 %v983_v19, %v987_v44  ;;  %v993_v31 = vadd.s32 %v987_v44, %v983_v19  ;;  %vm631_vm1 = vcmp.gt.s32.totalorder %v630_v50, 0 }
 0x186   : > { %v348_v18 = vmul.f32 %v5711_v34, %v347_v28  ;;  %v992_v55 = vsel %vm991_vm0, 1, %v7088_v0  ;;  %v1006_v26 = vmul.u32 %v1004_v23, %v979_v48  ;;  %vm1406_vm3 = vcmp.gt.s32.totalorder %v5809_v3, 0 }
 0x187   : > { %vm568_vm15 = vcmp.lt.s32.totalorder %v5794_v17, 0  ;;  %v569_v43 = vsub.s32 0, %v5794_v17  ;;  %v994_v30 = vadd.s32 %v992_v55, %v986_v58  ;;  %vm995_vm2 = vc.u32 %v993_v31, %v989_v61 }
 0x188   : > { %vm351_vm4 = vweird.f32 %v5711_v34  ;;  %vm467_vm5 = vcmp.lt.s32.totalorder %v5620_v52, 0  ;;  %v559_v57 = vadd.s32 %v5725_v9, %v5723_v13  ;;  %v996_v41 = vsel %vm995_vm2, 1, %v7088_v0 }
 0x189   : > { %v570_v54 = vsel %vm568_vm15, %v569_v43, %v5794_v17  ;;  %v1007_v33 = vmul.u32 %v1003_v40, %v980_v21  ;;  %v946_v37 = vshrl.u32 %v7090_v45, %v5739_v2  ;;  %v998_v12 = vadd.s32 %v996_v41, %v994_v30 }
 0x18a   : > { %v571_v35 = vclz %v570_v54  ;;  %v1009_v1 = vshll.u32 %v1006_v26, 16  ;;  %vm350_vm9 = vweird.f32 %v5620_v52  ;;  %v589_v25 = vsub.s32 4, %v5776_v39 }
 0x18b   : > { %v967_v8 = vsel %vm965_vm12, %v5759_v16, 2102212464  ;;  %v1005_v15 = vmul.u32 %v1003_v40, %v979_v48  ;;  %v988_v38 = vshrl.u32 %v984_v46, 16  ;;  %v1008_v63 = vmul.u32 %v1004_v23, %v980_v21  ;;  %vm5864_vm12 = vmor %vm350_vm9, %vm351_vm4 }
 0x18c   : > { %v4502_v22 = vadd.s32 4294967294, %v571_v35  ;;  %v1011_v28 = vshll.u32 %v1007_v33, 16  ;;  %vm466_vm8 = vcmp.le.f32.partialorder %v5647_v14, 0.7853982  ;;  %v966_v16 = vsel %vm962_vm11, %v946_v37, %v5761_v4 }
 0x18d   : > { %vm1013_vm7 = vc.u32 %v1005_v15, %v1009_v1  ;;  %v1015_v43 = vadd.s32 %v1009_v1, %v1005_v15  ;;  %v999_v54 = vadd.s32 %v998_v12, %v988_v38  ;;  %v968_v48 = vsel %vm964_vm13, %v5757_v10, %v967_v8 }
 0x18e   : > { %vm4503_vm6 = vcmp.lt.s32.totalorder %v4502_v22, 0  ;;  %v1014_v58 = vsel %vm1013_vm7, 1, %v7088_v0  ;;  %v990_v23 = vshrl.u32 %v5802_v7, 16  ;;  %v5843_v35 = vsel %vm631_vm1, %v630_v50, 0 }
 0x18f   : > { %v574_v24 = vsel %vm4503_vm6, 0, %v4502_v22  ;;  %v1016_v21 = vadd.s32 %v1014_v58, %v1008_v63  ;;  %vm1017_vm10 = vc.u32 %v1015_v43, %v1011_v28  ;;  %v349_v61 = vadd.f32 %v5711_v34, %v348_v18 }
 0x190   : > { %v575_v13 = vsub.s32 32, %v574_v24  ;;  %v579_v9 = vsub.s32 4294967266, %v574_v24  ;;  %v576_v2 = vshll.u32 %v5794_v17, %v574_v24  ;;  %v1018_v40 = vsel %vm1017_vm10, 1, %v7088_v0 }
 0x191   : > { %v1010_v31 = vshrl.u32 %v1006_v26, 16  ;;  %v1020_v55 = vadd.s32 %v1018_v40, %v1016_v21  ;;  %vm355_vm11 = vcmp.eq.f32.partialorder %v5647_v14, 8.507059e+37  ;;  %v590_v10 = vsel %vm467_vm5, %v589_v25, %v5776_v39 }
 0x192   : > { %v577_v19 = vshrl.u32 %v559_v57, %v575_v13  ;;  %v580_v44 = vadd.s32 127, %v579_v9  ;;  %v969_v22 = vsel %vm963_vm14, %v966_v16, %v968_v48  ;;  %v5852_v7 = vadd.s32 %v999_v54, %v990_v23 }
 0x193   : > { %v1012_v30 = vshrl.u32 %v1007_v33, 16  ;;  %v1021_v57 = vadd.s32 %v1020_v55, %v1010_v31  ;;  %v5855_v50 = vand.u32 2147483647, %v5728_v6  ;;  %v1407_v18 = vsel %vm1406_vm3, %v5809_v3, 0 }
 0x194   : > { %v578_v17 = vor.u32 %v577_v19, %v576_v2  ;;  %v581_v46 = vshll.u32 %v580_v44, 23  ;;  %v5868_v41 = vadd.s32 %v1015_v43, %v1011_v28  ;;  %v1409_v33 = vand.u32 31, %v1407_v18 }
 0x195   : > { %v5871_v37 = vand.u32 31, %v5843_v35  ;;  %4609 = vrcp.f32 %v5728_v6  ;;  %v353_v3 = vsel %vm5864_vm12, %v5711_v34, %v349_v61  ;;  %v1022_v12 = vadd.s32 %v1021_v57, %v1012_v30 }
 0x196   : > { %v582_v4 = vor.u32 4788187, %v581_v46  ;;  %v585_v26 = vcvt.s32.f32 %v578_v17  ;;  %v5879_v24 = vmul.f32 %v5829_v56, %v5644_v29  ;;  %vm1025_vm13 = vc.u32 %v5852_v7, %v5868_v41 }
 0x197   : > { %v5883_v25 = vsub.s32 32, %v1409_v33  ;;  %v592_v8 = vsel %vm466_vm8, 0, %v590_v10  ;;  %v1023_v15 = vmul.u32 %v5765_v20, %v969_v22  ;;  %v1026_v13 = vadd.s32 1, %v1022_v12 }
 0x198   : > { %v583_v11 = vand.u32 2147483647, %v582_v4  ;;  %v1402_v9 = vand.u32 8388607, %v5855_v50  ;;  %v5889_v38 = vshrl.u32 %v1407_v18, 5  ;;  %v1424_v2 = vshll.u32 %v7084_v53, %v1409_v33 }
 0x199   : > { %v1416_v63 = vshrl.u32 %v7082_v49, %v5883_v25  ;;  %v1027_v28 = vsel %vm1025_vm13, %v1026_v13, %v1022_v12  ;;  %v1419_v43 = vshrl.u32 %v7080_v51, %v5883_v25  ;;  %v1422_v19 = vshrl.u32 %v7084_v53, %v5883_v25 }
 0x19a   : > { %v586_v1 = vmul.f32 %v585_v26, %v583_v11  ;;  %v1425_v20 = vshrl.u32 %v7078_v62, %v5883_v25  ;;  %v1028_v54 = vadd.s32 %v1027_v28, %v1023_v15  ;;  %v1415_v58 = vshll.u32 %v7086_v47, %v1409_v33 }
 0x19b   : > { %v1418_v16 = vshll.u32 %v7082_v49, %v1409_v33  ;;  %v5904_v48 = vpop.eup %4609  ;;  %v5909_v21 = vsel %vm355_vm11, %v5807_v36, %v353_v3  ;;  %v1421_v46 = vshll.u32 %v7080_v51, %v1409_v33  ;;  %v609_v4 = vadd.s32 3, %v592_v8 }
 0x19c   : > { %v587_v34 = vxor.u32 2147483648, %v586_v1  ;;  %v1426_v23 = vor.u32 %v1425_v20, %v1424_v2  ;;  %v1029_v61 = vadd.s32 536870912, %v1028_v54  ;;  %v5915_v31 = vor.u32 %v1416_v63, %v1415_v58 }
 0x19d   : > { %v5917_v55 = vor.u32 %v1419_v43, %v1418_v16  ;;  %v392_v10 = vsub.f32 1.0, %v5879_v24  ;;  %v1403_v22 = vor.u32 8388608, %v1402_v9  ;;  %v1423_v30 = vor.u32 %v1422_v19, %v1421_v46 }
 0x19e   : > { %v588_v44 = vsel %vm467_vm5, %v587_v34, %v586_v1  ;;  %v5920_v18 = vshrl.u32 %v1029_v61, 30  ;;  %vm1430_vm14 = vcmp.lt.s32.totalorder %v5889_v38, 4  ;;  %v1413_v14 = vshrl.u32 %v7086_v47, %v5883_v25 }
 0x19f   : > { %v591_v17 = vsel %vm466_vm8, %v5620_v52, %v588_v44  ;;  %vm1427_vm15 = vcmp.lt.s32.totalorder %v5889_v38, 1  ;;  %vm1429_vm0 = vcmp.lt.s32.totalorder %v5889_v38, 3  ;;  %v1440_v39 = vsel %vm1430_vm14, %v1426_v23, 1326507024 }
 0x1a0   : > { %v593_v40 = vmul.f32 %v591_v17, %v591_v17  ;;  %v1031_v3 = vshll.u32 %v5920_v18, 30  ;;  %v1439_v12 = vsel %vm1427_vm15, %v5915_v31, %v5917_v55  ;;  %v610_v1 = vand.u32 3, %v609_v4 }
 0x1a1   : > { %v1849_v24 = vand.u32 3, %v592_v8  ;;  %v1412_v15 = vshll.u32 %v7090_v45, %v1409_v33  ;;  %v1441_v13 = vsel %vm1429_vm0, %v1423_v30, %v1440_v39  ;;  %vm1428_vm1 = vcmp.lt.s32.totalorder %v5889_v38, 2 }
 0x1a2   : > { %v594_v36 = vmul.f32 -0.001358992, %v593_v40  ;;  %v601_v57 = vmul.f32 -0.00019511016, %v593_v40  ;;  %v5937_v63 = vsub.s32 %v1028_v54, %v1031_v3  ;;  %v1436_v28 = vsel %vm1430_vm14, %v1423_v30, 920167782 }
 0x1a3   : > { %v5940_v2 = vor.u32 %v1413_v14, %v1412_v15  ;;  %v1442_v43 = vsel %vm1428_vm1, %v1439_v12, %v1441_v13  ;;  %v5946_v8 = vshll.u32 %v1403_v22, 8  ;;  %vm1851_vm3 = vcmp.eq.s32.totalorder %v1849_v24, 0 }
 0x1a4   : > { %v595_v11 = vadd.f32 0.041655596, %v594_v36  ;;  %v602_v26 = vadd.f32 0.008332121, %v601_v57  ;;  %vm1033_vm2 = vcmp.lt.s32.totalorder %v5937_v63, 0  ;;  %v1034_v20 = vsub.s32 0, %v5937_v63 }
 0x1a5   : > { %vm1854_vm4 = vcmp.eq.s32.totalorder %v1849_v24, 2  ;;  %v5951_v44 = vmul.f32 %v5829_v56, %v392_v10  ;;  %v401_v54 = vand.u32 2147483648, %v5644_v29  ;;  %vm611_vm5 = vcmp.lt.s32.totalorder %v610_v1, 2 }
 0x1a6   : > { %v596_v9 = vmul.f32 %v595_v11, %v593_v40  ;;  %v603_v34 = vmul.f32 %v602_v26, %v593_v40  ;;  %vm612_vm6 = vcmp.eq.s32.totalorder %v610_v1, 0  ;;  %vm1850_vm7 = vcmp.lt.s32.totalorder %v1849_v24, 2 }
 0x1a7   : > { %v1035_v46 = vsel %vm1033_vm2, %v1034_v20, %v5937_v63  ;;  %v1435_v61 = vsel %vm1427_vm15, %v5940_v2, %v5915_v31  ;;  %v1437_v4 = vsel %vm1429_vm0, %v5917_v55, %v1436_v28  ;;  %v1446_v10 = vand.u32 65535, %v1442_v43 }
 0x1a8   : > { %v597_v33 = vadd.f32 -0.4999988, %v596_v9  ;;  %v604_v19 = vadd.f32 -0.16666654, %v603_v34  ;;  %v1036_v23 = vclz %v1035_v46  ;;  %v1447_v36 = vshrl.u32 %v1442_v43, 16 }
 0x1a9   : > { %vm615_vm8 = vcmp.eq.s32.totalorder %v610_v1, 2  ;;  %v1024_v57 = vadd.s32 %v5868_v41, %v5852_v7  ;;  %v1411_v39 = vshrl.u32 %v7090_v45, %v5883_v25  ;;  %v1445_v3 = vshrl.u32 %v5946_v8, 16 }
 0x1aa   : > { %v598_v58 = vmul.f32 %v597_v33, %v593_v40  ;;  %v605_v16 = vmul.f32 %v604_v19, %v593_v40  ;;  %v1444_v40 = vand.u32 65535, %v5946_v8  ;;  %v4511_v14 = vadd.s32 4294967294, %v1036_v23 }
 0x1ab   : > { %v1054_v15 = vsub.s32 4, %v5920_v18  ;;  %v1438_v13 = vsel %vm1428_vm1, %v1435_v61, %v1437_v4  ;;  %v5973_v7 = vmul.u32 %v1446_v10, %v1445_v3  ;;  %v1451_v41 = vmul.u32 %v1447_v36, %v1445_v3 }
 0x1ac   : > { %v599_v22 = vadd.f32 1.0, %v598_v58  ;;  %v606_v30 = vadd.f32 1.0, %v605_v16  ;;  %v5968_v12 = vmul.u32 %v1447_v36, %v1444_v40  ;;  %vm4512_vm10 = vcmp.lt.s32.totalorder %v4511_v14, 0 }
 0x1ad   : > { %v1448_v9 = vmul.u32 %v1446_v10, %v1444_v40  ;;  %v1039_v28 = vsel %vm4512_vm10, 0, %v4511_v14  ;;  %v5983_v10 = vpop.permute.xlu2 %321  ;;  %v1454_v36 = vshll.u32 %v5973_v7, 16  ;;  %v1468_v14 = vand.u32 65535, %v1438_v13 }
 0x1ae   : > { %v607_v11 = vmul.f32 %v606_v30, %v591_v17  ;;  %v616_v26 = vxor.u32 2147483648, %v599_v22  ;;  %v1040_v17 = vsub.s32 32, %v1039_v28  ;;  %v1044_v43 = vsub.s32 4294967266, %v1039_v28 }
 0x1af   : > { %v1452_v33 = vshll.u32 %v5968_v12, 16  ;;  %v1041_v16 = vshll.u32 %v5937_v63, %v1039_v28  ;;  %vm931_vm12 = vcmp.le.f32.partialorder %v5709_v59, 0.7853982  ;;  %vm932_vm13 = vcmp.lt.s32.totalorder %v5644_v29, 0 }
 0x1b0   : > { %v613_v34 = vxor.u32 2147483648, %v607_v11  ;;  %v617_v25 = vsel %vm615_vm8, %v616_v26, %v607_v11  ;;  %v1856_v58 = vsel %vm1854_vm4, %v616_v26, %v607_v11  ;;  %v1042_v61 = vshrl.u32 %v1024_v57, %v1040_v17 }
 0x1b1   : > { %v1045_v4 = vadd.s32 127, %v1044_v43  ;;  %vm1456_vm11 = vc.u32 %v1448_v9, %v1452_v33  ;;  %v1458_v11 = vadd.s32 %v1452_v33, %v1448_v9  ;;  %v1431_v17 = vsel %vm1427_vm15, %v1411_v39, %v5940_v2  ;;  %v6003_v43 = vld [vmem:[%s7074_s3] ss:$0 sm:$0xff] }
 0x1b2   : > { %v614_v19 = vsel %vm612_vm6, %v599_v22, %v613_v34  ;;  %v1853_v20 = vsel %vm1851_vm3, %v599_v22, %v613_v34  ;;  %v1043_v1 = vor.u32 %v1042_v61, %v1041_v16  ;;  %v1457_v24 = vsel %vm1456_vm11, 1, %v7088_v0 }
 0x1b3   : > { %v618_v46 = vsel %vm611_vm5, %v614_v19, %v617_v25  ;;  %v1857_v23 = vsel %vm1850_vm7, %v1853_v20, %v1856_v58  ;;  %v1046_v63 = vshll.u32 %v1045_v4, 23  ;;  %v1459_v26 = vadd.s32 %v1457_v24, %v1451_v41  ;;  %v6012_v41 = vld [vmem:[%s7075_s4] ss:$0 sm:$0xff] }
 0x1b4   : > { %v619_v30 = vsel %vm350_vm9, nan, %v618_v46  ;;  %v1858_v57 = vsel %vm350_vm9, nan, %v1857_v23  ;;  %v1469_v34 = vshrl.u32 %v1438_v13, 16  ;;  %vm396_vm2 = vweird.f32 %v5829_v56 }
 0x1b5   : > { %v5989_v22 = vmul.f32 %v619_v30, %v5909_v21  ;;  %v1047_v25 = vor.u32 4788187, %v1046_v63  ;;  %v1432_v52 = vsel %vm1430_vm14, %v5917_v55, 2102212464  ;;  %vm1460_vm9 = vc.u32 %v1458_v11, %v1454_v36  ;;  %v4292_v30 = vpop.permute.xlu2 %4291 }
 0x1b6   : > { %v1471_v13 = vmul.u32 %v1469_v34, %v1444_v40  ;;  %v1472_v9 = vmul.u32 %v1468_v14, %v1445_v3  ;;  %v1050_v33 = vcvt.s32.f32 %v1043_v1  ;;  %v1461_v19 = vsel %vm1460_vm9, 1, %v7088_v0 }
 0x1b7   : > { %v2945_v28 = vsub.f32 %v5989_v22, %v1858_v57  ;;  %v1048_v39 = vand.u32 2147483647, %v1047_v25  ;;  %v1055_v20 = vsel %vm932_vm13, %v1054_v15, %v5920_v18  ;;  %v1463_v55 = vadd.s32 %v1461_v19, %v1459_v26 }
 0x1b8   : > { %v1470_v58 = vmul.u32 %v1468_v14, %v1444_v40  ;;  %v1474_v16 = vshll.u32 %v1471_v13, 16  ;;  %v4261_v46 = vmul.f32 %v6003_v43, %v5989_v22  ;;  %v1453_v4 = vshrl.u32 %v5968_v12, 16 }
 0x1b9   : > { %v6015_v2 = vmul.f32 %v2945_v28, %v5909_v21  ;;  %v1051_v61 = vmul.f32 %v1050_v33, %v1048_v39  ;;  %v1473_v36 = vmul.u32 %v1469_v34, %v1445_v3  ;;  %v1476_v1 = vshll.u32 %v1472_v9, 16 }
 0x1ba   : > { %vm1478_vm14 = vc.u32 %v1470_v58, %v1474_v16  ;;  %v1480_v63 = vadd.s32 %v1474_v16, %v1470_v58  ;;  %v1464_v18 = vadd.s32 %v1463_v55, %v1453_v4  ;;  %v1057_v15 = vsel %vm931_vm12, 0, %v1055_v20 }
 0x1bb   : > { %v4281_v23 = vmul.f32 %v6012_v41, %v6015_v2  ;;  %v1052_v57 = vxor.u32 2147483648, %v1051_v61  ;;  %v1479_v40 = vsel %vm1478_vm14, 1, %v7088_v0  ;;  %v1433_v14 = vsel %vm1429_vm0, %v5915_v31, %v1432_v52 }
 0x1bc   : > { %v1481_v11 = vadd.s32 %v1479_v40, %v1473_v36  ;;  %vm1482_vm15 = vc.u32 %v1480_v63, %v1476_v1  ;;  %v1455_v26 = vshrl.u32 %v5973_v7, 16  ;;  %v6040_v28 = vadd.f32 %v5829_v56, %v5951_v44 }
 0x1bd   : > { %v4329_v24 = vmul.f32 %v4292_v30, %v4281_v23  ;;  %v1053_v3 = vsel %vm932_vm13, %v1052_v57, %v1051_v61  ;;  %v1483_v34 = vsel %vm1482_vm15, 1, %v7088_v0  ;;  %v1475_v31 = vshrl.u32 %v1471_v13, 16 }
 0x1be   : > { %v6045_v25 = vsel %vm931_vm12, %v5644_v29, %v1053_v3  ;;  %v1485_v52 = vadd.s32 %v1483_v34, %v1481_v11  ;;  %vm395_vm0 = vweird.f32 %v5644_v29  ;;  %v1434_v7 = vsel %vm1428_vm1, %v1431_v17, %v1433_v14 }
 0x1bf   : > { %v6032_v12 = vadd.f32 %v4329_v24, %v4261_v46  ;;  %v1058_v39 = vmul.f32 %v6045_v25, %v6045_v25  ;;  %v6052_v33 = vadd.s32 %v1464_v18, %v1455_v26  ;;  %v1074_v19 = vadd.s32 3, %v1057_v15  ;;  %vm6061_vm3 = vmor %vm395_vm0, %vm396_vm2 }
 0x1c0   : > { %v1477_v44 = vshrl.u32 %v1472_v9, 16  ;;  %v1486_v20 = vadd.s32 %v1485_v52, %v1475_v31  ;;  %v6055_v55 = vand.u32 2147483647, %v5715_v5  ;;  %v6065_v38 = vadd.s32 %v1480_v63, %v1476_v1 }
 0x1c1   : > { %7107 = vst [vmem:[#allocation2_spill] sm:$0xff] %v6032_v12  ;;  %v1059_v58 = vmul.f32 -0.001358992, %v1058_v39  ;;  %v1066_v16 = vmul.f32 -0.00019511016, %v1058_v39  ;;  %v6068_v17 = vsub.s32 32, %v5871_v37  ;;  %v398_v46 = vsel %vm6061_vm3, %v5829_v56, %v6040_v28 }
 0x1c2   : > { %v6071_v9 = vshrl.u32 %v5843_v35, 5  ;;  %v6079_v23 = vor.u32 1.1754944e-38, %v401_v54  ;;  %v1487_v61 = vadd.s32 %v1486_v20, %v1477_v44  ;;  %v6081_v36 = vand.u32 3, %v1057_v15 }
 0x1c3   : > { %v1060_v4 = vadd.f32 0.041655596, %v1059_v58  ;;  %v1067_v30 = vadd.f32 0.008332121, %v1066_v16  ;;  %vm1490_vm1 = vc.u32 %v6052_v33, %v6065_v38  ;;  %v1075_v1 = vand.u32 3, %v1074_v19 }
 0x1c4   : > { %v6087_v35 = vmul.f32 %v5904_v48, %v5728_v6  ;;  %v1488_v63 = vmul.u32 %v5946_v8, %v1434_v7  ;;  %v1491_v24 = vadd.s32 1, %v1487_v61  ;;  %v627_v54 = vand.u32 8388607, %v6055_v55 }
 0x1c5   : > { %v1061_v57 = vmul.f32 %v1060_v4, %v1058_v39  ;;  %v1068_v18 = vmul.f32 %v1067_v30, %v1058_v39  ;;  %v638_v40 = vshrl.u32 %v7086_v47, %v6068_v17  ;;  %v641_v14 = vshrl.u32 %v7082_v49, %v6068_v17 }
 0x1c6   : > { %v1492_v15 = vsel %vm1490_vm1, %v1491_v24, %v1487_v61  ;;  %v644_v11 = vshrl.u32 %v7080_v51, %v6068_v17  ;;  %v647_v3 = vshrl.u32 %v7084_v53, %v6068_v17  ;;  %vm2316_vm4 = vcmp.eq.s32.totalorder %v6081_v36, 2 }
 0x1c7   : > { %v1062_v26 = vadd.f32 -0.4999988, %v1061_v57  ;;  %v1069_v8 = vadd.f32 -0.16666654, %v1068_v18  ;;  %v1493_v34 = vadd.s32 %v1492_v15, %v1488_v63  ;;  %v640_v31 = vshll.u32 %v7086_v47, %v5871_v37 }
 0x1c8   : > { %vm2313_vm5 = vcmp.eq.s32.totalorder %v6081_v36, 0  ;;  %v643_v52 = vshll.u32 %v7082_v49, %v5871_v37  ;;  %v646_v7 = vshll.u32 %v7080_v51, %v5871_v37  ;;  %v649_v19 = vshll.u32 %v7084_v53, %v5871_v37 }
 0x1c9   : > { %v650_v44 = vshrl.u32 %v7078_v62, %v6068_v17  ;;  %v1063_v20 = vmul.f32 %v1062_v26, %v1058_v39  ;;  %v1070_v58 = vmul.f32 %v1069_v8, %v1058_v39  ;;  %vm2312_vm6 = vcmp.lt.s32.totalorder %v6081_v36, 2 }
 0x1ca   : > { %v1494_v16 = vadd.s32 536870912, %v1493_v34  ;;  %v637_v61 = vshll.u32 %v7090_v45, %v5871_v37  ;;  %vm400_vm7 = vcmp.eq.f32.partialorder %v5709_v59, 8.507059e+37  ;;  %v6115_v4 = vor.u32 %v641_v14, %v640_v31 }
 0x1cb   : > { %v6117_v30 = vor.u32 %v644_v11, %v643_v52  ;;  %v648_v63 = vor.u32 %v647_v3, %v646_v7  ;;  %v651_v24 = vor.u32 %v650_v44, %v649_v19  ;;  %v1064_v57 = vadd.f32 1.0, %v1063_v20 }
 0x1cc   : > { %v1071_v18 = vadd.f32 1.0, %v1070_v58  ;;  %v6119_v15 = vshrl.u32 %v1494_v16, 30  ;;  %vm655_vm8 = vcmp.lt.s32.totalorder %v6071_v9, 4  ;;  %vm1076_vm10 = vcmp.lt.s32.totalorder %v1075_v1, 2 }
 0x1cd   : > { %vm1077_vm11 = vcmp.eq.s32.totalorder %v1075_v1, 0  ;;  %v6122_v39 = vor.u32 %v638_v40, %v637_v61  ;;  %v665_v37 = vsel %vm655_vm8, %v651_v24, 1326507024  ;;  %vm1080_vm12 = vcmp.eq.s32.totalorder %v1075_v1, 2 }
 0x1ce   : > { %v1072_v14 = vmul.f32 %v1071_v18, %v6045_v25  ;;  %v1081_v11 = vxor.u32 2147483648, %v1064_v57  ;;  %v1496_v3 = vshll.u32 %v6119_v15, 30  ;;  %v628_v26 = vor.u32 8388608, %v627_v54 }
 0x1cf   : > { %vm652_vm13 = vcmp.lt.s32.totalorder %v6071_v9, 1  ;;  %vm654_vm2 = vcmp.lt.s32.totalorder %v6071_v9, 3  ;;  %v661_v8 = vsel %vm655_vm8, %v648_v63, 920167782  ;;  %vm653_vm9 = vcmp.lt.s32.totalorder %v6071_v9, 2 }
 0x1d0   : > { %v1078_v31 = vxor.u32 2147483648, %v1072_v14  ;;  %v1497_v40 = vsub.s32 %v1493_v34, %v1496_v3  ;;  %v664_v52 = vsel %vm652_vm13, %v6115_v4, %v6117_v30  ;;  %v666_v25 = vsel %vm654_vm2, %v648_v63, %v665_v37 }
 0x1d1   : > { %v1082_v7 = vsel %vm1080_vm12, %v1081_v11, %v1072_v14  ;;  %v2318_v54 = vsel %vm2316_vm4, %v1081_v11, %v1072_v14  ;;  %v660_v19 = vsel %vm652_vm13, %v6122_v39, %v6115_v4  ;;  %v662_v61 = vsel %vm654_vm2, %v6117_v30, %v661_v8 }
 0x1d2   : > { %v1079_v34 = vsel %vm1077_vm11, %v1064_v57, %v1078_v31  ;;  %v2315_v44 = vsel %vm2313_vm5, %v1064_v57, %v1078_v31  ;;  %vm1498_vm14 = vcmp.lt.s32.totalorder %v1497_v40, 0  ;;  %v1499_v20 = vsub.s32 0, %v1497_v40 }
 0x1d3   : > { %v1083_v58 = vsel %vm1076_vm10, %v1079_v34, %v1082_v7  ;;  %v2319_v16 = vsel %vm2312_vm6, %v2315_v44, %v2318_v54  ;;  %v667_v63 = vsel %vm653_vm9, %v664_v52, %v666_v25  ;;  %v6164_v1 = vsel %vm400_vm7, %v6079_v23, %v398_v46  ;;  %v4307_v34 = vpop.permute.xlu2 %4306 }
 0x1d4   : > { %v1084_v36 = vsel %vm395_vm0, nan, %v1083_v58  ;;  %v1500_v24 = vsel %vm1498_vm14, %v1499_v20, %v1497_v40  ;;  %v6168_v57 = vshll.u32 %v628_v26, 8  ;;  %v2320_v13 = vsel %vm395_vm0, nan, %v2319_v16 }
 0x1d5   : > { %v6171_v18 = vmul.f32 %v1084_v36, %v6164_v1  ;;  %v1501_v37 = vclz %v1500_v24  ;;  %v663_v56 = vsel %vm653_vm9, %v660_v19, %v662_v61  ;;  %v671_v28 = vand.u32 65535, %v667_v63 }
 0x1d6   : > { %v672_v59 = vshrl.u32 %v667_v63, 16  ;;  %v6178_v46 = vadd.s32 4294967169, %v5798_v42  ;;  %v6181_v23 = vadd.s32 1, %v5800_v60  ;;  %v437_v3 = vsub.f32 1.0, %v6087_v35 }
 0x1d7   : > { %v2948_v14 = vsub.f32 %v6171_v18, %v2320_v13  ;;  %v4520_v11 = vadd.s32 4294967294, %v1501_v37  ;;  %v1489_v29 = vadd.s32 %v6065_v38, %v6052_v33  ;;  %v669_v26 = vand.u32 65535, %v6168_v57 }
 0x1d8   : > { %v670_v8 = vshrl.u32 %v6168_v57, 16  ;;  %v1519_v42 = vsub.s32 4, %v6119_v15  ;;  %v693_v60 = vand.u32 65535, %v663_v56  ;;  %v694_v54 = vshrl.u32 %v663_v56, 16 }
 0x1d9   : > { %v6190_v31 = vmul.f32 %v2948_v14, %v6164_v1  ;;  %vm4521_vm15 = vcmp.lt.s32.totalorder %v4520_v11, 0  ;;  %v674_v25 = vmul.u32 %v672_v59, %v669_v26  ;;  %v4264_v35 = vmul.f32 %v6003_v43, %v6171_v18 }
 0x1da   : > { %v1504_v52 = vsel %vm4521_vm15, 0, %v4520_v11  ;;  %v675_v7 = vmul.u32 %v671_v28, %v670_v8  ;;  %v673_v20 = vmul.u32 %v671_v28, %v669_v26  ;;  %v676_v58 = vmul.u32 %v672_v59, %v670_v8 }
 0x1db   : > { %v4284_v33 = vmul.f32 %v6012_v41, %v6190_v31  ;;  %v1505_v38 = vsub.s32 32, %v1504_v52  ;;  %v1509_v19 = vsub.s32 4294967266, %v1504_v52  ;;  %v1506_v44 = vshll.u32 %v1497_v40, %v1504_v52 }
 0x1dc   : > { %v677_v16 = vshll.u32 %v674_v25, 16  ;;  %v679_v24 = vshll.u32 %v675_v7, 16  ;;  %v696_v13 = vmul.u32 %v694_v54, %v669_v26  ;;  %v697_v56 = vmul.u32 %v693_v60, %v670_v8 }
 0x1dd   : > { %v4332_v61 = vmul.f32 %v4307_v34, %v4284_v33  ;;  %v1507_v63 = vshrl.u32 %v1489_v29, %v1505_v38  ;;  %v1510_v36 = vadd.s32 127, %v1509_v19  ;;  %v695_v40 = vmul.u32 %v693_v60, %v669_v26 }
 0x1de   : > { %vm681_vm0 = vc.u32 %v673_v20, %v677_v16  ;;  %v683_v37 = vadd.s32 %v677_v16, %v673_v20  ;;  %v699_v28 = vshll.u32 %v696_v13, 16  ;;  %vm1397_vm1 = vcmp.lt.s32.totalorder %v5728_v6, 0 }
 0x1df   : > { %v6197_v14 = vadd.f32 %v4332_v61, %v4264_v35  ;;  %v1508_v11 = vor.u32 %v1507_v63, %v1506_v44  ;;  %v1511_v62 = vshll.u32 %v1510_v36, 23  ;;  %v682_v51 = vsel %vm681_vm0, 1, %v7088_v0 }
 0x1e0   : > { %v684_v49 = vadd.s32 %v682_v51, %v676_v58  ;;  %vm685_vm3 = vc.u32 %v683_v37, %v679_v24  ;;  %v678_v29 = vshrl.u32 %v674_v25, 16  ;;  %v698_v19 = vmul.u32 %v694_v54, %v670_v8 }
 0x1e1   : > { %7110 = vst [vmem:[#allocation3_spill] sm:$0xff] %v6197_v14  ;;  %v1512_v59 = vor.u32 4788187, %v1511_v62  ;;  %v686_v52 = vsel %vm685_vm3, 1, %v7088_v0  ;;  %v1515_v33 = vcvt.s32.f32 %v1508_v11  ;;  %vm703_vm4 = vc.u32 %v695_v40, %v699_v28 }
 0x1e2   : > { %v688_v38 = vadd.s32 %v686_v52, %v684_v49  ;;  %v701_v34 = vshll.u32 %v697_v56, 16  ;;  %v704_v44 = vsel %vm703_vm4, 1, %v7088_v0  ;;  %v705_v20 = vadd.s32 %v699_v28, %v695_v40 }
 0x1e3   : > { %v1513_v35 = vand.u32 2147483647, %v1512_v59  ;;  %4611 = vrcp.f32 %v5715_v5  ;;  %v1520_v51 = vsel %vm1397_vm1, %v1519_v42, %v6119_v15  ;;  %v706_v62 = vadd.s32 %v704_v44, %v698_v19 }
 0x1e4   : > { %v689_v26 = vadd.s32 %v688_v38, %v678_v29  ;;  %v438_v60 = vmul.f32 %v5904_v48, %v437_v3  ;;  %v657_v49 = vsel %vm655_vm8, %v6117_v30, 2102212464  ;;  %vm707_vm5 = vc.u32 %v705_v20, %v701_v34 }
 0x1e5   : > { %v1516_v25 = vmul.f32 %v1515_v33, %v1513_v35  ;;  %vm1396_vm6 = vcmp.le.f32.partialorder %v5855_v50, 0.7853982  ;;  %v636_v8 = vshrl.u32 %v7090_v45, %v6068_v17  ;;  %v680_v54 = vshrl.u32 %v675_v7, 16 }
 0x1e6   : > { %v708_v58 = vsel %vm707_vm5, 1, %v7088_v0  ;;  %v1522_v15 = vsel %vm1396_vm6, 0, %v1520_v51  ;;  %v700_v42 = vshrl.u32 %v696_v13, 16  ;;  %vm786_vm7 = vcmp.gt.s32.totalorder %v6181_v23, 0 }
 0x1e7   : > { %v1517_v16 = vxor.u32 2147483648, %v1516_v25  ;;  %v710_v3 = vadd.s32 %v708_v58, %v706_v62  ;;  %v656_v30 = vsel %vm652_vm13, %v636_v8, %v6122_v39  ;;  %v658_v61 = vsel %vm654_vm2, %v6115_v4, %v657_v49 }
 0x1e8   : > { %v6224_v17 = vadd.s32 %v689_v26, %v680_v54  ;;  %v6227_v7 = vadd.s32 1, %v6178_v46  ;;  %v702_v36 = vshrl.u32 %v697_v56, 16  ;;  %v6234_v13 = vadd.f32 %v5904_v48, %v438_v60 }
 0x1e9   : > { %v1518_v63 = vsel %vm1397_vm1, %v1517_v16, %v1516_v25  ;;  %v711_v24 = vadd.s32 %v710_v3, %v700_v42  ;;  %v6231_v37 = vpop.eup %4611  ;;  %v1539_v4 = vadd.s32 3, %v1522_v15  ;;  %v6241_v11 = vadd.s32 %v705_v20, %v701_v34 }
 0x1ea   : > { %v6239_v39 = vsel %vm1396_vm6, %v5728_v6, %v1518_v63  ;;  %v659_v56 = vsel %vm653_vm9, %v656_v30, %v658_v61  ;;  %v787_v28 = vsel %vm786_vm7, %v6181_v23, 0  ;;  %vm441_vm8 = vweird.f32 %v5904_v48 }
 0x1eb   : > { %v1523_v46 = vmul.f32 %v6239_v39, %v6239_v39  ;;  %v712_v40 = vadd.s32 %v711_v24, %v702_v36  ;;  %v446_v59 = vand.u32 2147483648, %v5728_v6  ;;  %vm715_vm10 = vc.u32 %v6224_v17, %v6241_v11 }
 0x1ec   : > { %v789_v29 = vand.u32 31, %v787_v28  ;;  %v6256_v38 = vmul.f32 %v6231_v37, %v5715_v5  ;;  %v6258_v19 = vand.u32 3, %v1539_v4  ;;  %v6260_v35 = vand.u32 3, %v1522_v15 }
 0x1ed   : > { %v1524_v52 = vmul.f32 -0.001358992, %v1523_v46  ;;  %v1531_v33 = vmul.f32 -0.00019511016, %v1523_v46  ;;  %v716_v9 = vadd.s32 1, %v712_v40  ;;  %v713_v23 = vmul.u32 %v6168_v57, %v659_v56 }
 0x1ee   : > { %v6263_v34 = vsub.s32 32, %v789_v29  ;;  %v6266_v26 = vand.u32 2147483647, %v5656_v32  ;;  %vm440_vm11 = vweird.f32 %v5728_v6  ;;  %v447_v57 = vor.u32 1.1754944e-38, %v446_v59 }
 0x1ef   : > { %v1525_v44 = vadd.f32 0.041655596, %v1524_v52  ;;  %v1532_v20 = vadd.f32 0.008332121, %v1531_v33  ;;  %v717_v51 = vsel %vm715_vm10, %v716_v9, %v712_v40  ;;  %vm6273_vm12 = vmor %vm440_vm11, %vm441_vm8  ;;  %v362_v8 = vsub.f32 1.0, %v6256_v38 }
 0x1f0   : > { %v718_v62 = vadd.s32 %v717_v51, %v713_v23  ;;  %v802_v58 = vshrl.u32 %v7084_v53, %v6263_v34  ;;  %vm1096_vm13 = vcmp.gt.s32.totalorder %v6227_v7, 0  ;;  %v443_v16 = vsel %vm6273_vm12, %v5904_v48, %v6234_v13 }
 0x1f1   : > { %v1526_v60 = vmul.f32 %v1525_v44, %v1523_v46  ;;  %v1533_v25 = vmul.f32 %v1532_v20, %v1523_v46  ;;  %vm1545_vm2 = vcmp.eq.s32.totalorder %v6258_v19, 2  ;;  %vm2778_vm9 = vcmp.eq.s32.totalorder %v6260_v35, 2 }
 0x1f2   : > { %v719_v54 = vadd.s32 536870912, %v718_v62  ;;  %v782_v3 = vand.u32 8388607, %v6266_v26  ;;  %vm1542_vm14 = vcmp.eq.s32.totalorder %v6258_v19, 0  ;;  %vm2775_vm15 = vcmp.eq.s32.totalorder %v6260_v35, 0 }
 0x1f3   : > { %v1527_v15 = vadd.f32 -0.4999988, %v1526_v60  ;;  %v1534_v42 = vadd.f32 -0.16666654, %v1533_v25  ;;  %v793_v61 = vshrl.u32 %v7086_v47, %v6263_v34  ;;  %v7113_v63 = vmov 2131351028  }
 0x1f4   : > { %v6290_v30 = vshrl.u32 %v719_v54, 30  ;;  %v796_v48 = vshrl.u32 %v7113_v63, %v6263_v34  ;;  %v7114_v36 = vmov 2102212464   ;;  %vm445_vm0 = vcmp.eq.f32.partialorder %v5855_v50, 8.507059e+37 }
 0x1f5   : > { %v801_v24 = vshll.u32 %v7114_v36, %v789_v29  ;;  %v1528_v13 = vmul.f32 %v1527_v15, %v1523_v46  ;;  %v1535_v4 = vmul.f32 %v1534_v42, %v1523_v46  ;;  %vm1541_vm3 = vcmp.lt.s32.totalorder %v6258_v19, 2 }
 0x1f6   : > { %vm2774_vm1 = vcmp.lt.s32.totalorder %v6260_v35, 2  ;;  %v6300_v56 = vshrl.u32 %v787_v28, 5  ;;  %v799_v40 = vshrl.u32 %v7114_v36, %v6263_v34  ;;  %v721_v59 = vshll.u32 %v6290_v30, 30 }
 0x1f7   : > { %v792_v52 = vshll.u32 %v7090_v45, %v789_v29  ;;  %v795_v33 = vshll.u32 %v7086_v47, %v789_v29  ;;  %v803_v38 = vor.u32 %v802_v58, %v801_v24  ;;  %v1529_v9 = vadd.f32 1.0, %v1528_v13 }
 0x1f8   : > { %v1536_v23 = vadd.f32 1.0, %v1535_v4  ;;  %v798_v46 = vshll.u32 %v7113_v63, %v789_v29  ;;  %v7115_v44 = vmov 1326507024   ;;  %v6310_v51 = vsub.s32 %v718_v62, %v721_v59 }
 0x1f9   : > { %v805_v20 = vshrl.u32 %v7115_v44, %v6263_v34  ;;  %v6312_v28 = vor.u32 %v793_v61, %v792_v52  ;;  %v6314_v60 = vor.u32 %v796_v48, %v795_v33  ;;  %v804_v25 = vshll.u32 %v7084_v53, %v789_v29 }
 0x1fa   : > { %v1537_v49 = vmul.f32 %v1536_v23, %v6239_v39  ;;  %v1546_v54 = vxor.u32 2147483648, %v1529_v9  ;;  %v6318_v15 = vor.u32 %v799_v40, %v798_v46  ;;  %vm810_vm4 = vcmp.lt.s32.totalorder %v6300_v56, 4 }
 0x1fb   : > { %vm723_vm5 = vcmp.lt.s32.totalorder %v6310_v51, 0  ;;  %v724_v58 = vsub.s32 0, %v6310_v51  ;;  %v783_v42 = vor.u32 8388608, %v782_v3  ;;  %v816_v62 = vsel %vm810_vm4, %v803_v38, 920167782 }
 0x1fc   : > { %v1543_v61 = vxor.u32 2147483648, %v1537_v49  ;;  %v806_v48 = vor.u32 %v805_v20, %v804_v25  ;;  %vm807_vm6 = vcmp.lt.s32.totalorder %v6300_v56, 1  ;;  %vm809_vm7 = vcmp.lt.s32.totalorder %v6300_v56, 3 }
 0x1fd   : > { %v1547_v39 = vsel %vm1545_vm2, %v1546_v54, %v1537_v49  ;;  %v2780_v29 = vsel %vm2778_vm9, %v1546_v54, %v1537_v49  ;;  %v725_v24 = vsel %vm723_vm5, %v724_v58, %v6310_v51  ;;  %v815_v3 = vsel %vm807_vm6, %v6312_v28, %v6314_v60 }
 0x1fe   : > { %v1544_v13 = vsel %vm1542_vm14, %v1529_v9, %v1543_v61  ;;  %v2777_v4 = vsel %vm2775_vm15, %v1529_v9, %v1543_v61  ;;  %v726_v40 = vclz %v725_v24  ;;  %v817_v59 = vsel %vm809_vm7, %v6318_v15, %v816_v62 }
 0x1ff   : > { %v6346_v52 = vsel %vm1096_vm13, %v6227_v7, 0  ;;  %v6350_v33 = vsel %vm445_vm0, %v447_v57, %v443_v16  ;;  %v1548_v23 = vsel %vm1541_vm3, %v1544_v13, %v1547_v39  ;;  %v2781_v9 = vsel %vm2774_vm1, %v2777_v4, %v2780_v29 }
 0x200   : > { %v1549_v46 = vsel %vm440_vm11, nan, %v1548_v23  ;;  %v6359_v20 = vmul.f32 %v6231_v37, %v362_v8  ;;  %v4505_v25 = vadd.s32 4294967294, %v726_v40  ;;  %vm808_vm8 = vcmp.lt.s32.totalorder %v6300_v56, 2  ;;  %v6448_v56 = vld [vmem:[%s7073_s2] ss:$0 sm:$0xff] }
 0x201   : > { %v6363_v7 = vmul.f32 %v1549_v46, %v6350_v33  ;;  %v818_v50 = vsel %vm808_vm8, %v815_v3, %v817_v59  ;;  %v819_v19 = vsel %vm807_vm6, %v6314_v60, %v6318_v15  ;;  %v820_v35 = vsel %vm810_vm4, %v806_v48, 1326507024 }
 0x202   : > { %v2782_v57 = vsel %vm440_vm11, nan, %v2781_v9  ;;  %vm4506_vm10 = vcmp.lt.s32.totalorder %v4505_v25, 0  ;;  %v821_v8 = vsel %vm809_vm7, %v803_v38, %v820_v35  ;;  %v6377_v16 = vshll.u32 %v783_v42, 8  ;;  %v4322_v9 = vpop.permute.xlu2 %4321 }
 0x203   : > { %v2951_v49 = vsub.f32 %v6363_v7, %v2782_v57  ;;  %v714_v54 = vadd.s32 %v6241_v11, %v6224_v17  ;;  %v729_v58 = vsel %vm4506_vm10, 0, %v4505_v25  ;;  %v822_v62 = vsel %vm808_vm8, %v819_v19, %v821_v8 }
 0x204   : > { %v730_v61 = vsub.s32 32, %v729_v58  ;;  %v734_v48 = vsub.s32 4294967266, %v729_v58  ;;  %v824_v6 = vand.u32 65535, %v6377_v16  ;;  %v848_v39 = vand.u32 65535, %v818_v50 }
 0x205   : > { %v6386_v29 = vmul.f32 %v2951_v49, %v6350_v33  ;;  %v825_v38 = vshrl.u32 %v6377_v16, 16  ;;  %v826_v42 = vand.u32 65535, %v822_v62  ;;  %v827_v24 = vshrl.u32 %v822_v62, 16 }
 0x206   : > { %v731_v3 = vshll.u32 %v6310_v51, %v729_v58  ;;  %v732_v13 = vshrl.u32 %v714_v54, %v730_v61  ;;  %v735_v17 = vadd.s32 127, %v734_v48  ;;  %v849_v11 = vshrl.u32 %v818_v50, 16 }
 0x207   : > { %v4287_v4 = vmul.f32 %v6012_v41, %v6386_v29  ;;  %vm622_vm11 = vcmp.lt.s32.totalorder %v5715_v5, 0  ;;  %v791_v40 = vshrl.u32 %v7090_v45, %v6263_v34  ;;  %v829_v59 = vmul.u32 %v827_v24, %v824_v6 }
 0x208   : > { %v830_v23 = vmul.u32 %v826_v42, %v825_v38  ;;  %v733_v46 = vor.u32 %v732_v13, %v731_v3  ;;  %v736_v25 = vshll.u32 %v735_v17, 23  ;;  %v744_v19 = vsub.s32 4, %v6290_v30 }
 0x209   : > { %v851_v35 = vmul.u32 %v849_v11, %v824_v6  ;;  %v4267_v51 = vmul.f32 %v6003_v43, %v6363_v7  ;;  %v4335_v50 = vmul.f32 %v4322_v9, %v4287_v4  ;;  %v828_v57 = vmul.u32 %v826_v42, %v824_v6 }
 0x20a   : > { %v832_v8 = vshll.u32 %v829_v59, 16  ;;  %vm621_vm12 = vcmp.le.f32.partialorder %v6055_v55, 0.7853982  ;;  %v737_v41 = vor.u32 4788187, %v736_v25  ;;  %v831_v49 = vmul.u32 %v827_v24, %v825_v38 }
 0x20b   : > { %v850_v54 = vmul.u32 %v848_v39, %v824_v6  ;;  %v852_v34 = vmul.u32 %v848_v39, %v825_v38  ;;  %v6399_v58 = vadd.f32 %v4335_v50, %v4267_v51  ;;  %v834_v62 = vshll.u32 %v830_v23, 16 }
 0x20c   : > { %vm836_vm13 = vc.u32 %v828_v57, %v832_v8  ;;  %v838_v61 = vadd.s32 %v832_v8, %v828_v57  ;;  %v738_v48 = vand.u32 2147483647, %v737_v41  ;;  %v740_v3 = vcvt.s32.f32 %v733_v46 }
 0x20d   : > { %7116 = vst [vmem:[#allocation4_spill] sm:$0xff] %v6399_v58  ;;  %v837_v13 = vsel %vm836_vm13, 1, %v7088_v0  ;;  %v854_v17 = vshll.u32 %v851_v35, 16  ;;  %v853_v42 = vmul.u32 %v849_v11, %v825_v38  ;;  %v856_v4 = vshll.u32 %v852_v34, 16 }
 0x20e   : > { %v839_v43 = vadd.s32 %v837_v13, %v831_v49  ;;  %vm840_vm2 = vc.u32 %v838_v61, %v834_v62  ;;  %v741_v9 = vmul.f32 %v740_v3, %v738_v48  ;;  %v812_v39 = vsel %vm810_vm4, %v6318_v15, 2102212464 }
 0x20f   : > { %v841_v25 = vsel %vm840_vm2, 1, %v7088_v0  ;;  %vm858_vm9 = vc.u32 %v850_v54, %v854_v17  ;;  %v860_v6 = vadd.s32 %v854_v17, %v850_v54  ;;  %v833_v24 = vshrl.u32 %v829_v59, 16 }
 0x210   : > { %v843_v51 = vadd.s32 %v841_v25, %v839_v43  ;;  %v859_v46 = vsel %vm858_vm9, 1, %v7088_v0  ;;  %v742_v50 = vxor.u32 2147483648, %v741_v9  ;;  %v745_v57 = vsel %vm622_vm11, %v744_v19, %v6290_v30 }
 0x211   : > { %v861_v38 = vadd.s32 %v859_v46, %v853_v42  ;;  %vm862_vm14 = vc.u32 %v860_v6, %v856_v4  ;;  %v811_v11 = vsel %vm807_vm6, %v791_v40, %v6312_v28  ;;  %v835_v8 = vshrl.u32 %v830_v23, 16 }
 0x212   : > { %v844_v41 = vadd.s32 %v843_v51, %v833_v24  ;;  %v863_v49 = vsel %vm862_vm14, 1, %v7088_v0  ;;  %v743_v15 = vsel %vm622_vm11, %v742_v50, %v741_v9  ;;  %v813_v59 = vsel %vm809_vm7, %v6314_v60, %v812_v39 }
 0x213   : > { %v855_v54 = vshrl.u32 %v851_v35, 16  ;;  %v865_v62 = vadd.s32 %v863_v49, %v861_v38  ;;  %v1099_v30 = vand.u32 31, %v6346_v52  ;;  %v746_v19 = vsel %vm621_vm12, %v5715_v5, %v743_v15 }
 0x214   : > { %v747_v28 = vsel %vm621_vm12, 0, %v745_v57  ;;  %v6425_v40 = vadd.s32 %v844_v41, %v835_v8  ;;  %v6429_v23 = vadd.f32 %v6231_v37, %v6359_v20  ;;  %v748_v61 = vmul.f32 %v746_v19, %v746_v19 }
 0x215   : > { %v857_v48 = vshrl.u32 %v852_v34, 16  ;;  %v866_v60 = vadd.s32 %v865_v62, %v855_v54  ;;  %vm366_vm15 = vweird.f32 %v6231_v37  ;;  %v371_v35 = vand.u32 2147483648, %v5715_v5 }
 0x216   : > { %v814_v3 = vsel %vm808_vm8, %v811_v11, %v813_v59  ;;  %v6435_v13 = vadd.s32 %v860_v6, %v856_v4  ;;  %v749_v17 = vmul.f32 -0.001358992, %v748_v61  ;;  %v756_v43 = vmul.f32 -0.00019511016, %v748_v61 }
 0x217   : > { %v764_v42 = vadd.s32 3, %v747_v28  ;;  %v867_v9 = vadd.s32 %v866_v60, %v857_v48  ;;  %v6438_v25 = vshrl.u32 %v6346_v52, 5  ;;  %vm365_vm0 = vweird.f32 %v5715_v5 }
 0x218   : > { %vm870_vm3 = vc.u32 %v6425_v40, %v6435_v13  ;;  %v6443_v20 = vsub.s32 32, %v1099_v30  ;;  %v6452_v34 = vmul.f32 %v6448_v56, %v5983_v10  ;;  %vm6456_vm1 = vmor %vm365_vm0, %vm366_vm15  ;;  %v750_v4 = vadd.f32 0.041655596, %v749_v17 }
 0x219   : > { %v757_v6 = vadd.f32 0.008332121, %v756_v43  ;;  %v871_v39 = vadd.s32 1, %v867_v9  ;;  %v368_v24 = vsel %vm6456_vm1, %v6231_v37, %v6429_v23  ;;  %v372_v51 = vor.u32 1.1754944e-38, %v371_v35 }
 0x21a   : > { %v2003_v46 = vand.u32 3, %v747_v28  ;;  %v868_v50 = vmul.u32 %v6377_v16, %v814_v3  ;;  %v751_v10 = vmul.f32 %v750_v4, %v748_v61  ;;  %v765_v38 = vand.u32 3, %v764_v42 }
 0x21b   : > { %v758_v57 = vmul.f32 %v757_v6, %v748_v61  ;;  %v872_v11 = vsel %vm870_vm3, %v871_v39, %v867_v9  ;;  %v1102_v41 = vshll.u32 %v7090_v45, %v1099_v30  ;;  %v1103_v49 = vshrl.u32 %v7086_v47, %v6443_v20 }
 0x21c   : > { %v873_v8 = vadd.s32 %v872_v11, %v868_v50  ;;  %v1105_v15 = vshll.u32 %v7086_v47, %v1099_v30  ;;  %v752_v59 = vadd.f32 -0.4999988, %v751_v10  ;;  %v1111_v37 = vshll.u32 %v7114_v36, %v1099_v30 }
 0x21d   : > { %v759_v54 = vadd.f32 -0.16666654, %v758_v57  ;;  %v1112_v62 = vshrl.u32 %v7084_v53, %v6443_v20  ;;  %v1106_v28 = vshrl.u32 %v7113_v63, %v6443_v20  ;;  %v1108_v23 = vshll.u32 %v7113_v63, %v1099_v30 }
 0x21e   : > { %v874_v16 = vadd.s32 536870912, %v873_v8  ;;  %v1109_v48 = vshrl.u32 %v7114_v36, %v6443_v20  ;;  %v753_v60 = vmul.f32 %v752_v59, %v748_v61  ;;  %vm2004_vm4 = vcmp.lt.s32.totalorder %v2003_v46, 2 }
 0x21f   : > { %v760_v35 = vmul.f32 %v759_v54, %v748_v61  ;;  %v1113_v3 = vor.u32 %v1112_v62, %v1111_v37  ;;  %v6480_v43 = vand.u32 2147483647, %v5695_v27  ;;  %v6482_v42 = vor.u32 %v1103_v49, %v1102_v41 }
 0x220   : > { %v6477_v17 = vshrl.u32 %v874_v16, 30  ;;  %v1114_v9 = vshll.u32 %v7084_v53, %v1099_v30  ;;  %v754_v52 = vadd.f32 1.0, %v753_v60  ;;  %v1115_v6 = vshrl.u32 %v7115_v44, %v6443_v20 }
 0x221   : > { %v761_v4 = vadd.f32 1.0, %v760_v35  ;;  %vm1120_vm5 = vcmp.lt.s32.totalorder %v6438_v25, 4  ;;  %v6489_v39 = vor.u32 %v1106_v28, %v1105_v15  ;;  %v6491_v50 = vor.u32 %v1109_v48, %v1108_v23 }
 0x222   : > { %v876_v61 = vshll.u32 %v6477_v17, 30  ;;  %vm1117_vm6 = vcmp.lt.s32.totalorder %v6438_v25, 1  ;;  %v771_v57 = vxor.u32 2147483648, %v754_v52  ;;  %vm1119_vm7 = vcmp.lt.s32.totalorder %v6438_v25, 3 }
 0x223   : > { %v762_v10 = vmul.f32 %v761_v4, %v746_v19  ;;  %v1126_v30 = vsel %vm1120_vm5, %v1113_v3, 920167782  ;;  %vm766_vm8 = vcmp.lt.s32.totalorder %v765_v38, 2  ;;  %vm2005_vm10 = vcmp.eq.s32.totalorder %v2003_v46, 0 }
 0x224   : > { %vm2008_vm11 = vcmp.eq.s32.totalorder %v2003_v46, 2  ;;  %v1092_v11 = vand.u32 8388607, %v6480_v43  ;;  %vm767_vm12 = vcmp.eq.s32.totalorder %v765_v38, 0  ;;  %vm770_vm13 = vcmp.eq.s32.totalorder %v765_v38, 2 }
 0x225   : > { %v768_v41 = vxor.u32 2147483648, %v762_v10  ;;  %v1116_v49 = vor.u32 %v1115_v6, %v1114_v9  ;;  %v6498_v15 = vsub.s32 %v873_v8, %v876_v61  ;;  %vm1118_vm2 = vcmp.lt.s32.totalorder %v6438_v25, 2 }
 0x226   : > { %v1125_v19 = vsel %vm1117_vm6, %v6482_v42, %v6489_v39  ;;  %v1127_v59 = vsel %vm1119_vm7, %v6491_v50, %v1126_v30  ;;  %v772_v37 = vsel %vm770_vm13, %v771_v57, %v762_v10  ;;  %v2010_v16 = vsel %vm2008_vm11, %v771_v57, %v762_v10 }
 0x227   : > { %v769_v54 = vsel %vm767_vm12, %v754_v52, %v768_v41  ;;  %v2007_v62 = vsel %vm2005_vm10, %v754_v52, %v768_v41  ;;  %vm370_vm9 = vcmp.eq.f32.partialorder %v6055_v55, 8.507059e+37  ;;  %v1093_v23 = vor.u32 8388608, %v1092_v11 }
 0x228   : > { %v773_v8 = vsel %vm766_vm8, %v769_v54, %v772_v37  ;;  %v2011_v28 = vsel %vm2004_vm4, %v2007_v62, %v2010_v16  ;;  %v373_v48 = vsel %vm370_vm9, %v372_v51, %v368_v24  ;;  %v1128_v9 = vsel %vm1118_vm2, %v1125_v19, %v1127_v59  ;;  %v332_v62 = vpop.permute.xlu1 %331 }
 0x229   : > { %v774_v60 = vsel %vm365_vm0, nan, %v773_v8  ;;  %v1129_v52 = vsel %vm1117_vm6, %v6489_v39, %v6491_v50  ;;  %v1243_v55 = vand.u32 2139095040, %v6452_v34  ;;  %v2012_v46 = vsel %vm365_vm0, nan, %v2011_v28 }
 0x22a   : > { %v6513_v35 = vmul.f32 %v774_v60, %v373_v48  ;;  %v879_v24 = vsub.s32 0, %v6498_v15  ;;  %v1130_v51 = vsel %vm1120_vm5, %v1116_v49, 1326507024  ;;  %vm878_vm14 = vcmp.lt.s32.totalorder %v6498_v15, 0 }
 0x22b   : > { %v1131_v4 = vsel %vm1119_vm7, %v1113_v3, %v1130_v51  ;;  %v6531_v6 = vshll.u32 %v1093_v23, 8  ;;  %v1159_v10 = vshrl.u32 %v1128_v9, 16  ;;  %v1158_v30 = vand.u32 65535, %v1128_v9 }
 0x22c   : > { %v2946_v38 = vsub.f32 %v6513_v35, %v2012_v46  ;;  %v1132_v61 = vsel %vm1118_vm2, %v1129_v52, %v1131_v4  ;;  %v880_v41 = vsel %vm878_vm14, %v879_v24, %v6498_v15  ;;  %v1244_v19 = vshrl.u32 %v1243_v55, 23 }
 0x22d   : > { %v1134_v5 = vand.u32 65535, %v6531_v6  ;;  %v1135_v57 = vshrl.u32 %v6531_v6, 16  ;;  %v1136_v49 = vand.u32 65535, %v1132_v61  ;;  %v1137_v59 = vshrl.u32 %v1132_v61, 16 }
 0x22e   : > { %v2954_v11 = vmul.f32 %v2946_v38, %v373_v48  ;;  %v2962_v54 = vmul.f32 3.0, %v373_v48  ;;  %v881_v16 = vclz %v880_v41  ;;  %v4516_v46 = vadd.s32 4294967169, %v1244_v19 }
 0x22f   : > { %v1140_v37 = vmul.u32 %v1136_v49, %v1135_v57  ;;  %v1161_v3 = vmul.u32 %v1159_v10, %v1134_v5  ;;  %v1138_v8 = vmul.u32 %v1136_v49, %v1134_v5  ;;  %v1139_v28 = vmul.u32 %v1137_v59, %v1134_v5 }
 0x230   : > { %v1162_v23 = vmul.u32 %v1158_v30, %v1135_v57  ;;  %v2970_v60 = vmul.f32 %v2962_v54, %v2954_v11  ;;  %v1160_v52 = vmul.u32 %v1158_v30, %v1134_v5  ;;  %v1141_v51 = vmul.u32 %v1137_v59, %v1135_v57 }
 0x231   : > { %v1142_v4 = vshll.u32 %v1139_v28, 16  ;;  %v1144_v9 = vshll.u32 %v1140_v37, 16  ;;  %v6539_v38 = vmul.f32 %v6448_v56, %v332_v62  ;;  %v1101_v55 = vshrl.u32 %v7090_v45, %v6443_v20 }
 0x232   : > { %v1163_v48 = vmul.u32 %v1159_v10, %v1135_v57  ;;  %v1164_v24 = vshll.u32 %v1161_v3, 16  ;;  %v4508_v61 = vadd.s32 4294967294, %v881_v16  ;;  %v1166_v49 = vshll.u32 %v1162_v23, 16  ;;  %v6554_v16 = vld [vmem:[%s7076_s5] ss:$0 sm:$0xff] }
 0x233   : > { %vm1146_vm15 = vc.u32 %v1138_v8, %v1142_v4  ;;  %v1148_v41 = vadd.s32 %v1142_v4, %v1138_v8  ;;  %v2978_v53 = vsub.f32 %v2970_v60, %v6513_v35  ;;  %v1143_v54 = vshrl.u32 %v1139_v28, 16 }
 0x234   : > { %v1147_v5 = vsel %vm1146_vm15, 1, %v7088_v0  ;;  %vm1168_vm0 = vc.u32 %v1160_v52, %v1164_v24  ;;  %v1170_v19 = vadd.s32 %v1164_v24, %v1160_v52  ;;  %v1250_v59 = vadd.s32 1, %v4516_v46 }
 0x235   : > { %v1149_v30 = vadd.s32 %v1147_v5, %v1141_v51  ;;  %vm1150_vm3 = vc.u32 %v1148_v41, %v1144_v9  ;;  %v1169_v56 = vsel %vm1168_vm0, 1, %v7088_v0  ;;  %v1122_v20 = vsel %vm1120_vm5, %v6491_v50, 2102212464  ;;  %v6567_v41 = vld [vmem:[%s7075_s4] ss:$0 sm:$0xff] }
 0x236   : > { %v1151_v10 = vsel %vm1150_vm3, 1, %v7088_v0  ;;  %v1171_v57 = vadd.s32 %v1169_v56, %v1163_v48  ;;  %v1553_v62 = vand.u32 2139095040, %v6539_v38  ;;  %vm4509_vm1 = vcmp.lt.s32.totalorder %v4508_v61, 0 }
 0x237   : > { %v1153_v8 = vadd.s32 %v1151_v10, %v1149_v30  ;;  %vm1172_vm4 = vc.u32 %v1170_v19, %v1166_v49  ;;  %v1121_v28 = vsel %vm1117_vm6, %v1101_v55, %v6482_v42  ;;  %v1145_v60 = vshrl.u32 %v1140_v37, 16  ;;  %v4297_v55 = vpop.permute.xlu0 %4296  ;;  %v6579_v30 = vld [vmem:[%s7074_s3] ss:$0 sm:$0xff] }
 0x238   : > { %v1165_v52 = vshrl.u32 %v1161_v3, 16  ;;  %v1173_v50 = vsel %vm1172_vm4, 1, %v7088_v0  ;;  %v4350_v46 = vmul.f32 %v6554_v16, %v2978_v53  ;;  %v1123_v51 = vsel %vm1119_vm7, %v6489_v39, %v1122_v20  ;;  %v4365_v53 = vpop.permute.xlu2 %4364 }
 0x239   : > { %v1154_v4 = vadd.s32 %v1153_v8, %v1143_v54  ;;  %v1175_v9 = vadd.s32 %v1173_v50, %v1171_v57  ;;  %v884_v48 = vsel %vm4509_vm1, 0, %v4508_v61  ;;  %v1167_v24 = vshrl.u32 %v1162_v23, 16 }
 0x23a   : > { %vm1251_vm5 = vcmp.gt.s32.totalorder %v1250_v59, 0  ;;  %v4282_v42 = vmul.f32 %v6567_v41, %v2954_v11  ;;  %v6570_v37 = vadd.s32 %v1170_v19, %v1166_v49  ;;  %v1554_v3 = vshrl.u32 %v1553_v62, 23 }
 0x23b   : > { %v1124_v39 = vsel %vm1118_vm2, %v1121_v28, %v1123_v51  ;;  %v6574_v54 = vadd.s32 %v1154_v4, %v1145_v60  ;;  %v1176_v61 = vadd.s32 %v1175_v9, %v1165_v52  ;;  %v4398_v23 = vmul.f32 %v4365_v53, %v4350_v46 }
 0x23c   : > { %v889_v5 = vsub.s32 4294967266, %v884_v48  ;;  %v4262_v11 = vmul.f32 %v6579_v30, %v6513_v35  ;;  %v4330_v49 = vmul.f32 %v4297_v55, %v4282_v42  ;;  %4613 = vrcp.f32 %v5695_v27 }
 0x23d   : > { %v1177_v56 = vadd.s32 %v1176_v61, %v1167_v24  ;;  %v1178_v19 = vmul.u32 %v6531_v6, %v1124_v39  ;;  %vm1180_vm6 = vc.u32 %v6574_v54, %v6570_v37  ;;  %v4522_v20 = vadd.s32 4294967169, %v1554_v3 }
 0x23e   : > { %v4338_v25 = vadd.f32 %v4330_v49, %v4262_v11  ;;  %v1252_v57 = vsel %vm1251_vm5, %v1250_v59, 0  ;;  %v885_v62 = vsub.s32 32, %v884_v48  ;;  %v890_v8 = vadd.s32 127, %v889_v5 }
 0x23f   : > { %v1181_v10 = vadd.s32 1, %v1177_v56  ;;  %vm4413_vm7 = vcmask 146432   ;;  %v869_v6 = vadd.s32 %v6435_v13, %v6425_v40  ;;  %v1254_v52 = vand.u32 31, %v1252_v57 }
 0x240   : > { %v4406_v28 = vadd.f32 %v4398_v23, %v4338_v25  ;;  %v1560_v50 = vadd.s32 1, %v4522_v20  ;;  %v891_v51 = vshll.u32 %v890_v8, 23  ;;  %v886_v9 = vshll.u32 %v6498_v15, %v884_v48 }
 0x241   : > { %v1182_v35 = vsel %vm1180_vm6, %v1181_v10, %v1177_v56  ;;  %v887_v46 = vshrl.u32 %v869_v6, %v885_v62  ;;  %v6603_v42 = vsub.s32 32, %v1254_v52  ;;  %v6609_v55 = vand.u32 2147483647, %v6452_v34 }
 0x242   : > { %4415 = vst.msk [vmem:[%s6592_s25 + $0x8] sm:$0xff] %vm4413_vm7, %v4406_v28  ;;  %v1183_v60 = vadd.s32 %v1182_v35, %v1178_v19  ;;  %v6598_v59 = vpop.eup %4613  ;;  %vm1561_vm8 = vcmp.gt.s32.totalorder %v1560_v50, 0  ;;  %v892_v3 = vor.u32 4788187, %v891_v51  ;;  %v6611_v39 = vshrl.u32 %v1252_v57, 5 }
 0x243   : > { %v406_v40 = vmul.f32 %v6598_v59, %v5695_v27  ;;  %v888_v13 = vor.u32 %v887_v46, %v886_v9  ;;  %v1257_v61 = vshll.u32 %v7090_v45, %v1254_v52  ;;  %v1260_v15 = vshll.u32 %v7086_v47, %v1254_v52 }
 0x244   : > { %v1184_v4 = vadd.s32 536870912, %v1183_v60  ;;  %v1263_v48 = vshll.u32 %v7113_v63, %v1254_v52  ;;  %v1258_v5 = vshrl.u32 %v7086_v47, %v6603_v42  ;;  %v1261_v11 = vshrl.u32 %v7113_v63, %v6603_v42 }
 0x245   : > { %v1264_v49 = vshrl.u32 %v7114_v36, %v6603_v42  ;;  %v1266_v56 = vshll.u32 %v7114_v36, %v1254_v52  ;;  %v7119_v25 = vmov 920167782   ;;  %v1270_v10 = vshrl.u32 %v7115_v44, %v6603_v42 }
 0x246   : > { %v6601_v24 = vshrl.u32 %v1184_v4, 30  ;;  %v1267_v19 = vshrl.u32 %v7119_v25, %v6603_v42  ;;  %v1269_v20 = vshll.u32 %v7119_v25, %v1254_v52  ;;  %v893_v57 = vand.u32 2147483647, %v892_v3 }
 0x247   : > { %v6629_v8 = vsel %vm1561_vm8, %v1560_v50, 0  ;;  %v895_v28 = vcvt.s32.f32 %v888_v13  ;;  %v407_v35 = vsub.f32 1.0, %v406_v40  ;;  %v1247_v6 = vand.u32 8388607, %v6609_v55 }
 0x248   : > { %v1186_v53 = vshll.u32 %v6601_v24, 30  ;;  %v6632_v46 = vor.u32 %v1258_v5, %v1257_v61  ;;  %v6634_v51 = vor.u32 %v1261_v11, %v1260_v15  ;;  %v6636_v4 = vor.u32 %v1264_v49, %v1263_v48 }
 0x249   : > { %v1268_v9 = vor.u32 %v1267_v19, %v1266_v56  ;;  %vm1272_vm11 = vcmp.lt.s32.totalorder %v6611_v39, 1  ;;  %v896_v3 = vmul.f32 %v895_v28, %v893_v57  ;;  %vm1275_vm12 = vcmp.lt.s32.totalorder %v6611_v39, 4 }
 0x24a   : > { %v1187_v23 = vsub.s32 %v1183_v60, %v1186_v53  ;;  %v1271_v53 = vor.u32 %v1270_v10, %v1269_v20  ;;  %v6641_v50 = vand.u32 31, %v6629_v8  ;;  %vm1274_vm13 = vcmp.lt.s32.totalorder %v6611_v39, 3 }
 0x24b   : > { %vm777_vm2 = vcmp.lt.s32.totalorder %v5656_v32, 0  ;;  %v408_v13 = vmul.f32 %v6598_v59, %v407_v35  ;;  %v1248_v61 = vor.u32 8388608, %v1247_v6  ;;  %vm1273_vm9 = vcmp.lt.s32.totalorder %v6611_v39, 2 }
 0x24c   : > { %vm1188_vm10 = vcmp.lt.s32.totalorder %v1187_v23, 0  ;;  %v1189_v62 = vsub.s32 0, %v1187_v23  ;;  %v1280_v15 = vsel %vm1272_vm11, %v6632_v46, %v6634_v51  ;;  %v1281_v48 = vsel %vm1275_vm12, %v1268_v9, 920167782 }
 0x24d   : > { %v1284_v5 = vsel %vm1272_vm11, %v6634_v51, %v6636_v4  ;;  %v1285_v11 = vsel %vm1275_vm12, %v1271_v53, 1326507024  ;;  %v897_v49 = vxor.u32 2147483648, %v896_v3  ;;  %v1282_v19 = vsel %vm1274_vm13, %v6636_v4, %v1281_v48 }
 0x24e   : > { %v1190_v60 = vsel %vm1188_vm10, %v1189_v62, %v1187_v23  ;;  %v1286_v20 = vsel %vm1274_vm13, %v1268_v9, %v1285_v11  ;;  %v1179_v10 = vadd.s32 %v6570_v37, %v6574_v54  ;;  %v1209_v28 = vsub.s32 4, %v6601_v24 }
 0x24f   : > { %v1191_v52 = vclz %v1190_v60  ;;  %v1283_v6 = vsel %vm1273_vm9, %v1280_v15, %v1282_v19  ;;  %v1287_v60 = vsel %vm1273_vm9, %v1284_v5, %v1286_v20  ;;  %v6674_v11 = vadd.f32 %v6598_v59, %v408_v13 }
 0x250   : > { %v1291_v48 = vand.u32 65535, %v1287_v60  ;;  %v1292_v9 = vshrl.u32 %v1287_v60, 16  ;;  %v1313_v19 = vand.u32 65535, %v1283_v6  ;;  %v1314_v47 = vshrl.u32 %v1283_v6, 16 }
 0x251   : > { %v4514_v40 = vadd.s32 4294967294, %v1191_v52  ;;  %v6671_v52 = vshll.u32 %v1248_v61, 8  ;;  %vm410_vm15 = vweird.f32 %v5695_v27  ;;  %vm411_vm0 = vweird.f32 %v6598_v59 }
 0x252   : > { %vm1087_vm3 = vcmp.lt.s32.totalorder %v5695_v27, 0  ;;  %vm776_vm1 = vcmp.le.f32.partialorder %v6266_v26, 0.7853982  ;;  %v898_v20 = vsel %vm777_vm2, %v897_v49, %v896_v3  ;;  %vm1086_vm4 = vcmp.le.f32.partialorder %v6480_v43, 0.7853982 }
 0x253   : > { %vm4515_vm14 = vcmp.lt.s32.totalorder %v4514_v40, 0  ;;  %v1289_v54 = vand.u32 65535, %v6671_v52  ;;  %v1256_v3 = vshrl.u32 %v7090_v45, %v6603_v42  ;;  %v7120_v58 = vmov 0  }
 0x254   : > { %v1194_v56 = vsel %vm4515_vm14, 0, %v4514_v40  ;;  %v1277_v42 = vsel %vm1275_vm12, %v6636_v4, 2102212464  ;;  %vm6714_vm12 = vmor %vm410_vm15, %vm411_vm0  ;;  %4615 = vrcp.f32 %v5656_v32 }
 0x255   : > { %v1195_v57 = vsub.s32 32, %v1194_v56  ;;  %v1199_v62 = vsub.s32 4294967266, %v1194_v56  ;;  %v1196_v35 = vshll.u32 %v1187_v23, %v1194_v56  ;;  %v1290_v23 = vshrl.u32 %v6671_v52, 16 }
 0x256   : > { %v1293_v61 = vmul.u32 %v1291_v48, %v1289_v54  ;;  %v1294_v5 = vmul.u32 %v1292_v9, %v1289_v54  ;;  %v1316_v37 = vmul.u32 %v1314_v47, %v1289_v54  ;;  %4617 = vrcp.f32 %v6452_v34 }
 0x257   : > { %v1197_v53 = vshrl.u32 %v1179_v10, %v1195_v57  ;;  %v1200_v40 = vadd.s32 127, %v1199_v62  ;;  %v1295_v13 = vmul.u32 %v1291_v48, %v1290_v23  ;;  %v1210_v57 = vsel %vm1087_vm3, %v1209_v28, %v6601_v24 }
 0x258   : > { %v1297_v6 = vshll.u32 %v1294_v5, 16  ;;  %v1317_v48 = vmul.u32 %v1313_v19, %v1290_v23  ;;  %v1212_v0 = vsel %vm1086_vm4, 0, %v1210_v57  ;;  %v1318_v24 = vmul.u32 %v1314_v47, %v1290_v23 }
 0x259   : > { %v1198_v56 = vor.u32 %v1197_v53, %v1196_v35  ;;  %v1201_v15 = vshll.u32 %v1200_v40, 23  ;;  %v1296_v35 = vmul.u32 %v1292_v9, %v1290_v23  ;;  %v1299_v60 = vshll.u32 %v1295_v13, 16 }
 0x25a   : > { %v1315_v40 = vmul.u32 %v1313_v19, %v1289_v54  ;;  %vm1301_vm5 = vc.u32 %v1293_v61, %v1297_v6  ;;  %v1303_v49 = vadd.s32 %v1297_v6, %v1293_v61  ;;  %v1319_v28 = vshll.u32 %v1316_v37, 16 }
 0x25b   : > { %v1202_v10 = vor.u32 4788187, %v1201_v15  ;;  %v1205_v62 = vcvt.s32.f32 %v1198_v56  ;;  %v1302_v14 = vsel %vm1301_vm5, 1, %v7120_v58  ;;  %v1298_v9 = vshrl.u32 %v1294_v5, 16 }
 0x25c   : > { %v1304_v56 = vadd.s32 %v1302_v14, %v1296_v35  ;;  %vm1305_vm6 = vc.u32 %v1303_v49, %v1299_v60  ;;  %vm1323_vm8 = vc.u32 %v1315_v40, %v1319_v28  ;;  %v1325_v19 = vadd.s32 %v1319_v28, %v1315_v40 }
 0x25d   : > { %v1203_v53 = vand.u32 2147483647, %v1202_v10  ;;  %v1321_v10 = vshll.u32 %v1317_v48, 16  ;;  %v1306_v54 = vsel %vm1305_vm6, 1, %v7120_v58  ;;  %v1300_v57 = vshrl.u32 %v1295_v13, 16 }
 0x25e   : > { %v1308_v61 = vadd.s32 %v1306_v54, %v1304_v56  ;;  %v1320_v23 = vshrl.u32 %v1316_v37, 16  ;;  %v6704_v5 = vsel %vm776_vm1, %v5656_v32, %v898_v20  ;;  %v1229_v6 = vadd.s32 3, %v1212_v0 }
 0x25f   : > { %v1206_v15 = vmul.f32 %v1205_v62, %v1203_v53  ;;  %v1324_v62 = vsel %vm1323_vm8, 1, %v7120_v58  ;;  %vm1327_vm10 = vc.u32 %v1325_v19, %v1321_v10  ;;  %v1322_v60 = vshrl.u32 %v1317_v48, 16 }
 0x260   : > { %v1326_v14 = vadd.s32 %v1324_v62, %v1318_v24  ;;  %v1309_v4 = vadd.s32 %v1308_v61, %v1298_v9  ;;  %v1328_v13 = vsel %vm1327_vm10, 1, %v7120_v58  ;;  %v1276_v53 = vsel %vm1272_vm11, %v1256_v3, %v6632_v46 }
 0x261   : > { %v1207_v12 = vxor.u32 2147483648, %v1206_v15  ;;  %v1278_v40 = vsel %vm1274_vm13, %v6634_v51, %v1277_v42  ;;  %v6730_v56 = vmul.f32 %v6704_v5, %v6704_v5  ;;  %v413_v46 = vsel %vm6714_vm12, %v6598_v59, %v6674_v11 }
 0x262   : > { %v1330_v20 = vadd.s32 %v1328_v13, %v1326_v14  ;;  %v6724_v49 = vadd.s32 %v1309_v4, %v1300_v57  ;;  %vm415_vm11 = vcmp.eq.f32.partialorder %v6480_v43, 8.507059e+37  ;;  %v7123_v51 = vand.u32 2147483648, %v5695_v27 }
 0x263   : > { %v1208_v47 = vsel %vm1087_vm3, %v1207_v12, %v1206_v15  ;;  %v6726_v15 = vadd.s32 %v1325_v19, %v1321_v10  ;;  %v1279_v54 = vsel %vm1273_vm9, %v1276_v53, %v1278_v40  ;;  %v6742_v42 = vshrl.u32 %v6629_v8, 5 }
 0x264   : > { %v1211_v35 = vsel %vm1086_vm4, %v5695_v27, %v1208_v47  ;;  %v1331_v9 = vadd.s32 %v1330_v20, %v1320_v23  ;;  %v417_v48 = vor.u32 1.1754944e-38, %v7123_v51  ;;  %v1230_v57 = vand.u32 3, %v1229_v6 }
 0x265   : > { %v1213_v37 = vmul.f32 %v1211_v35, %v1211_v35  ;;  %vm1335_vm13 = vc.u32 %v6724_v49, %v6726_v15  ;;  %v6747_v59 = vsub.s32 32, %v6641_v50  ;;  %v2465_v61 = vand.u32 3, %v1212_v0 }
 0x266   : > { %v1332_v19 = vadd.s32 %v1331_v9, %v1322_v60  ;;  %v6750_v47 = vmul.f32 -0.001358992, %v6730_v56  ;;  %v6752_v39 = vsel %vm415_vm11, %v417_v48, %v413_v46  ;;  %v1333_v23 = vmul.u32 %v6671_v52, %v1279_v54 }
 0x267   : > { %v1214_v24 = vmul.f32 -0.001358992, %v1213_v37  ;;  %v1221_v28 = vmul.f32 -0.00019511016, %v1213_v37  ;;  %v6756_v8 = vand.u32 2147483647, %v6539_v38  ;;  %v1577_v0 = vshrl.u32 %v7119_v25, %v6747_v59 }
 0x268   : > { %v1336_v62 = vadd.s32 1, %v1332_v19  ;;  %v911_v14 = vmul.f32 -0.00019511016, %v6730_v56  ;;  %vm1232_vm9 = vcmp.eq.s32.totalorder %v1230_v57, 0  ;;  %vm1235_vm14 = vcmp.eq.s32.totalorder %v1230_v57, 2 }
 0x269   : > { %v1215_v3 = vadd.f32 0.041655596, %v1214_v24  ;;  %v1222_v10 = vadd.f32 0.008332121, %v1221_v28  ;;  %vm1231_vm0 = vcmp.lt.s32.totalorder %v1230_v57, 2  ;;  %vm2467_vm3 = vcmp.eq.s32.totalorder %v2465_v61, 0 }
 0x26a   : > { %v1337_v12 = vsel %vm1335_vm13, %v1336_v62, %v1332_v19  ;;  %vm2470_vm4 = vcmp.eq.s32.totalorder %v2465_v61, 2  ;;  %vm2466_vm5 = vcmp.lt.s32.totalorder %v2465_v61, 2  ;;  %v1557_v53 = vand.u32 8388607, %v6756_v8 }
 0x26b   : > { %v1216_v43 = vmul.f32 %v1215_v3, %v1213_v37  ;;  %v1223_v11 = vmul.f32 %v1222_v10, %v1213_v37  ;;  %v1338_v6 = vadd.s32 %v1337_v12, %v1333_v23  ;;  %v7124_v40 = vmov 2475754826  }
 0x26c   : > { %v1568_v24 = vshrl.u32 %v7124_v40, %v6747_v59  ;;  %v1576_v28 = vshll.u32 %v7114_v36, %v6641_v50  ;;  %v1571_v51 = vshrl.u32 %v7113_v63, %v6747_v59  ;;  %v1567_v3 = vshll.u32 %v7090_v45, %v6641_v50 }
 0x26d   : > { %v1217_v4 = vadd.f32 -0.4999988, %v1216_v43  ;;  %v1224_v13 = vadd.f32 -0.16666654, %v1223_v11  ;;  %v1339_v52 = vadd.s32 536870912, %v1338_v6  ;;  %v1580_v54 = vshrl.u32 %v7115_v44, %v6747_v59 }
 0x26e   : > { %v1578_v10 = vor.u32 %v1577_v0, %v1576_v28  ;;  %v1570_v11 = vshll.u32 %v7124_v40, %v6641_v50  ;;  %v1573_v62 = vshll.u32 %v7113_v63, %v6641_v50  ;;  %vm1585_vm6 = vcmp.lt.s32.totalorder %v6742_v42, 4 }
 0x26f   : > { %v1218_v60 = vmul.f32 %v1217_v4, %v1213_v37  ;;  %v1225_v20 = vmul.f32 %v1224_v13, %v1213_v37  ;;  %v1574_v37 = vshrl.u32 %v7114_v36, %v6747_v59  ;;  %v6770_v48 = vshrl.u32 %v1339_v52, 30 }
 0x270   : > { %v1558_v36 = vor.u32 8388608, %v1557_v53  ;;  %v6781_v4 = vor.u32 %v1568_v24, %v1567_v3  ;;  %v1579_v13 = vshll.u32 %v7119_v25, %v6641_v50  ;;  %v6785_v0 = vor.u32 %v1571_v51, %v1570_v11 }
 0x271   : > { %v1219_v9 = vadd.f32 1.0, %v1218_v60  ;;  %v1226_v46 = vadd.f32 1.0, %v1225_v20  ;;  %v1341_v23 = vshll.u32 %v6770_v48, 30  ;;  %v6787_v44 = vor.u32 %v1574_v37, %v1573_v62 }
 0x272   : > { %v1581_v60 = vor.u32 %v1580_v54, %v1579_v13  ;;  %vm1582_vm8 = vcmp.lt.s32.totalorder %v6742_v42, 1  ;;  %v1591_v63 = vsel %vm1585_vm6, %v1578_v10, 920167782  ;;  %vm1584_vm10 = vcmp.lt.s32.totalorder %v6742_v42, 3 }
 0x273   : > { %v1227_v19 = vmul.f32 %v1226_v46, %v1211_v35  ;;  %v1236_v43 = vxor.u32 2147483648, %v1219_v9  ;;  %v1342_v35 = vsub.s32 %v1338_v6, %v1341_v23  ;;  %v1590_v28 = vsel %vm1582_vm8, %v6781_v4, %v6785_v0 }
 0x274   : > { %v912_v57 = vadd.f32 0.008332121, %v911_v14  ;;  %v1595_v37 = vsel %vm1585_vm6, %v1581_v60, 1326507024  ;;  %vm1583_vm11 = vcmp.lt.s32.totalorder %v6742_v42, 2  ;;  %v1594_v61 = vsel %vm1582_vm8, %v6785_v0, %v6787_v44 }
 0x275   : > { %v1233_v12 = vxor.u32 2147483648, %v1227_v19  ;;  %v1237_v52 = vsel %vm1235_vm14, %v1236_v43, %v1227_v19  ;;  %v2472_v53 = vsel %vm2470_vm4, %v1236_v43, %v1227_v19  ;;  %vm1343_vm12 = vcmp.lt.s32.totalorder %v1342_v35, 0 }
 0x276   : > { %v1344_v6 = vsub.s32 0, %v1342_v35  ;;  %v1596_v19 = vsel %vm1584_vm10, %v1578_v10, %v1595_v37  ;;  %v6825_v43 = vshll.u32 %v1558_v36, 8  ;;  %v899_v23 = vsub.s32 4, %v6477_v17 }
 0x277   : > { %v1234_v20 = vsel %vm1232_vm9, %v1219_v9, %v1233_v12  ;;  %v2469_v25 = vsel %vm2467_vm3, %v1219_v9, %v1233_v12  ;;  %v1592_v9 = vsel %vm1584_vm10, %v6787_v44, %v1591_v63  ;;  %v905_v13 = vadd.f32 0.041655596, %v6750_v47 }
 0x278   : > { %v1238_v50 = vsel %vm1231_vm0, %v1234_v20, %v1237_v52  ;;  %v2473_v24 = vsel %vm2466_vm5, %v2469_v25, %v2472_v53  ;;  %v1345_v51 = vsel %vm1343_vm12, %v1344_v6, %v1342_v35  ;;  %v1593_v14 = vsel %vm1583_vm11, %v1590_v28, %v1592_v9 }
 0x279   : > { %v1239_v40 = vsel %vm410_vm15, nan, %v1238_v50  ;;  %v1346_v3 = vclz %v1345_v51  ;;  %v2474_v54 = vsel %vm410_vm15, nan, %v2473_v24  ;;  %v913_v27 = vmul.f32 %v912_v57, %v6730_v56 }
 0x27a   : > { %v6810_v46 = vmul.f32 %v1239_v40, %v6752_v39  ;;  %v1597_v12 = vsel %vm1583_vm11, %v1594_v61, %v1596_v19  ;;  %v1624_v10 = vshrl.u32 %v1593_v14, 16  ;;  %v1334_v36 = vadd.s32 %v6726_v15, %v6724_v49  ;;  %v6845_v49 = vpop.eup %4615 }
 0x27b   : > { %v4517_v62 = vadd.s32 4294967294, %v1346_v3  ;;  %v1601_v60 = vand.u32 65535, %v1597_v12  ;;  %v1602_v63 = vshrl.u32 %v1597_v12, 16  ;;  %v1599_v52 = vand.u32 65535, %v6825_v43 }
 0x27c   : > { %v2949_v11 = vsub.f32 %v6810_v46, %v2474_v54  ;;  %v1600_v25 = vshrl.u32 %v6825_v43, 16  ;;  %v1623_v6 = vand.u32 65535, %v1593_v14  ;;  %v6842_v40 = vsel %vm777_vm2, %v899_v23, %v6477_v17 }
 0x27d   : > { %vm4518_vm15 = vcmp.lt.s32.totalorder %v4517_v62, 0  ;;  %v2965_v24 = vmul.f32 3.0, %v6752_v39  ;;  %v1604_v28 = vmul.u32 %v1602_v63, %v1599_v52  ;;  %v1626_v37 = vmul.u32 %v1624_v10, %v1599_v52 }
 0x27e   : > { %v1349_v20 = vsel %vm4518_vm15, 0, %v4517_v62  ;;  %v2957_v50 = vmul.f32 %v2949_v11, %v6752_v39  ;;  %v1605_v9 = vmul.u32 %v1601_v60, %v1600_v25  ;;  %v906_v3 = vmul.f32 %v905_v13, %v6730_v56 }
 0x27f   : > { %v1350_v47 = vsub.s32 32, %v1349_v20  ;;  %v1354_v53 = vsub.s32 4294967266, %v1349_v20  ;;  %v1351_v15 = vshll.u32 %v1342_v35, %v1349_v20  ;;  %v914_v61 = vadd.f32 -0.16666654, %v913_v27 }
 0x280   : > { %v1603_v54 = vmul.u32 %v1601_v60, %v1599_v52  ;;  %v1607_v14 = vshll.u32 %v1604_v28, 16  ;;  %v2973_v19 = vmul.f32 %v2965_v24, %v2957_v50  ;;  %v1627_v17 = vmul.u32 %v1623_v6, %v1600_v25 }
 0x281   : > { %v1352_v57 = vshrl.u32 %v1334_v36, %v1350_v47  ;;  %v1355_v51 = vadd.s32 127, %v1354_v53  ;;  %vm1242_vm2 = vcmp.lt.s32.totalorder %v6452_v34, 0  ;;  %v1606_v39 = vmul.u32 %v1602_v63, %v1600_v25 }
 0x282   : > { %v1609_v23 = vshll.u32 %v1605_v9, 16  ;;  %vm1611_vm13 = vc.u32 %v1603_v54, %v1607_v14  ;;  %v1613_v12 = vadd.s32 %v1607_v14, %v1603_v54  ;;  %v1625_v36 = vmul.u32 %v1623_v6, %v1599_v52 }
 0x283   : > { %v1353_v11 = vor.u32 %v1352_v57, %v1351_v15  ;;  %v1356_v62 = vshll.u32 %v1355_v51, 23  ;;  %v1612_v35 = vsel %vm1611_vm13, 1, %v7120_v58  ;;  %v1629_v20 = vshll.u32 %v1626_v37, 16 }
 0x284   : > { %v1608_v47 = vshrl.u32 %v1604_v28, 16  ;;  %v1614_v13 = vadd.s32 %v1612_v35, %v1606_v39  ;;  %vm1615_vm9 = vc.u32 %v1613_v12, %v1609_v23  ;;  %v1628_v27 = vmul.u32 %v1624_v10, %v1600_v25 }
 0x285   : > { %v1357_v45 = vor.u32 4788187, %v1356_v62  ;;  %v1360_v53 = vcvt.s32.f32 %v1353_v11  ;;  %v1616_v24 = vsel %vm1615_vm9, 1, %v7120_v58  ;;  %vm1633_vm14 = vc.u32 %v1625_v36, %v1629_v20 }
 0x286   : > { %v1618_v15 = vadd.s32 %v1616_v24, %v1614_v13  ;;  %v1631_v57 = vshll.u32 %v1627_v17, 16  ;;  %v1634_v63 = vsel %vm1633_vm14, 1, %v7120_v58  ;;  %v1635_v51 = vadd.s32 %v1629_v20, %v1625_v36 }
 0x287   : > { %v1358_v60 = vand.u32 2147483647, %v1357_v45  ;;  %v907_v54 = vadd.f32 -0.4999988, %v906_v3  ;;  %vm1241_vm0 = vcmp.le.f32.partialorder %v6609_v55, 0.7853982  ;;  %v1636_v52 = vadd.s32 %v1634_v63, %v1628_v27 }
 0x288   : > { %v7125_v6 = vmov 683565275   ;;  %v1587_v45 = vsel %vm1585_vm6, %v6787_v44, 2102212464  ;;  %v1619_v10 = vadd.s32 %v1618_v15, %v1608_v47  ;;  %vm1637_vm3 = vc.u32 %v1635_v51, %v1631_v57 }
 0x289   : > { %v1361_v14 = vmul.f32 %v1360_v53, %v1358_v60  ;;  %v1566_v28 = vshrl.u32 %v7125_v6, %v6747_v59  ;;  %v2981_v25 = vsub.f32 %v2973_v19, %v6810_v46  ;;  %v1610_v62 = vshrl.u32 %v1605_v9, 16 }
 0x28a   : > { %v1638_v39 = vsel %vm1637_vm3, 1, %v7120_v58  ;;  %v915_v3 = vmul.f32 %v914_v61, %v6730_v56  ;;  %v1630_v12 = vshrl.u32 %v1626_v37, 16  ;;  %v4285_v44 = vmul.f32 %v6567_v41, %v2957_v50  ;;  %v4380_v58 = vpop.permute.xlu2 %4379  ;;  %v4312_v37 = vpop.permute.xlu0 %4311 }
 0x28b   : > { %v1362_v11 = vxor.u32 2147483648, %v1361_v14  ;;  %v1586_v23 = vsel %vm1582_vm8, %v1566_v28, %v6781_v4  ;;  %v1640_v59 = vadd.s32 %v1638_v39, %v1636_v52  ;;  %v1588_v19 = vsel %vm1584_vm10, %v6785_v0, %v1587_v45 }
 0x28c   : > { %v6870_v9 = vadd.s32 %v1619_v10, %v1610_v62  ;;  %v4265_v4 = vmul.f32 %v6579_v30, %v6810_v46  ;;  %v1632_v36 = vshrl.u32 %v1627_v17, 16  ;;  %v4353_v50 = vmul.f32 %v6554_v16, %v2981_v25 }
 0x28d   : > { %v1363_v35 = vsel %vm1242_vm2, %v1362_v11, %v1361_v14  ;;  %v1641_v20 = vadd.s32 %v1640_v59, %v1630_v12  ;;  %v4333_v0 = vmul.f32 %v4312_v37, %v4285_v44  ;;  %v6884_v13 = vadd.s32 %v1635_v51, %v1631_v57  ;;  %v6910_v44 = vpop.eup %4617 }
 0x28e   : > { %v6875_v61 = vsel %vm1241_vm0, %v6452_v34, %v1363_v35  ;;  %v902_v27 = vsel %vm776_vm1, 0, %v6842_v40  ;;  %v916_v60 = vadd.f32 1.0, %v915_v3  ;;  %v1589_v46 = vsel %vm1583_vm11, %v1586_v23, %v1588_v19 }
 0x28f   : > { %v6882_v47 = vmul.f32 %v6875_v61, %v6875_v61  ;;  %v1642_v53 = vadd.s32 %v1641_v20, %v1632_v36  ;;  %v4401_v17 = vmul.f32 %v4380_v58, %v4353_v50  ;;  %v4341_v24 = vadd.f32 %v4333_v0, %v4265_v4 }
 0x290   : > { %vm1645_vm4 = vc.u32 %v6870_v9, %v6884_v13  ;;  %v376_v15 = vmul.f32 %v6845_v49, %v5656_v32  ;;  %v908_v40 = vmul.f32 %v907_v54, %v6730_v56  ;;  %v1643_v14 = vmul.u32 %v6825_v43, %v1589_v46 }
 0x291   : > { %v1376_v16 = vmul.f32 -0.00019511016, %v6882_v47  ;;  %v1369_v57 = vmul.f32 -0.001358992, %v6882_v47  ;;  %v1646_v63 = vadd.s32 1, %v1642_v53  ;;  %v4409_v42 = vadd.f32 %v4401_v17, %v4341_v24  ;;  %v6922_v17 = vpop.permute.xlu1 %4301 }
 0x292   : > { %v919_v52 = vadd.s32 3, %v902_v27  ;;  %v917_v28 = vmul.f32 %v916_v60, %v6704_v5  ;;  %v377_v25 = vsub.f32 1.0, %v376_v15  ;;  %v909_v62 = vadd.f32 1.0, %v908_v40 }
 0x293   : > { %v1377_v51 = vadd.f32 0.008332121, %v1376_v16  ;;  %v1647_v6 = vsel %vm1645_vm4, %v1646_v63, %v1642_v53  ;;  %4418 = vst.msk [vmem:[%s6592_s25 + $0x20] sm:$0xff] %vm4413_vm7, %v4409_v42  ;;  %v1370_v11 = vadd.f32 0.041655596, %v1369_v57  ;;  %v1364_v43 = vsub.s32 4, %v6770_v48 }
 0x294   : > { %v1648_v10 = vadd.s32 %v1647_v6, %v1643_v14  ;;  %v920_v56 = vand.u32 3, %v919_v52  ;;  %v923_v3 = vxor.u32 2147483648, %v917_v28  ;;  %v378_v5 = vmul.f32 %v6845_v49, %v377_v25 }
 0x295   : > { %v1378_v45 = vmul.f32 %v1377_v51, %v6882_v47  ;;  %v1371_v12 = vmul.f32 %v1370_v11, %v6882_v47  ;;  %v926_v59 = vxor.u32 2147483648, %v909_v62  ;;  %vm380_vm1 = vweird.f32 %v5656_v32 }
 0x296   : > { %v1649_v39 = vadd.s32 536870912, %v1648_v10  ;;  %vm381_vm5 = vweird.f32 %v6845_v49  ;;  %vm922_vm6 = vcmp.eq.s32.totalorder %v920_v56, 0  ;;  %v386_v58 = vand.u32 2147483648, %v5656_v32 }
 0x297   : > { %v1379_v54 = vadd.f32 -0.16666654, %v1378_v45  ;;  %v924_v4 = vsel %vm922_vm6, %v909_v62, %v923_v3  ;;  %v1365_v37 = vsel %vm1242_vm2, %v1364_v43, %v6770_v48  ;;  %v379_v20 = vadd.f32 %v6845_v49, %v378_v5  ;;  %vm382_vm11 = vmor %vm380_vm1, %vm381_vm5 }
 0x298   : > { %v6905_v23 = vshrl.u32 %v1649_v39, 30  ;;  %vm925_vm8 = vcmp.eq.s32.totalorder %v920_v56, 2  ;;  %v2157_v50 = vand.u32 3, %v902_v27  ;;  %v1372_v0 = vadd.f32 -0.4999988, %v1371_v12 }
 0x299   : > { %v1380_v19 = vmul.f32 %v1379_v54, %v6882_v47  ;;  %vm921_vm10 = vcmp.lt.s32.totalorder %v920_v56, 2  ;;  %v927_v60 = vsel %vm925_vm8, %v926_v59, %v917_v28  ;;  %v421_v46 = vmul.f32 %v6910_v44, %v6452_v34  ;;  %v6950_v12 = vpop.permute.xlu1 %4316 }
 0x29a   : > { %v1651_v35 = vshll.u32 %v6905_v23, 30  ;;  %v928_v53 = vsel %vm921_vm10, %v924_v4, %v927_v60  ;;  %v1367_v16 = vsel %vm1241_vm0, 0, %v1365_v37  ;;  %v387_v27 = vor.u32 1.1754944e-38, %v386_v58 }
 0x29b   : > { %v1381_v24 = vadd.f32 1.0, %v1380_v19  ;;  %v383_v15 = vsel %vm382_vm11, %v6845_v49, %v379_v20  ;;  %vm2159_vm15 = vcmp.eq.s32.totalorder %v2157_v50, 0  ;;  %v1373_v57 = vmul.f32 %v1372_v0, %v6882_v47 }
 0x29c   : > { %v1652_v36 = vsub.s32 %v1648_v10, %v1651_v35  ;;  %v929_v40 = vsel %vm380_vm1, nan, %v928_v53  ;;  %v2161_v51 = vsel %vm2159_vm15, %v909_v62, %v923_v3  ;;  %v1384_v42 = vadd.s32 3, %v1367_v16 }
 0x29d   : > { %vm385_vm2 = vcmp.eq.f32.partialorder %v6266_v26, 8.507059e+37  ;;  %vm2162_vm13 = vcmp.eq.s32.totalorder %v2157_v50, 2  ;;  %v422_v52 = vsub.f32 1.0, %v421_v46  ;;  %v1382_v6 = vmul.f32 %v1381_v24, %v6875_v61 }
 0x29e   : > { %vm1653_vm12 = vcmp.lt.s32.totalorder %v1652_v36, 0  ;;  %v1654_v48 = vsub.s32 0, %v1652_v36  ;;  %v6936_v45 = vsel %vm385_vm2, %v387_v27, %v383_v15  ;;  %vm2158_vm9 = vcmp.lt.s32.totalorder %v2157_v50, 2 }
 0x29f   : > { %v2164_v49 = vsel %vm2162_vm13, %v926_v59, %v917_v28  ;;  %v6939_v47 = vmul.f32 %v929_v40, %v6936_v45  ;;  %v1374_v11 = vadd.f32 1.0, %v1373_v57  ;;  %v1385_v39 = vand.u32 3, %v1384_v42 }
 0x2a0   : > { %v1655_v63 = vsel %vm1653_vm12, %v1654_v48, %v1652_v36  ;;  %v2165_v25 = vsel %vm2158_vm9, %v2161_v51, %v2164_v49  ;;  %4619 = vrcp.f32 %v6539_v38  ;;  %v423_v26 = vmul.f32 %v6910_v44, %v422_v52 }
 0x2a1   : > { %v1656_v14 = vclz %v1655_v63  ;;  %v1388_v62 = vxor.u32 2147483648, %v1382_v6  ;;  %v2166_v61 = vsel %vm380_vm1, nan, %v2165_v25  ;;  %v1644_v28 = vadd.s32 %v6884_v13, %v6870_v9  ;;  %v4360_v42 = vpop.permute.xlu1 %4359 }
 0x2a2   : > { %v2947_v43 = vsub.f32 %v6939_v47, %v2166_v61  ;;  %vm425_vm0 = vweird.f32 %v6452_v34  ;;  %vm426_vm3 = vweird.f32 %v6910_v44  ;;  %v1391_v5 = vxor.u32 2147483648, %v1374_v11 }
 0x2a3   : > { %v4523_v10 = vadd.s32 4294967294, %v1656_v14  ;;  %vm1387_vm4 = vcmp.eq.s32.totalorder %v1385_v39, 0  ;;  %v424_v32 = vadd.f32 %v6910_v44, %v423_v26  ;;  %v431_v58 = vand.u32 2147483648, %v6452_v34  ;;  %vm6961_vm5 = vmor %vm425_vm0, %vm426_vm3 }
 0x2a4   : > { %v1389_v9 = vsel %vm1387_vm4, %v1374_v11, %v1388_v62  ;;  %vm1390_vm1 = vcmp.eq.s32.totalorder %v1385_v39, 2  ;;  %v2619_v13 = vand.u32 3, %v1367_v16  ;;  %v2955_v50 = vmul.f32 %v2947_v43, %v6936_v45 }
 0x2a5   : > { %vm4524_vm14 = vcmp.lt.s32.totalorder %v4523_v10, 0  ;;  %vm1386_vm6 = vcmp.lt.s32.totalorder %v1385_v39, 2  ;;  %v1392_v0 = vsel %vm1390_vm1, %v1391_v5, %v1382_v6  ;;  %vm430_vm8 = vcmp.eq.f32.partialorder %v6609_v55, 8.507059e+37 }
 0x2a6   : > { %v1659_v56 = vsel %vm4524_vm14, 0, %v4523_v10  ;;  %v6954_v20 = vpop.eup %4619  ;;  %v1393_v60 = vsel %vm1386_vm6, %v1389_v9, %v1392_v0  ;;  %v432_v53 = vor.u32 1.1754944e-38, %v431_v58  ;;  %v428_v16 = vsel %vm6961_vm5, %v6910_v44, %v424_v32 }
 0x2a7   : > { %v1660_v54 = vsub.s32 32, %v1659_v56  ;;  %v1664_v3 = vsub.s32 4294967266, %v1659_v56  ;;  %v1661_v59 = vshll.u32 %v1652_v36, %v1659_v56  ;;  %vm2621_vm10 = vcmp.eq.s32.totalorder %v2619_v13, 0 }
 0x2a8   : > { %v4283_v27 = vmul.f32 %v6567_v41, %v2955_v50  ;;  %v1394_v15 = vsel %vm425_vm0, nan, %v1393_v60  ;;  %v2623_v57 = vsel %vm2621_vm10, %v1374_v11, %v1388_v62  ;;  %vm2624_vm12 = vcmp.eq.s32.totalorder %v2619_v13, 2 }
 0x2a9   : > { %v1662_v35 = vshrl.u32 %v1644_v28, %v1660_v54  ;;  %v1665_v19 = vadd.s32 127, %v1664_v3  ;;  %v451_v63 = vmul.f32 %v6954_v20, %v6539_v38  ;;  %v433_v55 = vsel %vm430_vm8, %v432_v53, %v428_v16  ;;  %v6995_v28 = vpop.permute.xlu0 %4326  ;;  %v4375_v9 = vpop.permute.xlu1 %4374 }
 0x2aa   : > { %vm2620_vm11 = vcmp.lt.s32.totalorder %v2619_v13, 2  ;;  %v2626_v51 = vsel %vm2624_vm12, %v1391_v5, %v1382_v6  ;;  %v6974_v44 = vmul.f32 %v1394_v15, %v433_v55  ;;  %v1674_v49 = vsub.s32 4, %v6905_v23 }
 0x2ab   : > { %v1663_v4 = vor.u32 %v1662_v35, %v1661_v59  ;;  %v1666_v37 = vshll.u32 %v1665_v19, 23  ;;  %v2627_v14 = vsel %vm2620_vm11, %v2623_v57, %v2626_v51  ;;  %v4331_v41 = vmul.f32 %v6922_v17, %v4283_v27 }
 0x2ac   : > { %vm1552_vm15 = vcmp.lt.s32.totalorder %v6539_v38, 0  ;;  %v452_v10 = vsub.f32 1.0, %v451_v63  ;;  %vm1551_vm2 = vcmp.le.f32.partialorder %v6756_v8, 0.7853982  ;;  %v4263_v11 = vmul.f32 %v6579_v30, %v6939_v47 }
 0x2ad   : > { %v1667_v46 = vor.u32 4788187, %v1666_v37  ;;  %v1670_v48 = vcvt.s32.f32 %v1663_v4  ;;  %v2628_v6 = vsel %vm425_vm0, nan, %v2627_v14  ;;  %v2961_v26 = vmul.f32 3.0, %v5909_v21 }
 0x2ae   : > { %v2950_v17 = vsub.f32 %v6974_v44, %v2628_v6  ;;  %v1675_v62 = vsel %vm1552_vm15, %v1674_v49, %v6905_v23  ;;  %v4339_v61 = vadd.f32 %v4331_v41, %v4263_v11  ;;  %v453_v34 = vmul.f32 %v6954_v20, %v452_v10  ;;  %v7131_v6 = vld [vmem:[#allocation3_spill] sm:$0xff] }
 0x2af   : > { %v1668_v24 = vand.u32 2147483647, %v1667_v46  ;;  %v2969_v30 = vmul.f32 %v2961_v26, %v6015_v2  ;;  %v2964_v43 = vmul.f32 3.0, %v6164_v1  ;;  %vm455_vm13 = vweird.f32 %v6539_v38  ;;  %v7009_v1 = vld [vmem:[%s7076_s5] ss:$0 sm:$0xff] }
 0x2b0   : > { %v1677_v21 = vsel %vm1551_vm2, 0, %v1675_v62  ;;  %v2963_v5 = vmul.f32 3.0, %v6936_v45  ;;  %v2967_v59 = vmul.f32 3.0, %v6350_v33  ;;  %v2958_v2 = vmul.f32 %v2950_v17, %v433_v55 }
 0x2b1   : > { %v1671_v40 = vmul.f32 %v1670_v48, %v1668_v24  ;;  %v2977_v23 = vsub.f32 %v2969_v30, %v5989_v22  ;;  %vm456_vm9 = vweird.f32 %v6954_v20  ;;  %v2972_v58 = vmul.f32 %v2964_v43, %v6190_v31  ;;  %v4370_v57 = vpop.permute.xlu0 %4369  ;;  %v4390_v62 = vpop.permute.xlu1 %4389 }
 0x2b2   : > { %v2971_v22 = vmul.f32 %v2963_v5, %v2955_v50  ;;  %v2975_v45 = vmul.f32 %v2967_v59, %v6386_v29  ;;  %v1694_v4 = vadd.s32 3, %v1677_v21  ;;  %v2966_v37 = vmul.f32 3.0, %v433_v55  ;;  %v7128_v29 = vld [vmem:[#allocation2_spill] sm:$0xff]  ;;  %vm7032_vm14 = vmor %vm455_vm13, %vm456_vm9 }
 0x2b3   : > { %v1672_v52 = vxor.u32 2147483648, %v1671_v40  ;;  %v4349_v32 = vmul.f32 %v7009_v1, %v2977_v23  ;;  %v2980_v0 = vsub.f32 %v2972_v58, %v6171_v18  ;;  %v454_v53 = vadd.f32 %v6954_v20, %v453_v34 }
 0x2b4   : > { %v2979_v60 = vsub.f32 %v2971_v22, %v6939_v47  ;;  %v2983_v46 = vsub.f32 %v2975_v45, %v6363_v7  ;;  %v2974_v24 = vmul.f32 %v2966_v37, %v2958_v2  ;;  %v461_v50 = vand.u32 2147483648, %v6539_v38 }
 0x2b5   : > { %v1673_v25 = vsel %vm1552_vm15, %v1672_v52, %v1671_v40  ;;  %v4397_v36 = vmul.f32 %v4360_v42, %v4349_v32  ;;  %v4352_v27 = vmul.f32 %v7009_v1, %v2980_v0  ;;  %v2927_v47 = vand.u32 3, %v1677_v21  ;;  %v4626_v40 = vld [vmem:[%s7075_s4] ss:$0 sm:$0xff] }
 0x2b6   : > { %v6987_v39 = vsel %vm1551_vm2, %v6539_v38, %v1673_v25  ;;  %v4351_v15 = vmul.f32 %v7009_v1, %v2979_v60  ;;  %v4355_v7 = vmul.f32 %v7009_v1, %v2983_v46  ;;  %v4286_v55 = vmul.f32 %v4626_v40, %v2958_v2 }
 0x2b7   : > { %v1678_v56 = vmul.f32 %v6987_v39, %v6987_v39  ;;  %v4405_v48 = vadd.f32 %v4397_v36, %v7128_v29  ;;  %v1695_v51 = vand.u32 3, %v1694_v4  ;;  %v4400_v42 = vmul.f32 %v4375_v9, %v4352_v27 }
 0x2b8   : > { %v4399_v14 = vmul.f32 %v4370_v57, %v4351_v15  ;;  %v2982_v10 = vsub.f32 %v2974_v24, %v6974_v44  ;;  %v4334_v25 = vmul.f32 %v6950_v12, %v4286_v55  ;;  %v458_v11 = vsel %vm7032_vm14, %v6954_v20, %v454_v53 }
 0x2b9   : > { %v1679_v54 = vmul.f32 -0.001358992, %v1678_v56  ;;  %v1686_v3 = vmul.f32 -0.00019511016, %v1678_v56  ;;  %4414 = vst.msk [vmem:[%s6592_s25] sm:$0xff] %vm4413_vm7, %v4405_v48  ;;  %v4408_v26 = vadd.f32 %v4400_v42, %v7131_v6  ;;  %vm1696_vm0 = vcmp.lt.s32.totalorder %v1695_v51, 2 }
 0x2ba   : > { %v4407_v17 = vadd.f32 %v4399_v14, %v4339_v61  ;;  %vm1697_vm3 = vcmp.eq.s32.totalorder %v1695_v51, 0  ;;  %vm2928_vm4 = vcmp.lt.s32.totalorder %v2927_v47, 2  ;;  %vm1700_vm1 = vcmp.eq.s32.totalorder %v1695_v51, 2  ;;  %v7132_v61 = vld [vmem:[#allocation4_spill] sm:$0xff] }
 0x2bb   : > { %v1680_v35 = vadd.f32 0.041655596, %v1679_v54  ;;  %v1687_v19 = vadd.f32 0.008332121, %v1686_v3  ;;  %v4403_v54 = vmul.f32 %v4390_v62, %v4355_v7  ;;  %v4627_v3 = vld [vmem:[%s7074_s3] ss:$0 sm:$0xff]  ;;  %v4354_v43 = vmul.f32 %v7009_v1, %v2982_v10 }
 0x2bc   : > { %v4266_v12 = vmul.f32 %v4627_v3, %v6974_v44  ;;  %4417 = vst.msk [vmem:[%s6592_s25 + $0x18] sm:$0xff] %vm4413_vm7, %v4408_v26  ;;  %vm2929_vm5 = vcmp.eq.s32.totalorder %v2927_v47, 0  ;;  %vm2932_vm6 = vcmp.eq.s32.totalorder %v2927_v47, 2  ;;  %v4385_v44 = vpop.permute.xlu0 %4384  ;;  %vm460_vm8 = vcmp.eq.f32.partialorder %v6756_v8, 8.507059e+37 }
 0x2bd   : > { %v1681_v13 = vmul.f32 %v1680_v35, %v1678_v56  ;;  %v1688_v33 = vmul.f32 %v1687_v19, %v1678_v56  ;;  %4416 = vst.msk [vmem:[%s6592_s25 + $0x10] sm:$0xff] %vm4413_vm7, %v4407_v17  ;;  %v4402_v35 = vmul.f32 %v4385_v44, %v4354_v43 }
 0x2be   : > { %v4342_v21 = vadd.f32 %v4334_v25, %v4266_v12 }
 0x2bf   : > { %v1682_v16 = vadd.f32 -0.4999988, %v1681_v13  ;;  %v1689_v31 = vadd.f32 -0.16666654, %v1688_v33 }
 0x2c0   : > { %v4410_v22 = vadd.f32 %v4402_v35, %v4342_v21 }
 0x2c1   : > { %v1683_v18 = vmul.f32 %v1682_v16, %v1678_v56  ;;  %v1690_v63 = vmul.f32 %v1689_v31, %v1678_v56  ;;  %v462_v56 = vor.u32 1.1754944e-38, %v461_v50  ;;  %v4395_v16 = vpop.permute.xlu2 %4394 }
 0x2c2   : > { %4419 = vst.msk [vmem:[%s6592_s25 + $0x28] sm:$0xff] %vm4413_vm7, %v4410_v22 }
 0x2c3   : > { %v1684_v49 = vadd.f32 1.0, %v1683_v18  ;;  %v1691_v41 = vadd.f32 1.0, %v1690_v63  ;;  %v463_v58 = vsel %vm460_vm8, %v462_v56, %v458_v11 }
 0x2c4   : > { %v2968_v37 = vmul.f32 3.0, %v463_v58 }
 0x2c5   : > { %v1692_v30 = vmul.f32 %v1691_v41, %v6987_v39  ;;  %v1701_v34 = vxor.u32 2147483648, %v1684_v49  ;;  %v4411_v39 = vadd.f32 %v4403_v54, %v7132_v61 }
 0x2c7   : > { %v1698_v20 = vxor.u32 2147483648, %v1692_v30  ;;  %v1702_v23 = vsel %vm1700_vm1, %v1701_v34, %v1692_v30  ;;  %v2934_v2 = vsel %vm2932_vm6, %v1701_v34, %v1692_v30  ;;  %4420 = vst.msk [vmem:[%s6592_s25 + $0x30] sm:$0xff] %vm4413_vm7, %v4411_v39 }
 0x2c9   : > { %v1699_v5 = vsel %vm1697_vm3, %v1684_v49, %v1698_v20  ;;  %v2931_v59 = vsel %vm2929_vm5, %v1684_v49, %v1698_v20 }
 0x2ca   : > { %v1703_v19 = vsel %vm1696_vm0, %v1699_v5, %v1702_v23  ;;  %v2935_v32 = vsel %vm2928_vm4, %v2931_v59, %v2934_v2 }
 0x2cb   : > { %v1704_v9 = vsel %vm455_vm13, nan, %v1703_v19  ;;  %v2936_v13 = vsel %vm455_vm13, nan, %v2935_v32 }
 0x2cc   : > { %v2944_v45 = vmul.f32 %v1704_v9, %v463_v58 }
 0x2ce   : > { %v2952_v33 = vsub.f32 %v2944_v45, %v2936_v13  ;;  %v4268_v53 = vmul.f32 %v4627_v3, %v2944_v45 }
 0x2d0   : > { %v2960_v4 = vmul.f32 %v2952_v33, %v463_v58 }
 0x2d2   : > { %v2976_v8 = vmul.f32 %v2968_v37, %v2960_v4  ;;  %v4288_v36 = vmul.f32 %v4626_v40, %v2960_v4 }
 0x2d4   : > { %v2984_v0 = vsub.f32 %v2976_v8, %v2944_v45  ;;  %v4336_v60 = vmul.f32 %v6995_v28, %v4288_v36 }
 0x2d6   : > { %v4356_v46 = vmul.f32 %v7009_v1, %v2984_v0  ;;  %v4344_v24 = vadd.f32 %v4336_v60, %v4268_v53 }
 0x2d8   : > { %v4404_v31 = vmul.f32 %v4395_v16, %v4356_v46 }
 0x2da   : > { %v4412_v50 = vadd.f32 %v4404_v31, %v4344_v24 }
 0x2dc   : > { %4421 = vst.msk [vmem:[%s6592_s25 + $0x38] sm:$0xff] %vm4413_vm7, %v4412_v50 }
 0x2dd PF: > { %s16_s21 = sadd.s32 1, %s4634_s21  }
 0x2de   : > { %p13_p4 = scmp.ge.s32.totalorder %s16_s21, 6  }
 0x2e0   :  { %15 = sbr.rel (!%p13_p4) target bundleno = 1 (0x1), region = 77 }

</bundles_post_ra>
